<compile_context>
chip_gen: v7x
topology: tpu7x:2x2x1
jax: 0.10.0
libtpu: 0.0.40
codegen_flags: <defaults>
</compile_context>

<pallas_src>
import functools

import jax
import jax.numpy as jnp
from jax.experimental import pallas as pl
from jax.experimental.pallas import tpu as pltpu

_BN_EPS = 1e-5
_LANE = 128


# ----------------------------------------------------------------------------
# helpers
# ----------------------------------------------------------------------------
def _round_up(x, m):
    return (x + m - 1) // m * m


def _pick_tile_m(m, min_tile=16, max_tile=512):
    """Large M tiles, but keep >=2 grid blocks when possible (v7x: 2 TCs)."""
    if m <= 2 * min_tile:
        mp = _round_up(m, min_tile)
        return mp, mp
    tm = min(_round_up((m + 1) // 2, min_tile), max_tile)
    mp = _round_up(m, tm)
    return mp, tm


# ----------------------------------------------------------------------------
# fused matmul + bias + activation kernel (taps folded into the contraction)
# ----------------------------------------------------------------------------
def _matmul_bias_act_kernel(x_ref, w_ref, b_ref, o_ref, *, act):
    y = jnp.dot(x_ref[...], w_ref[...], preferred_element_type=jnp.float32)
    y = y + b_ref[...]
    if act == "tanh":
        y = jnp.tanh(y)
    o_ref[...] = y.astype(o_ref.dtype)


def matmul_bias_act(x_cols, w_mat, b_vec, act, out_dtype):
    """x_cols: (M, Kc) bf16; w_mat: (Kc, Cp) bf16; b_vec: (1, Cp) f32."""
    M, Kc = x_cols.shape
    Cp = w_mat.shape[1]
    Mp, tm = _pick_tile_m(M)
    if Mp != M:
        x_cols = jnp.pad(x_cols, ((0, Mp - M), (0, 0)))
    out = pl.pallas_call(
        functools.partial(_matmul_bias_act_kernel, act=act),
        out_shape=jax.ShapeDtypeStruct((Mp, Cp), out_dtype),
        grid_spec=pltpu.PrefetchScalarGridSpec(
            num_scalar_prefetch=0,
            grid=(Mp // tm,),
            in_specs=[
                pl.BlockSpec((tm, Kc), lambda i: (i, 0)),
                pl.BlockSpec((Kc, Cp), lambda i: (0, 0)),
                pl.BlockSpec((1, Cp), lambda i: (0, 0)),
            ],
            out_specs=pl.BlockSpec((tm, Cp), lambda i: (i, 0)),
        ),
        compiler_params=pltpu.CompilerParams(
            dimension_semantics=("parallel",)),
    )(x_cols, w_mat, b_vec)
    return out[:M]


# ----------------------------------------------------------------------------
# conv3d (channels-last) — im2col glue + one fused matmul kernel
# ----------------------------------------------------------------------------
def conv3d_cl(x, layer):
    """x: (B,T,H,W,Cin) -> (B,To,Ho,Wo,Cout) in layer['out_dtype']."""
    B, T, H, W, Cin = x.shape
    kT, kH, kW = layer["kernel"]
    st, sh, sw = layer["stride"]
    dt, dh, dw = layer["dilation"]
    pt, ph, pw = layer["pad"]
    Cout = layer["cout"]
    To = (T + 2 * pt - dt * (kT - 1) - 1) // st + 1
    Ho = (H + 2 * ph - dh * (kH - 1) - 1) // sh + 1
    Wo = (W + 2 * pw - dw * (kW - 1) - 1) // sw + 1
    xp = jnp.pad(x, ((0, 0), (pt, pt), (ph, ph), (pw, pw), (0, 0)))
    xp = xp.astype(jnp.bfloat16)
    taps = []
    for it in range(kT):
        for ih in range(kH):
            for iw in range(kW):
                taps.append(xp[:,
                               it * dt: it * dt + (To - 1) * st + 1: st,
                               ih * dh: ih * dh + (Ho - 1) * sh + 1: sh,
                               iw * dw: iw * dw + (Wo - 1) * sw + 1: sw, :])
    x_cols = jnp.concatenate(taps, axis=-1).reshape(
        B * To * Ho * Wo, kT * kH * kW * Cin)
    out = matmul_bias_act(x_cols, layer["w_mat"], layer["b_vec"],
                          act=layer["act"], out_dtype=layer["out_dtype"])
    return out[:, :Cout].reshape(B, To, Ho, Wo, Cout)


def conv_transpose3d_cl(x, layer):
    """ConvTranspose3d = zero-upsample + pad + flipped-kernel conv (same kernel)."""
    B, T, H, W, Cin = x.shape
    st, sh, sw = layer["t_stride"]
    pt, ph, pw = layer["t_pad"]
    ot, oh, ow = layer["t_out_pad"]
    kT, kH, kW = layer["kernel"]
    Tu, Hu, Wu = (T - 1) * st + 1, (H - 1) * sh + 1, (W - 1) * sw + 1
    xu = jnp.zeros((B, Tu, Hu, Wu, Cin), x.dtype)
    xu = xu.at[:, ::st, ::sh, ::sw, :].set(x)
    xu = jnp.pad(xu, ((0, 0),
                      (kT - 1 - pt, kT - 1 - pt + ot),
                      (kH - 1 - ph, kH - 1 - ph + oh),
                      (kW - 1 - pw, kW - 1 - pw + ow),
                      (0, 0)))
    return conv3d_cl(xu, layer)


# ----------------------------------------------------------------------------
# avg_pool3d (1,2,2) — lane-dense 4-way elementwise mean
# ----------------------------------------------------------------------------
def _avg4_kernel(a_ref, b_ref, c_ref, d_ref, o_ref):
    s = (a_ref[...].astype(jnp.float32) + b_ref[...].astype(jnp.float32) +
         c_ref[...].astype(jnp.float32) + d_ref[...].astype(jnp.float32))
    o_ref[...] = (0.25 * s).astype(o_ref.dtype)


def avg_pool_hw2_cl(x):
    """x: (B,T,H,W,C) -> (B,T,H//2,W//2,C), pooling (1,2,2)."""
    B, T, H, W, C = x.shape
    Ho, Wo = H // 2, W // 2
    xc = x[:, :, :2 * Ho, :2 * Wo, :]
    slabs = [xc[:, :, i::2, j::2, :] for i in (0, 1) for j in (0, 1)]
    N = B * T * Ho * Wo * C
    rows = -(-N // _LANE)
    rows_p, tr = _pick_tile_m(rows)
    Np = rows_p * _LANE
    flat = [jnp.pad(s.reshape(-1), (0, Np - N)).reshape(rows_p, _LANE)
            for s in slabs]
    out = pl.pallas_call(
        _avg4_kernel,
        out_shape=jax.ShapeDtypeStruct((rows_p, _LANE), x.dtype),
        grid_spec=pltpu.PrefetchScalarGridSpec(
            num_scalar_prefetch=0,
            grid=(rows_p // tr,),
            in_specs=[pl.BlockSpec((tr, _LANE), lambda i: (i, 0))] * 4,
            out_specs=pl.BlockSpec((tr, _LANE), lambda i: (i, 0)),
        ),
        compiler_params=pltpu.CompilerParams(
            dimension_semantics=("parallel",)),
    )(*flat)
    return out.reshape(-1)[:N].reshape(B, T, Ho, Wo, C)


# ----------------------------------------------------------------------------
# fused ConvGRU kernel: whole time recurrence in one pallas_call,
# hidden state resident in VMEM scratch across grid steps.
# ----------------------------------------------------------------------------
def _make_gru_kernel(H, W, Wp, Hc):
    HWp = H * Wp

    def kernel(xg_ref, wh_ref, bh_ref, o_ref, hbuf_ref):
        t = pl.program_id(1)

        @pl.when(t == 0)
        def _():
            hbuf_ref[...] = jnp.zeros_like(hbuf_ref)

        xg = xg_ref[...]                                   # (HWp, 3*Hc)
        hg = jnp.broadcast_to(bh_ref[...], (HWp, 3 * Hc))
        # hidden->hidden 3x3 conv: each tap is ONE contiguous slab of the
        # row-major flattened zero-padded hidden buffer (junk columns are
        # masked to zero at writeback so the implicit zero padding survives).
        for ih in range(3):
            for iw in range(3):
                off = ih * Wp + iw
                hg = hg + jnp.dot(hbuf_ref[off:off + HWp, :],
                                  wh_ref[ih * 3 + iw],
                                  preferred_element_type=jnp.float32)
        h_prev = hbuf_ref[Wp + 1:Wp + 1 + HWp, :]
        r = jax.nn.sigmoid(xg[:, :Hc] + hg[:, :Hc])
        z = jax.nn.sigmoid(xg[:, Hc:2 * Hc] + hg[:, Hc:2 * Hc])
        n = jnp.tanh(xg[:, 2 * Hc:] + r * hg[:, 2 * Hc:])
        h_new = (1.0 - z) * n + z * h_prev
        o_ref[...] = h_new.astype(o_ref.dtype)
        col = jax.lax.broadcasted_iota(jnp.int32, (HWp, 1), 0) % Wp
        hbuf_ref[Wp + 1:Wp + 1 + HWp, :] = jnp.where(col < W, h_new, 0.0)

    return kernel


def conv_gru_cl(x, lp):
    """x: (B,T,H,W,Cin) -> (B,T,H,W,Hc); recurrence fully inside one kernel."""
    B, T, H, W, _ = x.shape
    Hc = lp["hidden"]

    # input-to-hidden conv over all timesteps at once (kT=1 conv == per-t 2D)
    xg = conv3d_cl(x, lp["x_conv"])                        # (B,T,H,W,3Hc) f32

    Wp = _round_up(W + 3, 8) - 1                           # (Wp+1) % 8 == 0
    HWp = H * Wp
    xg = jnp.pad(xg, ((0, 0), (0, 0), (0, 0), (0, Wp - W), (0, 0)))
    xg = xg.reshape(B, T, HWp, 3 * Hc)
    wh = lp["wh"]                                          # (9, Hc, 3Hc) f32
    bh = lp["bh"]                                          # (1, 3Hc) f32
    PBUF = _round_up(2 * Wp + 2 + HWp, 8)

    out = pl.pallas_call(
        _make_gru_kernel(H, W, Wp, Hc),
        out_shape=jax.ShapeDtypeStruct((B, T, HWp, Hc), jnp.float32),
        grid_spec=pltpu.PrefetchScalarGridSpec(
            num_scalar_prefetch=0,
            grid=(B, T),
            in_specs=[
                pl.BlockSpec((None, None, HWp, 3 * Hc),
                             lambda b, t: (b, t, 0, 0)),
                pl.BlockSpec((9, Hc, 3 * Hc), lambda b, t: (0, 0, 0)),
                pl.BlockSpec((1, 3 * Hc), lambda b, t: (0, 0)),
            ],
            out_specs=pl.BlockSpec((None, None, HWp, Hc),
                                   lambda b, t: (b, t, 0, 0)),
            scratch_shapes=[pltpu.VMEM((PBUF, Hc), jnp.float32)],
        ),
        compiler_params=pltpu.CompilerParams(
            dimension_semantics=("parallel", "arbitrary")),
    )(xg, wh, bh)
    return out.reshape(B, T, H, Wp, Hc)[:, :, :, :W, :]


# ----------------------------------------------------------------------------
# parameter building: fold BN + groups + tap axis into (K*Cin, 128) bf16 mats
# ----------------------------------------------------------------------------
# (in, out, kernel, stride, dilation, groups)
GRP_CONV_PARAMS = [(4, 8, (1, 3, 3), (1, 1, 1), (1, 2, 2), 2)]
# (in, out, kernel, stride)
CONV_PARAMS = [(8, 8, (3, 3, 3), (1, 1, 1))]
# (in, hidden, kernel)  -- ConvGRUCell
CRNN_CELL_PARAMS = [(8, 8, (3, 3))]
# (in, out, kernel, stride)  -- ConvTranspose3d
TRANS_PARAMS = [(8, 4, (1, 3, 3), (1, 2, 2))]
# (in, out, kernel, stride)
POST_CONV_PARAMS = [(4, 1, (1, 3, 3), (1, 1, 1))]


def _fold_conv_weights(w_cl, bias, scale, shift, groups=1):
    """w_cl: (kT,kH,kW,Cin/groups,Cout) -> (K*Cin, Cp) bf16, (1, Cp) f32."""
    kT, kH, kW, Cin_g, Cout = w_cl.shape
    Cin = Cin_g * groups
    Cout_g = Cout // groups
    if groups > 1:
        w_full = jnp.zeros((kT, kH, kW, Cin, Cout), w_cl.dtype)
        for g in range(groups):
            w_full = w_full.at[:, :, :,
                               g * Cin_g:(g + 1) * Cin_g,
                               g * Cout_g:(g + 1) * Cout_g].set(
                w_cl[..., g * Cout_g:(g + 1) * Cout_g])
        w_cl = w_full
    K = kT * kH * kW
    w_mat = w_cl.reshape(K * Cin, Cout) * scale.reshape(1, Cout)
    b_vec = (bias * scale + shift).reshape(1, Cout)
    Cp = _round_up(Cout, _LANE)
    w_mat = jnp.pad(w_mat, ((0, 0), (0, Cp - Cout))).astype(jnp.bfloat16)
    b_vec = jnp.pad(b_vec, ((0, 0), (0, Cp - Cout))).astype(jnp.float32)
    return w_mat, b_vec


def build_params(key):
    keys = iter(jax.random.split(key, 128))

    def nrm(shape, s=0.1):
        return s * jax.random.normal(next(keys), shape, dtype=jnp.float32)

    def bn(c):
        gamma = 1.0 + nrm((c,))
        beta = nrm((c,))
        mean = nrm((c,))
        var = 1.0 + jnp.abs(nrm((c,)))
        scale = gamma / jnp.sqrt(var + _BN_EPS)
        shift = beta - mean * scale
        return scale, shift

    P = {"convs": [], "crnn": [], "trans": [], "post": []}

    for (cin, cout, k, stride, dil, groups) in GRP_CONV_PARAMS:
        w_pt = nrm((cout, cin // groups) + k)                # PyTorch layout
        w_cl = jnp.transpose(w_pt, (2, 3, 4, 1, 0))
        scale, shift = bn(cout)
        w_mat, b_vec = _fold_conv_weights(w_cl, nrm((cout,)), scale, shift,
                                          groups)
        pad = ((k[0] * dil[0] - 1) // 2,
               (k[1] * dil[1] - 1) // 2,
               (k[2] * dil[2] - 1) // 2)
        P["convs"].append(dict(w_mat=w_mat, b_vec=b_vec, kernel=k,
                               stride=stride, dilation=dil, pad=pad,
                               cin=cin, cout=cout, act="tanh",
                               out_dtype=jnp.bfloat16))

    for (cin, cout, k, stride) in CONV_PARAMS:
        w_pt = nrm((cout, cin) + k)
        w_cl = jnp.transpose(w_pt, (2, 3, 4, 1, 0))
        scale, shift = bn(cout)
        w_mat, b_vec = _fold_conv_weights(w_cl, nrm((cout,)), scale, shift)
        pad = (k[0] // 2, k[1] // 2, k[2] // 2)
        P["convs"].append(dict(w_mat=w_mat, b_vec=b_vec, kernel=k,
                               stride=stride, dilation=(1, 1, 1), pad=pad,
                               cin=cin, cout=cout, act="tanh",
                               out_dtype=jnp.bfloat16))

    for (cin, hid, k) in CRNN_CELL_PARAMS:
        assert k == (3, 3), "fused GRU kernel assumes a 3x3 hidden conv"
        wx_pt = nrm((3 * hid, cin, 1) + k)
        wh_pt = nrm((3 * hid, hid, 1) + k)
        wx_cl = jnp.transpose(wx_pt, (2, 3, 4, 1, 0))        # (1,kH,kW,Cin,3H)
        wh_cl = jnp.transpose(wh_pt, (2, 3, 4, 1, 0))        # (1,kH,kW,Hc,3H)
        ones = jnp.ones((3 * hid,), jnp.float32)
        zeros = jnp.zeros((3 * hid,), jnp.float32)
        wx_mat, bx_vec = _fold_conv_weights(wx_cl, nrm((3 * hid,)), ones, zeros)
        x_conv = dict(w_mat=wx_mat, b_vec=bx_vec, kernel=(1, k[0], k[1]),
                      stride=(1, 1, 1), dilation=(1, 1, 1),
                      pad=(0, k[0] // 2, k[1] // 2),
                      cin=cin, cout=3 * hid, act="none",
                      out_dtype=jnp.float32)
        P["crnn"].append(dict(
            x_conv=x_conv,
            wh=wh_cl.reshape(k[0] * k[1], hid, 3 * hid).astype(jnp.float32),
            bh=nrm((3 * hid,)).reshape(1, 3 * hid).astype(jnp.float32),
            hidden=hid))

    for (cin, cout, k, stride) in TRANS_PARAMS:
        w_pt = nrm((cin, cout) + k)                          # ConvTranspose layout
        scale, shift = bn(cout)
        # conv-transpose == conv with spatially flipped kernel on upsampled x
        w_flip = w_pt[:, :, ::-1, ::-1, ::-1]
        w_cl = jnp.transpose(w_flip, (2, 3, 4, 0, 1))        # (kT,kH,kW,Cin,Cout)
        w_mat, b_vec = _fold_conv_weights(w_cl, nrm((cout,)), scale, shift)
        pad = (k[0] // 2, k[1] // 2, k[2] // 2)
        P["trans"].append(dict(w_mat=w_mat, b_vec=b_vec, kernel=k,
                               stride=(1, 1, 1), dilation=(1, 1, 1),
                               pad=(0, 0, 0), cin=cin, cout=cout, act="tanh",
                               out_dtype=jnp.bfloat16,
                               t_stride=stride, t_pad=pad, t_out_pad=pad))

    for (cin, cout, k, stride) in POST_CONV_PARAMS:
        w_pt = nrm((cout, cin) + k)
        w_cl = jnp.transpose(w_pt, (2, 3, 4, 1, 0))
        scale, shift = bn(cout)
        w_mat, b_vec = _fold_conv_weights(w_cl, nrm((cout,)), scale, shift)
        pad = (k[0] // 2, k[1] // 2, k[2] // 2)
        P["post"].append(dict(w_mat=w_mat, b_vec=b_vec, kernel=k,
                              stride=stride, dilation=(1, 1, 1), pad=pad,
                              cin=cin, cout=cout, act="tanh",
                              out_dtype=jnp.float32))
    return P


# ----------------------------------------------------------------------------
# forward pass (mirrors RetinaDecoder.forward)
# ----------------------------------------------------------------------------
def retina_decoder_forward(x_tbchw, params):
    # torch: X.permute(1,2,0,3,4) -> NCDHW; here: (T,B,C,H,W) -> (B,T,H,W,C)
    x = jnp.transpose(x_tbchw, (1, 0, 3, 4, 2)).astype(jnp.float32)

    x = avg_pool_hw2_cl(x)                                   # avg_pool3d (1,2,2)

    for lp in params["convs"]:                               # grp convs + convs
        x = conv3d_cl(x, lp)

    x = avg_pool_hw2_cl(x)                                   # avg_pool3d (1,2,2)

    for lp in params["crnn"]:                                # ConvGRU stack
        x = conv_gru_cl(x, lp)

    for lp in params["trans"]:                               # ConvTranspose3d
        x = conv_transpose3d_cl(x, lp)

    for lp in params["post"]:                                # post convs
        x = conv3d_cl(x, lp)

    # final X.permute(2,0,1,3,4): (B,T,H,W,C) -> (T,B,C,H,W)
    return jnp.transpose(x, (1, 0, 4, 2, 3)).astype(jnp.float32)


# ----------------------------------------------------------------------------
if __name__ == "__main__":
    key = jax.random.PRNGKey(0)
    pkey, xkey = jax.random.split(key)
    params = build_params(pkey)

    # input: (T, B, C, H, W)
    X = jax.random.normal(xkey, (4, 2, 4, 16, 16), dtype=jnp.float32)

    fwd = jax.jit(lambda inp: retina_decoder_forward(inp, params))
    out = jax.block_until_ready(fwd(X))

    assert out.shape == (4, 2, 1, 8, 8), out.shape
    assert bool(jnp.all(jnp.isfinite(out)))
    print("KERNEL_OK")
</pallas_src>

<mosaic_0001>
module attributes {stable_mosaic.version = 11 : i64} {
  func.func @_avg4_kernel(%arg0: i32, %arg1: memref<16x128xf32, #tpu.memory_space<vmem>>, %arg2: memref<16x128xf32, #tpu.memory_space<vmem>>, %arg3: memref<16x128xf32, #tpu.memory_space<vmem>>, %arg4: memref<16x128xf32, #tpu.memory_space<vmem>>, %arg5: memref<16x128xf32, #tpu.memory_space<vmem>>) attributes {dimension_semantics = [#tpu.dimension_semantics<parallel>], iteration_bounds = array<i64: 1>, scalar_prefetch = 0 : i64, scratch_operands = 0 : i64, tpu.core_type = #tpu.core_type<tc>, window_params = [{transform_indices = @transform_0, window_bounds = array<i64: 16, 128>}, {transform_indices = @transform_1, window_bounds = array<i64: 16, 128>}, {transform_indices = @transform_2, window_bounds = array<i64: 16, 128>}, {transform_indices = @transform_3, window_bounds = array<i64: 16, 128>}, {transform_indices = @transform_4, window_bounds = array<i64: 16, 128>}]} {
    %c0 = arith.constant 0 : index
    %c0_0 = arith.constant 0 : index
    %0 = vector.load %arg1[%c0, %c0_0] : memref<16x128xf32, #tpu.memory_space<vmem>>, vector<16x128xf32>
    %c0_1 = arith.constant 0 : index
    %c0_2 = arith.constant 0 : index
    %1 = vector.load %arg2[%c0_1, %c0_2] : memref<16x128xf32, #tpu.memory_space<vmem>>, vector<16x128xf32>
    %2 = arith.addf %0, %1 : vector<16x128xf32>
    %c0_3 = arith.constant 0 : index
    %c0_4 = arith.constant 0 : index
    %3 = vector.load %arg3[%c0_3, %c0_4] : memref<16x128xf32, #tpu.memory_space<vmem>>, vector<16x128xf32>
    %4 = arith.addf %2, %3 : vector<16x128xf32>
    %c0_5 = arith.constant 0 : index
    %c0_6 = arith.constant 0 : index
    %5 = vector.load %arg4[%c0_5, %c0_6] : memref<16x128xf32, #tpu.memory_space<vmem>>, vector<16x128xf32>
    %6 = arith.addf %4, %5 : vector<16x128xf32>
    %cst = arith.constant 2.500000e-01 : f32
    %7 = vector.broadcast %cst : f32 to vector<16x128xf32>
    %8 = arith.mulf %7, %6 : vector<16x128xf32>
    %c0_7 = arith.constant 0 : index
    %c0_8 = arith.constant 0 : index
    %9 = vector.load %arg5[%c0_7, %c0_8] : memref<16x128xf32, #tpu.memory_space<vmem>>, vector<16x128xf32>
    tpu.vector_store %arg5[%c0_7, %c0_8], %8 {strides = array<i32>} : memref<16x128xf32, #tpu.memory_space<vmem>>, vector<16x128xf32>,
    return
  }
  func.func @transform_0(%arg0: i32) -> (i32, i32) {
    %c0_i32 = arith.constant 0 : i32
    %c0_i32_0 = arith.constant 0 : i32
    return %arg0, %c0_i32 : i32, i32
  }
  func.func @transform_1(%arg0: i32) -> (i32, i32) {
    %c0_i32 = arith.constant 0 : i32
    %c0_i32_0 = arith.constant 0 : i32
    return %arg0, %c0_i32 : i32, i32
  }
  func.func @transform_2(%arg0: i32) -> (i32, i32) {
    %c0_i32 = arith.constant 0 : i32
    %c0_i32_0 = arith.constant 0 : i32
    return %arg0, %c0_i32 : i32, i32
  }
  func.func @transform_3(%arg0: i32) -> (i32, i32) {
    %c0_i32 = arith.constant 0 : i32
    %c0_i32_0 = arith.constant 0 : i32
    return %arg0, %c0_i32 : i32, i32
  }
  func.func @transform_4(%arg0: i32) -> (i32, i32) {
    %c0_i32 = arith.constant 0 : i32
    %c0_i32_0 = arith.constant 0 : i32
    return %arg0, %c0_i32 : i32, i32
  }
}

module attributes {stable_mosaic.version = 11 : i64} {
  func.func @_matmul_bias_act_kernel(%arg0: i32, %arg1: memref<256x36xbf16, #tpu.memory_space<vmem>>, %arg2: memref<36x128xbf16, #tpu.memory_space<vmem>>, %arg3: memref<1x128xf32, #tpu.memory_space<vmem>>, %arg4: memref<256x128xbf16, #tpu.memory_space<vmem>>) attributes {dimension_semantics = [#tpu.dimension_semantics<parallel>], iteration_bounds = array<i64: 2>, scalar_prefetch = 0 : i64, scratch_operands = 0 : i64, tpu.core_type = #tpu.core_type<tc>, window_params = [{transform_indices = @transform_0, window_bounds = array<i64: 256, 36>}, {pipeline_mode = #tpu.pipeline_mode<synchronous>, transform_indices = @transform_1, window_bounds = array<i64: 36, 128>}, {pipeline_mode = #tpu.pipeline_mode<synchronous>, transform_indices = @transform_2, window_bounds = array<i64: 1, 128>}, {transform_indices = @transform_3, window_bounds = array<i64: 256, 128>}]} {
    %c0 = arith.constant 0 : index
    %c0_0 = arith.constant 0 : index
    %0 = vector.load %arg1[%c0, %c0_0] : memref<256x36xbf16, #tpu.memory_space<vmem>>, vector<256x36xbf16>
    %c0_1 = arith.constant 0 : index
    %c0_2 = arith.constant 0 : index
    %1 = vector.load %arg2[%c0_1, %c0_2] : memref<36x128xbf16, #tpu.memory_space<vmem>>, vector<36x128xbf16>
    %cst = arith.constant dense<0.000000e+00> : vector<256x128xf32>
    %2 = tpu.matmul %0, %1, %cst {dimension_numbers = #tpu.dot_dimension_numbers<[1], [0], [0], [1], [0, 0, 1, 1], [], []>} : vector<256x36xbf16>, vector<36x128xbf16>, vector<256x128xf32> -> vector<256x128xf32>
    %c0_3 = arith.constant 0 : index
    %c0_4 = arith.constant 0 : index
    %3 = vector.load %arg3[%c0_3, %c0_4] : memref<1x128xf32, #tpu.memory_space<vmem>>, vector<1x128xf32>
    %4 = vector.broadcast %3 : vector<1x128xf32> to vector<256x128xf32>
    %5 = arith.addf %2, %4 : vector<256x128xf32>
    %6 = math.tanh %5 : vector<256x128xf32>
    %7 = arith.truncf %6 : vector<256x128xf32> to vector<256x128xbf16>
    %c0_5 = arith.constant 0 : index
    %c0_6 = arith.constant 0 : index
    %8 = vector.load %arg4[%c0_5, %c0_6] : memref<256x128xbf16, #tpu.memory_space<vmem>>, vector<256x128xbf16>
    tpu.vector_store %arg4[%c0_5, %c0_6], %7 {strides = array<i32>} : memref<256x128xbf16, #tpu.memory_space<vmem>>, vector<256x128xbf16>,
    return
  }
  func.func @transform_0(%arg0: i32) -> (i32, i32) {
    %c0_i32 = arith.constant 0 : i32
    %c0_i32_0 = arith.constant 0 : i32
    return %arg0, %c0_i32 : i32, i32
  }
  func.func @transform_1(%arg0: i32) -> (i32, i32) {
    %c0_i32 = arith.constant 0 : i32
    %c0_i32_0 = arith.constant 0 : i32
    %c0_i32_1 = arith.constant 0 : i32
    return %c0_i32, %c0_i32_0 : i32, i32
  }
  func.func @transform_2(%arg0: i32) -> (i32, i32) {
    %c0_i32 = arith.constant 0 : i32
    %c0_i32_0 = arith.constant 0 : i32
    %c0_i32_1 = arith.constant 0 : i32
    return %c0_i32, %c0_i32_0 : i32, i32
  }
  func.func @transform_3(%arg0: i32) -> (i32, i32) {
    %c0_i32 = arith.constant 0 : i32
    %c0_i32_0 = arith.constant 0 : i32
    return %arg0, %c0_i32 : i32, i32
  }
}

module attributes {stable_mosaic.version = 11 : i64} {
  func.func @_matmul_bias_act_kernel(%arg0: i32, %arg1: memref<256x216xbf16, #tpu.memory_space<vmem>>, %arg2: memref<216x128xbf16, #tpu.memory_space<vmem>>, %arg3: memref<1x128xf32, #tpu.memory_space<vmem>>, %arg4: memref<256x128xbf16, #tpu.memory_space<vmem>>) attributes {dimension_semantics = [#tpu.dimension_semantics<parallel>], iteration_bounds = array<i64: 2>, scalar_prefetch = 0 : i64, scratch_operands = 0 : i64, tpu.core_type = #tpu.core_type<tc>, window_params = [{transform_indices = @transform_0, window_bounds = array<i64: 256, 216>}, {pipeline_mode = #tpu.pipeline_mode<synchronous>, transform_indices = @transform_1, window_bounds = array<i64: 216, 128>}, {pipeline_mode = #tpu.pipeline_mode<synchronous>, transform_indices = @transform_2, window_bounds = array<i64: 1, 128>}, {transform_indices = @transform_3, window_bounds = array<i64: 256, 128>}]} {
    %c0 = arith.constant 0 : index
    %c0_0 = arith.constant 0 : index
    %0 = vector.load %arg1[%c0, %c0_0] : memref<256x216xbf16, #tpu.memory_space<vmem>>, vector<256x216xbf16>
    %c0_1 = arith.constant 0 : index
    %c0_2 = arith.constant 0 : index
    %1 = vector.load %arg2[%c0_1, %c0_2] : memref<216x128xbf16, #tpu.memory_space<vmem>>, vector<216x128xbf16>
    %cst = arith.constant dense<0.000000e+00> : vector<256x128xf32>
    %2 = tpu.matmul %0, %1, %cst {dimension_numbers = #tpu.dot_dimension_numbers<[1], [0], [0], [1], [0, 0, 1, 1], [], []>} : vector<256x216xbf16>, vector<216x128xbf16>, vector<256x128xf32> -> vector<256x128xf32>
    %c0_3 = arith.constant 0 : index
    %c0_4 = arith.constant 0 : index
    %3 = vector.load %arg3[%c0_3, %c0_4] : memref<1x128xf32, #tpu.memory_space<vmem>>, vector<1x128xf32>
    %4 = vector.broadcast %3 : vector<1x128xf32> to vector<256x128xf32>
    %5 = arith.addf %2, %4 : vector<256x128xf32>
    %6 = math.tanh %5 : vector<256x128xf32>
    %7 = arith.truncf %6 : vector<256x128xf32> to vector<256x128xbf16>
    %c0_5 = arith.constant 0 : index
    %c0_6 = arith.constant 0 : index
    %8 = vector.load %arg4[%c0_5, %c0_6] : memref<256x128xbf16, #tpu.memory_space<vmem>>, vector<256x128xbf16>
    tpu.vector_store %arg4[%c0_5, %c0_6], %7 {strides = array<i32>} : memref<256x128xbf16, #tpu.memory_space<vmem>>, vector<256x128xbf16>,
    return
  }
  func.func @transform_0(%arg0: i32) -> (i32, i32) {
    %c0_i32 = arith.constant 0 : i32
    %c0_i32_0 = arith.constant 0 : i32
    return %arg0, %c0_i32 : i32, i32
  }
  func.func @transform_1(%arg0: i32) -> (i32, i32) {
    %c0_i32 = arith.constant 0 : i32
    %c0_i32_0 = arith.constant 0 : i32
    %c0_i32_1 = arith.constant 0 : i32
    return %c0_i32, %c0_i32_0 : i32, i32
  }
  func.func @transform_2(%arg0: i32) -> (i32, i32) {
    %c0_i32 = arith.constant 0 : i32
    %c0_i32_0 = arith.constant 0 : i32
    %c0_i32_1 = arith.constant 0 : i32
    return %c0_i32, %c0_i32_0 : i32, i32
  }
  func.func @transform_3(%arg0: i32) -> (i32, i32) {
    %c0_i32 = arith.constant 0 : i32
    %c0_i32_0 = arith.constant 0 : i32
    return %arg0, %c0_i32 : i32, i32
  }
}

module attributes {stable_mosaic.version = 11 : i64} {
  func.func @_avg4_kernel(%arg0: i32, %arg1: memref<16x128xbf16, #tpu.memory_space<vmem>>, %arg2: memref<16x128xbf16, #tpu.memory_space<vmem>>, %arg3: memref<16x128xbf16, #tpu.memory_space<vmem>>, %arg4: memref<16x128xbf16, #tpu.memory_space<vmem>>, %arg5: memref<16x128xbf16, #tpu.memory_space<vmem>>) attributes {dimension_semantics = [#tpu.dimension_semantics<parallel>], iteration_bounds = array<i64: 1>, scalar_prefetch = 0 : i64, scratch_operands = 0 : i64, tpu.core_type = #tpu.core_type<tc>, window_params = [{transform_indices = @transform_0, window_bounds = array<i64: 16, 128>}, {transform_indices = @transform_1, window_bounds = array<i64: 16, 128>}, {transform_indices = @transform_2, window_bounds = array<i64: 16, 128>}, {transform_indices = @transform_3, window_bounds = array<i64: 16, 128>}, {transform_indices = @transform_4, window_bounds = array<i64: 16, 128>}]} {
    %c0 = arith.constant 0 : index
    %c0_0 = arith.constant 0 : index
    %0 = vector.load %arg1[%c0, %c0_0] : memref<16x128xbf16, #tpu.memory_space<vmem>>, vector<16x128xbf16>
    %1 = arith.extf %0 : vector<16x128xbf16> to vector<16x128xf32>
    %c0_1 = arith.constant 0 : index
    %c0_2 = arith.constant 0 : index
    %2 = vector.load %arg2[%c0_1, %c0_2] : memref<16x128xbf16, #tpu.memory_space<vmem>>, vector<16x128xbf16>
    %3 = arith.extf %2 : vector<16x128xbf16> to vector<16x128xf32>
    %4 = arith.addf %1, %3 : vector<16x128xf32>
    %c0_3 = arith.constant 0 : index
    %c0_4 = arith.constant 0 : index
    %5 = vector.load %arg3[%c0_3, %c0_4] : memref<16x128xbf16, #tpu.memory_space<vmem>>, vector<16x128xbf16>
    %6 = arith.extf %5 : vector<16x128xbf16> to vector<16x128xf32>
    %7 = arith.addf %4, %6 : vector<16x128xf32>
    %c0_5 = arith.constant 0 : index
    %c0_6 = arith.constant 0 : index
    %8 = vector.load %arg4[%c0_5, %c0_6] : memref<16x128xbf16, #tpu.memory_space<vmem>>, vector<16x128xbf16>
    %9 = arith.extf %8 : vector<16x128xbf16> to vector<16x128xf32>
    %10 = arith.addf %7, %9 : vector<16x128xf32>
    %cst = arith.constant 2.500000e-01 : f32
    %11 = vector.broadcast %cst : f32 to vector<16x128xf32>
    %12 = arith.mulf %11, %10 : vector<16x128xf32>
    %13 = arith.truncf %12 : vector<16x128xf32> to vector<16x128xbf16>
    %c0_7 = arith.constant 0 : index
    %c0_8 = arith.constant 0 : index
    %14 = vector.load %arg5[%c0_7, %c0_8] : memref<16x128xbf16, #tpu.memory_space<vmem>>, vector<16x128xbf16>
    tpu.vector_store %arg5[%c0_7, %c0_8], %13 {strides = array<i32>} : memref<16x128xbf16, #tpu.memory_space<vmem>>, vector<16x128xbf16>,
    return
  }
  func.func @transform_0(%arg0: i32) -> (i32, i32) {
    %c0_i32 = arith.constant 0 : i32
    %c0_i32_0 = arith.constant 0 : i32
    return %arg0, %c0_i32 : i32, i32
  }
  func.func @transform_1(%arg0: i32) -> (i32, i32) {
    %c0_i32 = arith.constant 0 : i32
    %c0_i32_0 = arith.constant 0 : i32
    return %arg0, %c0_i32 : i32, i32
  }
  func.func @transform_2(%arg0: i32) -> (i32, i32) {
    %c0_i32 = arith.constant 0 : i32
    %c0_i32_0 = arith.constant 0 : i32
    return %arg0, %c0_i32 : i32, i32
  }
  func.func @transform_3(%arg0: i32) -> (i32, i32) {
    %c0_i32 = arith.constant 0 : i32
    %c0_i32_0 = arith.constant 0 : i32
    return %arg0, %c0_i32 : i32, i32
  }
  func.func @transform_4(%arg0: i32) -> (i32, i32) {
    %c0_i32 = arith.constant 0 : i32
    %c0_i32_0 = arith.constant 0 : i32
    return %arg0, %c0_i32 : i32, i32
  }
}

module attributes {stable_mosaic.version = 11 : i64} {
  func.func @_matmul_bias_act_kernel(%arg0: i32, %arg1: memref<64x72xbf16, #tpu.memory_space<vmem>>, %arg2: memref<72x128xbf16, #tpu.memory_space<vmem>>, %arg3: memref<1x128xf32, #tpu.memory_space<vmem>>, %arg4: memref<64x128xf32, #tpu.memory_space<vmem>>) attributes {dimension_semantics = [#tpu.dimension_semantics<parallel>], iteration_bounds = array<i64: 2>, scalar_prefetch = 0 : i64, scratch_operands = 0 : i64, tpu.core_type = #tpu.core_type<tc>, window_params = [{transform_indices = @transform_0, window_bounds = array<i64: 64, 72>}, {pipeline_mode = #tpu.pipeline_mode<synchronous>, transform_indices = @transform_1, window_bounds = array<i64: 72, 128>}, {pipeline_mode = #tpu.pipeline_mode<synchronous>, transform_indices = @transform_2, window_bounds = array<i64: 1, 128>}, {transform_indices = @transform_3, window_bounds = array<i64: 64, 128>}]} {
    %c0 = arith.constant 0 : index
    %c0_0 = arith.constant 0 : index
    %0 = vector.load %arg1[%c0, %c0_0] : memref<64x72xbf16, #tpu.memory_space<vmem>>, vector<64x72xbf16>
    %c0_1 = arith.constant 0 : index
    %c0_2 = arith.constant 0 : index
    %1 = vector.load %arg2[%c0_1, %c0_2] : memref<72x128xbf16, #tpu.memory_space<vmem>>, vector<72x128xbf16>
    %cst = arith.constant dense<0.000000e+00> : vector<64x128xf32>
    %2 = tpu.matmul %0, %1, %cst {dimension_numbers = #tpu.dot_dimension_numbers<[1], [0], [0], [1], [0, 0, 1, 1], [], []>} : vector<64x72xbf16>, vector<72x128xbf16>, vector<64x128xf32> -> vector<64x128xf32>
    %c0_3 = arith.constant 0 : index
    %c0_4 = arith.constant 0 : index
    %3 = vector.load %arg3[%c0_3, %c0_4] : memref<1x128xf32, #tpu.memory_space<vmem>>, vector<1x128xf32>
    %4 = vector.broadcast %3 : vector<1x128xf32> to vector<64x128xf32>
    %5 = arith.addf %2, %4 : vector<64x128xf32>
    %c0_5 = arith.constant 0 : index
    %c0_6 = arith.constant 0 : index
    %6 = vector.load %arg4[%c0_5, %c0_6] : memref<64x128xf32, #tpu.memory_space<vmem>>, vector<64x128xf32>
    tpu.vector_store %arg4[%c0_5, %c0_6], %5 {strides = array<i32>} : memref<64x128xf32, #tpu.memory_space<vmem>>, vector<64x128xf32>,
    return
  }
  func.func @transform_0(%arg0: i32) -> (i32, i32) {
    %c0_i32 = arith.constant 0 : i32
    %c0_i32_0 = arith.constant 0 : i32
    return %arg0, %c0_i32 : i32, i32
  }
  func.func @transform_1(%arg0: i32) -> (i32, i32) {
    %c0_i32 = arith.constant 0 : i32
    %c0_i32_0 = arith.constant 0 : i32
    %c0_i32_1 = arith.constant 0 : i32
    return %c0_i32, %c0_i32_0 : i32, i32
  }
  func.func @transform_2(%arg0: i32) -> (i32, i32) {
    %c0_i32 = arith.constant 0 : i32
    %c0_i32_0 = arith.constant 0 : i32
    %c0_i32_1 = arith.constant 0 : i32
    return %c0_i32, %c0_i32_0 : i32, i32
  }
  func.func @transform_3(%arg0: i32) -> (i32, i32) {
    %c0_i32 = arith.constant 0 : i32
    %c0_i32_0 = arith.constant 0 : i32
    return %arg0, %c0_i32 : i32, i32
  }
}

module attributes {stable_mosaic.version = 11 : i64} {
  func.func @kernel(%arg0: i32, %arg1: i32, %arg2: memref<1x1x28x24xf32, #tpu.memory_space<vmem>>, %arg3: memref<9x8x24xf32, #tpu.memory_space<vmem>>, %arg4: memref<1x24xf32, #tpu.memory_space<vmem>>, %arg5: memref<1x1x28x8xf32, #tpu.memory_space<vmem>>, %arg6: memref<48x8xf32, #tpu.memory_space<vmem>>) attributes {dimension_semantics = [#tpu.dimension_semantics<parallel>, #tpu.dimension_semantics<arbitrary>], iteration_bounds = array<i64: 2, 4>, scalar_prefetch = 0 : i64, scratch_operands = 1 : i64, tpu.core_type = #tpu.core_type<tc>, window_params = [{transform_indices = @transform_0, window_bounds = array<i64: 1, 1, 28, 24>}, {pipeline_mode = #tpu.pipeline_mode<synchronous>, transform_indices = @transform_1, window_bounds = array<i64: 9, 8, 24>}, {pipeline_mode = #tpu.pipeline_mode<synchronous>, transform_indices = @transform_2, window_bounds = array<i64: 1, 24>}, {transform_indices = @transform_3, window_bounds = array<i64: 1, 1, 28, 8>}]} {
    %c0_i32 = arith.constant 0 : i32
    %0 = arith.cmpi eq, %arg1, %c0_i32 : i32
    %1 = arith.extui %0 : i1 to i32
    %c0_i32_0 = arith.constant 0 : i32
    %2 = arith.cmpi ne, %1, %c0_i32_0 : i32
    scf.if %2 {
      %cst_63 = arith.constant 0.000000e+00 : f32
      %107 = vector.broadcast %cst_63 : f32 to vector<48x8xf32>
      %c0_64 = arith.constant 0 : index
      %c0_65 = arith.constant 0 : index
      %108 = vector.load %arg6[%c0_64, %c0_65] : memref<48x8xf32, #tpu.memory_space<vmem>>, vector<48x8xf32>
      tpu.vector_store %arg6[%c0_64, %c0_65], %107 {strides = array<i32>} : memref<48x8xf32, #tpu.memory_space<vmem>>, vector<48x8xf32>,
    } else {
    }
    %c0 = arith.constant 0 : index
    %c0_1 = arith.constant 0 : index
    %c0_2 = arith.constant 0 : index
    %c0_3 = arith.constant 0 : index
    %3 = vector.load %arg2[%c0, %c0_1, %c0_2, %c0_3] : memref<1x1x28x24xf32, #tpu.memory_space<vmem>>, vector<1x1x28x24xf32>
    %4 = vector.shape_cast %3 : vector<1x1x28x24xf32> to vector<28x24xf32>
    %c0_4 = arith.constant 0 : index
    %c0_5 = arith.constant 0 : index
    %5 = vector.load %arg4[%c0_4, %c0_5] : memref<1x24xf32, #tpu.memory_space<vmem>>, vector<1x24xf32>
    %6 = vector.shape_cast %5 : vector<1x24xf32> to vector<1x24xf32>
    %7 = vector.broadcast %6 : vector<1x24xf32> to vector<28x24xf32>
    %c0_6 = arith.constant 0 : index
    %c0_7 = arith.constant 0 : index
    %8 = vector.load %arg6[%c0_6, %c0_7] : memref<48x8xf32, #tpu.memory_space<vmem>>, vector<28x8xf32>
    %c0_8 = arith.constant 0 : index
    %c0_9 = arith.constant 0 : index
    %c0_10 = arith.constant 0 : index
    %9 = vector.load %arg3[%c0_8, %c0_9, %c0_10] : memref<9x8x24xf32, #tpu.memory_space<vmem>>, vector<1x8x24xf32>
    %10 = vector.shape_cast %9 : vector<1x8x24xf32> to vector<8x24xf32>
    %cst = arith.constant dense<0.000000e+00> : vector<28x24xf32>
    %11 = tpu.matmul %8, %10, %cst {dimension_numbers = #tpu.dot_dimension_numbers<[1], [0], [0], [1], [0, 0, 1, 1], [], []>} : vector<28x8xf32>, vector<8x24xf32>, vector<28x24xf32> -> vector<28x24xf32>
    %12 = arith.addf %7, %11 : vector<28x24xf32>
    %c1 = arith.constant 1 : index
    %c0_11 = arith.constant 0 : index
    %13 = vector.load %arg6[%c1, %c0_11] : memref<48x8xf32, #tpu.memory_space<vmem>>, vector<28x8xf32>
    %c1_12 = arith.constant 1 : index
    %c0_13 = arith.constant 0 : index
    %c0_14 = arith.constant 0 : index
    %14 = vector.load %arg3[%c1_12, %c0_13, %c0_14] : memref<9x8x24xf32, #tpu.memory_space<vmem>>, vector<1x8x24xf32>
    %15 = vector.shape_cast %14 : vector<1x8x24xf32> to vector<8x24xf32>
    %cst_15 = arith.constant dense<0.000000e+00> : vector<28x24xf32>
    %16 = tpu.matmul %13, %15, %cst_15 {dimension_numbers = #tpu.dot_dimension_numbers<[1], [0], [0], [1], [0, 0, 1, 1], [], []>} : vector<28x8xf32>, vector<8x24xf32>, vector<28x24xf32> -> vector<28x24xf32>
    %17 = arith.addf %12, %16 : vector<28x24xf32>
    %c2 = arith.constant 2 : index
    %c0_16 = arith.constant 0 : index
    %18 = vector.load %arg6[%c2, %c0_16] : memref<48x8xf32, #tpu.memory_space<vmem>>, vector<28x8xf32>
    %c2_17 = arith.constant 2 : index
    %c0_18 = arith.constant 0 : index
    %c0_19 = arith.constant 0 : index
    %19 = vector.load %arg3[%c2_17, %c0_18, %c0_19] : memref<9x8x24xf32, #tpu.memory_space<vmem>>, vector<1x8x24xf32>
    %20 = vector.shape_cast %19 : vector<1x8x24xf32> to vector<8x24xf32>
    %cst_20 = arith.constant dense<0.000000e+00> : vector<28x24xf32>
    %21 = tpu.matmul %18, %20, %cst_20 {dimension_numbers = #tpu.dot_dimension_numbers<[1], [0], [0], [1], [0, 0, 1, 1], [], []>} : vector<28x8xf32>, vector<8x24xf32>, vector<28x24xf32> -> vector<28x24xf32>
    %22 = arith.addf %17, %21 : vector<28x24xf32>
    %c7 = arith.constant 7 : index
    %c0_21 = arith.constant 0 : index
    %23 = vector.load %arg6[%c7, %c0_21] : memref<48x8xf32, #tpu.memory_space<vmem>>, vector<28x8xf32>
    %c3 = arith.constant 3 : index
    %c0_22 = arith.constant 0 : index
    %c0_23 = arith.constant 0 : index
    %24 = vector.load %arg3[%c3, %c0_22, %c0_23] : memref<9x8x24xf32, #tpu.memory_space<vmem>>, vector<1x8x24xf32>
    %25 = vector.shape_cast %24 : vector<1x8x24xf32> to vector<8x24xf32>
    %cst_24 = arith.constant dense<0.000000e+00> : vector<28x24xf32>
    %26 = tpu.matmul %23, %25, %cst_24 {dimension_numbers = #tpu.dot_dimension_numbers<[1], [0], [0], [1], [0, 0, 1, 1], [], []>} : vector<28x8xf32>, vector<8x24xf32>, vector<28x24xf32> -> vector<28x24xf32>
    %27 = arith.addf %22, %26 : vector<28x24xf32>
    %c8 = arith.constant 8 : index
    %c0_25 = arith.constant 0 : index
    %28 = vector.load %arg6[%c8, %c0_25] : memref<48x8xf32, #tpu.memory_space<vmem>>, vector<28x8xf32>
    %c4 = arith.constant 4 : index
    %c0_26 = arith.constant 0 : index
    %c0_27 = arith.constant 0 : index
    %29 = vector.load %arg3[%c4, %c0_26, %c0_27] : memref<9x8x24xf32, #tpu.memory_space<vmem>>, vector<1x8x24xf32>
    %30 = vector.shape_cast %29 : vector<1x8x24xf32> to vector<8x24xf32>
    %cst_28 = arith.constant dense<0.000000e+00> : vector<28x24xf32>
    %31 = tpu.matmul %28, %30, %cst_28 {dimension_numbers = #tpu.dot_dimension_numbers<[1], [0], [0], [1], [0, 0, 1, 1], [], []>} : vector<28x8xf32>, vector<8x24xf32>, vector<28x24xf32> -> vector<28x24xf32>
    %32 = arith.addf %27, %31 : vector<28x24xf32>
    %c9 = arith.constant 9 : index
    %c0_29 = arith.constant 0 : index
    %33 = vector.load %arg6[%c9, %c0_29] : memref<48x8xf32, #tpu.memory_space<vmem>>, vector<28x8xf32>
    %c5 = arith.constant 5 : index
    %c0_30 = arith.constant 0 : index
    %c0_31 = arith.constant 0 : index
    %34 = vector.load %arg3[%c5, %c0_30, %c0_31] : memref<9x8x24xf32, #tpu.memory_space<vmem>>, vector<1x8x24xf32>
    %35 = vector.shape_cast %34 : vector<1x8x24xf32> to vector<8x24xf32>
    %cst_32 = arith.constant dense<0.000000e+00> : vector<28x24xf32>
    %36 = tpu.matmul %33, %35, %cst_32 {dimension_numbers = #tpu.dot_dimension_numbers<[1], [0], [0], [1], [0, 0, 1, 1], [], []>} : vector<28x8xf32>, vector<8x24xf32>, vector<28x24xf32> -> vector<28x24xf32>
    %37 = arith.addf %32, %36 : vector<28x24xf32>
    %c14 = arith.constant 14 : index
    %c0_33 = arith.constant 0 : index
    %38 = vector.load %arg6[%c14, %c0_33] : memref<48x8xf32, #tpu.memory_space<vmem>>, vector<28x8xf32>
    %c6 = arith.constant 6 : index
    %c0_34 = arith.constant 0 : index
    %c0_35 = arith.constant 0 : index
    %39 = vector.load %arg3[%c6, %c0_34, %c0_35] : memref<9x8x24xf32, #tpu.memory_space<vmem>>, vector<1x8x24xf32>
    %40 = vector.shape_cast %39 : vector<1x8x24xf32> to vector<8x24xf32>
    %cst_36 = arith.constant dense<0.000000e+00> : vector<28x24xf32>
    %41 = tpu.matmul %38, %40, %cst_36 {dimension_numbers = #tpu.dot_dimension_numbers<[1], [0], [0], [1], [0, 0, 1, 1], [], []>} : vector<28x8xf32>, vector<8x24xf32>, vector<28x24xf32> -> vector<28x24xf32>
    %42 = arith.addf %37, %41 : vector<28x24xf32>
    %c15 = arith.constant 15 : index
    %c0_37 = arith.constant 0 : index
    %43 = vector.load %arg6[%c15, %c0_37] : memref<48x8xf32, #tpu.memory_space<vmem>>, vector<28x8xf32>
    %c7_38 = arith.constant 7 : index
    %c0_39 = arith.constant 0 : index
    %c0_40 = arith.constant 0 : index
    %44 = vector.load %arg3[%c7_38, %c0_39, %c0_40] : memref<9x8x24xf32, #tpu.memory_space<vmem>>, vector<1x8x24xf32>
    %45 = vector.shape_cast %44 : vector<1x8x24xf32> to vector<8x24xf32>
    %cst_41 = arith.constant dense<0.000000e+00> : vector<28x24xf32>
    %46 = tpu.matmul %43, %45, %cst_41 {dimension_numbers = #tpu.dot_dimension_numbers<[1], [0], [0], [1], [0, 0, 1, 1], [], []>} : vector<28x8xf32>, vector<8x24xf32>, vector<28x24xf32> -> vector<28x24xf32>
    %47 = arith.addf %42, %46 : vector<28x24xf32>
    %c16 = arith.constant 16 : index
    %c0_42 = arith.constant 0 : index
    %48 = vector.load %arg6[%c16, %c0_42] : memref<48x8xf32, #tpu.memory_space<vmem>>, vector<28x8xf32>
    %c8_43 = arith.constant 8 : index
    %c0_44 = arith.constant 0 : index
    %c0_45 = arith.constant 0 : index
    %49 = vector.load %arg3[%c8_43, %c0_44, %c0_45] : memref<9x8x24xf32, #tpu.memory_space<vmem>>, vector<1x8x24xf32>
    %50 = vector.shape_cast %49 : vector<1x8x24xf32> to vector<8x24xf32>
    %cst_46 = arith.constant dense<0.000000e+00> : vector<28x24xf32>
    %51 = tpu.matmul %48, %50, %cst_46 {dimension_numbers = #tpu.dot_dimension_numbers<[1], [0], [0], [1], [0, 0, 1, 1], [], []>} : vector<28x8xf32>, vector<8x24xf32>, vector<28x24xf32> -> vector<28x24xf32>
    %52 = arith.addf %47, %51 : vector<28x24xf32>
    %c8_47 = arith.constant 8 : index
    %c0_48 = arith.constant 0 : index
    %53 = vector.load %arg6[%c8_47, %c0_48] : memref<48x8xf32, #tpu.memory_space<vmem>>, vector<28x8xf32>
    %54 = vector.extract_strided_slice %4 {offsets = [0, 0], sizes = [28, 8], strides = [1, 1]} : vector<28x24xf32> to vector<28x8xf32>
    %55 = vector.extract_strided_slice %52 {offsets = [0, 0], sizes = [28, 8], strides = [1, 1]} : vector<28x24xf32> to vector<28x8xf32>
    %56 = arith.addf %54, %55 : vector<28x8xf32>
    %57 = arith.negf %56 : vector<28x8xf32>
    %58 = math.exp %57 : vector<28x8xf32>
    %cst_49 = arith.constant 1.000000e+00 : f32
    %59 = vector.broadcast %cst_49 : f32 to vector<28x8xf32>
    %60 = arith.addf %59, %58 : vector<28x8xf32>
    %61 = arith.divf %59, %60 : vector<28x8xf32>
    %62 = vector.extract_strided_slice %4 {offsets = [0, 8], sizes = [28, 8], strides = [1, 1]} : vector<28x24xf32> to vector<28x8xf32>
    %63 = vector.extract_strided_slice %52 {offsets = [0, 8], sizes = [28, 8], strides = [1, 1]} : vector<28x24xf32> to vector<28x8xf32>
    %64 = arith.addf %62, %63 : vector<28x8xf32>
    %65 = arith.negf %64 : vector<28x8xf32>
    %66 = math.exp %65 : vector<28x8xf32>
    %cst_50 = arith.constant 1.000000e+00 : f32
    %67 = vector.broadcast %cst_50 : f32 to vector<28x8xf32>
    %68 = arith.addf %67, %66 : vector<28x8xf32>
    %69 = arith.divf %67, %68 : vector<28x8xf32>
    %70 = vector.extract_strided_slice %4 {offsets = [0, 16], sizes = [28, 8], strides = [1, 1]} : vector<28x24xf32> to vector<28x8xf32>
    %71 = vector.extract_strided_slice %52 {offsets = [0, 16], sizes = [28, 8], strides = [1, 1]} : vector<28x24xf32> to vector<28x8xf32>
    %72 = arith.mulf %61, %71 : vector<28x8xf32>
    %73 = arith.addf %70, %72 : vector<28x8xf32>
    %74 = math.tanh %73 : vector<28x8xf32>
    %cst_51 = arith.constant 1.000000e+00 : f32
    %75 = vector.broadcast %cst_51 : f32 to vector<28x8xf32>
    %76 = arith.subf %75, %69 : vector<28x8xf32>
    %77 = arith.mulf %76, %74 : vector<28x8xf32>
    %78 = arith.mulf %69, %53 : vector<28x8xf32>
    %79 = arith.addf %77, %78 : vector<28x8xf32>
    %c0_52 = arith.constant 0 : index
    %c0_53 = arith.constant 0 : index
    %c0_54 = arith.constant 0 : index
    %c0_55 = arith.constant 0 : index
    %80 = vector.load %arg5[%c0_52, %c0_53, %c0_54, %c0_55] : memref<1x1x28x8xf32, #tpu.memory_space<vmem>>, vector<1x1x28x8xf32>
    %81 = vector.shape_cast %80 : vector<1x1x28x8xf32> to vector<28x8xf32>
    %82 = vector.shape_cast %79 : vector<28x8xf32> to vector<1x1x28x8xf32>
    tpu.vector_store %arg5[%c0_52, %c0_53, %c0_54, %c0_55], %82 {strides = array<i32>} : memref<1x1x28x8xf32, #tpu.memory_space<vmem>>, vector<1x1x28x8xf32>,
    %83 = tpu.iota {dimensions = array<i32: 0>} : vector<28x1xi32>
    %c7_i32 = arith.constant 7 : i32
    %c0_i32_56 = arith.constant 0 : i32
    %84 = arith.cmpi eq, %c7_i32, %c0_i32_56 : i32
    %c1_i32 = arith.constant 1 : i32
    %85 = arith.select %84, %c1_i32, %c7_i32 : i32
    %86 = vector.broadcast %85 : i32 to vector<28x1xi32>
    %87 = arith.remsi %83, %86 : vector<28x1xi32>
    %c0_i32_57 = arith.constant 0 : i32
    %88 = vector.broadcast %c0_i32_57 : i32 to vector<28x1xi32>
    %89 = arith.cmpi ne, %87, %88 : vector<28x1xi32>
    %c0_i32_58 = arith.constant 0 : i32
    %90 = vector.broadcast %c0_i32_58 : i32 to vector<28x1xi32>
    %91 = arith.cmpi slt, %87, %90 : vector<28x1xi32>
    %c0_i32_59 = arith.constant 0 : i32
    %92 = arith.cmpi slt, %85, %c0_i32_59 : i32
    %93 = vector.broadcast %92 : i1 to vector<28x1xi1>
    %94 = vector.broadcast %93 : vector<28x1xi1> to vector<28x1xi1>
    %95 = arith.xori %91, %94 : vector<28x1xi1>
    %96 = arith.andi %95, %89 : vector<28x1xi1>
    %97 = vector.broadcast %85 : i32 to vector<28x1xi32>
    %98 = arith.addi %87, %97 : vector<28x1xi32>
    %99 = arith.select %96, %98, %87 : vector<28x1xi1>, vector<28x1xi32>
    %c4_i32 = arith.constant 4 : i32
    %100 = vector.broadcast %c4_i32 : i32 to vector<28x1xi32>
    %101 = arith.cmpi slt, %99, %100 : vector<28x1xi32>
    %cst_60 = arith.constant 0.000000e+00 : f32
    %102 = vector.shape_cast %101 : vector<28x1xi1> to vector<28x1xi1>
    %103 = vector.broadcast %102 : vector<28x1xi1> to vector<28x8xi1>
    %104 = vector.broadcast %cst_60 : f32 to vector<28x8xf32>
    %105 = arith.select %103, %79, %104 : vector<28x8xi1>, vector<28x8xf32>
    %c8_61 = arith.constant 8 : index
    %c0_62 = arith.constant 0 : index
    %106 = vector.load %arg6[%c8_61, %c0_62] : memref<48x8xf32, #tpu.memory_space<vmem>>, vector<28x8xf32>
    tpu.vector_store %arg6[%c8_61, %c0_62], %105 {strides = array<i32>} : memref<48x8xf32, #tpu.memory_space<vmem>>, vector<28x8xf32>,
    return
  }
  func.func @transform_0(%arg0: i32, %arg1: i32) -> (i32, i32, i32, i32) {
    %c0_i32 = arith.constant 0 : i32
    %c0_i32_0 = arith.constant 0 : i32
    %c0_i32_1 = arith.constant 0 : i32
    return %arg0, %arg1, %c0_i32, %c0_i32_0 : i32, i32, i32, i32
  }
  func.func @transform_1(%arg0: i32, %arg1: i32) -> (i32, i32, i32) {
    %c0_i32 = arith.constant 0 : i32
    %c0_i32_0 = arith.constant 0 : i32
    %c0_i32_1 = arith.constant 0 : i32
    %c0_i32_2 = arith.constant 0 : i32
    return %c0_i32, %c0_i32_0, %c0_i32_1 : i32, i32, i32
  }
  func.func @transform_2(%arg0: i32, %arg1: i32) -> (i32, i32) {
    %c0_i32 = arith.constant 0 : i32
    %c0_i32_0 = arith.constant 0 : i32
    %c0_i32_1 = arith.constant 0 : i32
    return %c0_i32, %c0_i32_0 : i32, i32
  }
  func.func @transform_3(%arg0: i32, %arg1: i32) -> (i32, i32, i32, i32) {
    %c0_i32 = arith.constant 0 : i32
    %c0_i32_0 = arith.constant 0 : i32
    %c0_i32_1 = arith.constant 0 : i32
    return %arg0, %arg1, %c0_i32, %c0_i32_0 : i32, i32, i32, i32
  }
}

module attributes {stable_mosaic.version = 11 : i64} {
  func.func @_matmul_bias_act_kernel(%arg0: i32, %arg1: memref<256x72xbf16, #tpu.memory_space<vmem>>, %arg2: memref<72x128xbf16, #tpu.memory_space<vmem>>, %arg3: memref<1x128xf32, #tpu.memory_space<vmem>>, %arg4: memref<256x128xbf16, #tpu.memory_space<vmem>>) attributes {dimension_semantics = [#tpu.dimension_semantics<parallel>], iteration_bounds = array<i64: 2>, scalar_prefetch = 0 : i64, scratch_operands = 0 : i64, tpu.core_type = #tpu.core_type<tc>, window_params = [{transform_indices = @transform_0, window_bounds = array<i64: 256, 72>}, {pipeline_mode = #tpu.pipeline_mode<synchronous>, transform_indices = @transform_1, window_bounds = array<i64: 72, 128>}, {pipeline_mode = #tpu.pipeline_mode<synchronous>, transform_indices = @transform_2, window_bounds = array<i64: 1, 128>}, {transform_indices = @transform_3, window_bounds = array<i64: 256, 128>}]} {
    %c0 = arith.constant 0 : index
    %c0_0 = arith.constant 0 : index
    %0 = vector.load %arg1[%c0, %c0_0] : memref<256x72xbf16, #tpu.memory_space<vmem>>, vector<256x72xbf16>
    %c0_1 = arith.constant 0 : index
    %c0_2 = arith.constant 0 : index
    %1 = vector.load %arg2[%c0_1, %c0_2] : memref<72x128xbf16, #tpu.memory_space<vmem>>, vector<72x128xbf16>
    %cst = arith.constant dense<0.000000e+00> : vector<256x128xf32>
    %2 = tpu.matmul %0, %1, %cst {dimension_numbers = #tpu.dot_dimension_numbers<[1], [0], [0], [1], [0, 0, 1, 1], [], []>} : vector<256x72xbf16>, vector<72x128xbf16>, vector<256x128xf32> -> vector<256x128xf32>
    %c0_3 = arith.constant 0 : index
    %c0_4 = arith.constant 0 : index
    %3 = vector.load %arg3[%c0_3, %c0_4] : memref<1x128xf32, #tpu.memory_space<vmem>>, vector<1x128xf32>
    %4 = vector.broadcast %3 : vector<1x128xf32> to vector<256x128xf32>
    %5 = arith.addf %2, %4 : vector<256x128xf32>
    %6 = math.tanh %5 : vector<256x128xf32>
    %7 = arith.truncf %6 : vector<256x128xf32> to vector<256x128xbf16>
    %c0_5 = arith.constant 0 : index
    %c0_6 = arith.constant 0 : index
    %8 = vector.load %arg4[%c0_5, %c0_6] : memref<256x128xbf16, #tpu.memory_space<vmem>>, vector<256x128xbf16>
    tpu.vector_store %arg4[%c0_5, %c0_6], %7 {strides = array<i32>} : memref<256x128xbf16, #tpu.memory_space<vmem>>, vector<256x128xbf16>,
    return
  }
  func.func @transform_0(%arg0: i32) -> (i32, i32) {
    %c0_i32 = arith.constant 0 : i32
    %c0_i32_0 = arith.constant 0 : i32
    return %arg0, %c0_i32 : i32, i32
  }
  func.func @transform_1(%arg0: i32) -> (i32, i32) {
    %c0_i32 = arith.constant 0 : i32
    %c0_i32_0 = arith.constant 0 : i32
    %c0_i32_1 = arith.constant 0 : i32
    return %c0_i32, %c0_i32_0 : i32, i32
  }
  func.func @transform_2(%arg0: i32) -> (i32, i32) {
    %c0_i32 = arith.constant 0 : i32
    %c0_i32_0 = arith.constant 0 : i32
    %c0_i32_1 = arith.constant 0 : i32
    return %c0_i32, %c0_i32_0 : i32, i32
  }
  func.func @transform_3(%arg0: i32) -> (i32, i32) {
    %c0_i32 = arith.constant 0 : i32
    %c0_i32_0 = arith.constant 0 : i32
    return %arg0, %c0_i32 : i32, i32
  }
}

module attributes {stable_mosaic.version = 11 : i64} {
  func.func @_matmul_bias_act_kernel(%arg0: i32, %arg1: memref<256x36xbf16, #tpu.memory_space<vmem>>, %arg2: memref<36x128xbf16, #tpu.memory_space<vmem>>, %arg3: memref<1x128xf32, #tpu.memory_space<vmem>>, %arg4: memref<256x128xf32, #tpu.memory_space<vmem>>) attributes {dimension_semantics = [#tpu.dimension_semantics<parallel>], iteration_bounds = array<i64: 2>, scalar_prefetch = 0 : i64, scratch_operands = 0 : i64, tpu.core_type = #tpu.core_type<tc>, window_params = [{transform_indices = @transform_0, window_bounds = array<i64: 256, 36>}, {pipeline_mode = #tpu.pipeline_mode<synchronous>, transform_indices = @transform_1, window_bounds = array<i64: 36, 128>}, {pipeline_mode = #tpu.pipeline_mode<synchronous>, transform_indices = @transform_2, window_bounds = array<i64: 1, 128>}, {transform_indices = @transform_3, window_bounds = array<i64: 256, 128>}]} {
    %c0 = arith.constant 0 : index
    %c0_0 = arith.constant 0 : index
    %0 = vector.load %arg1[%c0, %c0_0] : memref<256x36xbf16, #tpu.memory_space<vmem>>, vector<256x36xbf16>
    %c0_1 = arith.constant 0 : index
    %c0_2 = arith.constant 0 : index
    %1 = vector.load %arg2[%c0_1, %c0_2] : memref<36x128xbf16, #tpu.memory_space<vmem>>, vector<36x128xbf16>
    %cst = arith.constant dense<0.000000e+00> : vector<256x128xf32>
    %2 = tpu.matmul %0, %1, %cst {dimension_numbers = #tpu.dot_dimension_numbers<[1], [0], [0], [1], [0, 0, 1, 1], [], []>} : vector<256x36xbf16>, vector<36x128xbf16>, vector<256x128xf32> -> vector<256x128xf32>
    %c0_3 = arith.constant 0 : index
    %c0_4 = arith.constant 0 : index
    %3 = vector.load %arg3[%c0_3, %c0_4] : memref<1x128xf32, #tpu.memory_space<vmem>>, vector<1x128xf32>
    %4 = vector.broadcast %3 : vector<1x128xf32> to vector<256x128xf32>
    %5 = arith.addf %2, %4 : vector<256x128xf32>
    %6 = math.tanh %5 : vector<256x128xf32>
    %c0_5 = arith.constant 0 : index
    %c0_6 = arith.constant 0 : index
    %7 = vector.load %arg4[%c0_5, %c0_6] : memref<256x128xf32, #tpu.memory_space<vmem>>, vector<256x128xf32>
    tpu.vector_store %arg4[%c0_5, %c0_6], %6 {strides = array<i32>} : memref<256x128xf32, #tpu.memory_space<vmem>>, vector<256x128xf32>,
    return
  }
  func.func @transform_0(%arg0: i32) -> (i32, i32) {
    %c0_i32 = arith.constant 0 : i32
    %c0_i32_0 = arith.constant 0 : i32
    return %arg0, %c0_i32 : i32, i32
  }
  func.func @transform_1(%arg0: i32) -> (i32, i32) {
    %c0_i32 = arith.constant 0 : i32
    %c0_i32_0 = arith.constant 0 : i32
    %c0_i32_1 = arith.constant 0 : i32
    return %c0_i32, %c0_i32_0 : i32, i32
  }
  func.func @transform_2(%arg0: i32) -> (i32, i32) {
    %c0_i32 = arith.constant 0 : i32
    %c0_i32_0 = arith.constant 0 : i32
    %c0_i32_1 = arith.constant 0 : i32
    return %c0_i32, %c0_i32_0 : i32, i32
  }
  func.func @transform_3(%arg0: i32) -> (i32, i32) {
    %c0_i32 = arith.constant 0 : i32
    %c0_i32_0 = arith.constant 0 : i32
    return %arg0, %c0_i32 : i32, i32
  }
}

</mosaic_0001>

<bundles_post_ra>
// kernel: _lambda_.8
= control target key start
LH: loop header
LB: loop body
LE: loop exit
PB: predicated region body
PF: predicated region fallthrough
CT: control target
= control target key end

     0   :  { %s94_s0 = inlined_call_operand.vmem [shape: f32[16,128], index: 0, kind: input, shape index: {}]   ;;  %s95_s1 = inlined_call_operand.vmem [shape: f32[16,128], index: 1, kind: input, shape index: {}]   ;;  %s96_s2 = inlined_call_operand.vmem [shape: f32[16,128], index: 2, kind: input, shape index: {}]   ;;  %s97_s3 = inlined_call_operand.vmem [shape: f32[16,128], index: 3, kind: input, shape index: {}]   ;;  %s98_s4 = inlined_call_operand.vmem [shape: f32[16,128], index: 4, kind: output, shape index: {}]  }
   0x1   :  { %v17_v0 = vld [vmem:[%s94_s0] sm:$0xff]  ;;  %v18_v4 = vld [vmem:[%s94_s0 + $0x8] sm:$0xff] }
   0x2   :  { %v19_v1 = vld [vmem:[%s95_s1] sm:$0xff]  ;;  %v20_v5 = vld [vmem:[%s95_s1 + $0x8] sm:$0xff] }
   0x3   :  { %v23_v2 = vld [vmem:[%s96_s2] sm:$0xff]  ;;  %v21_v3 = vadd.f32 %v19_v1, %v17_v0  ;;  %v22_v7 = vadd.f32 %v20_v5, %v18_v4  ;;  %v24_v8 = vld [vmem:[%s96_s2 + $0x8] sm:$0xff] }
   0x4   :  { %v27_v6 = vld [vmem:[%s97_s3] sm:$0xff]  ;;  %v28_v10 = vld [vmem:[%s97_s3 + $0x8] sm:$0xff] }
   0x5   :  { %v25_v9 = vadd.f32 %v23_v2, %v21_v3  ;;  %v26_v11 = vadd.f32 %v24_v8, %v22_v7 }
   0x7   :  { %v29_v12 = vadd.f32 %v27_v6, %v25_v9  ;;  %v30_v13 = vadd.f32 %v28_v10, %v26_v11 }
   0x9   :  { %v31_v14 = vmul.f32 0.25, %v29_v12  ;;  %v32_v15 = vmul.f32 0.25, %v30_v13 }
   0xb   :  { %33 = vst [vmem:[%s98_s4] sm:$0xff] %v31_v14  ;;  %34 = vst [vmem:[%s98_s4 + $0x8] sm:$0xff] %v32_v15 }

// kernel: _lambda_.9
= control target key start
LH: loop header
LB: loop body
LE: loop exit
PB: predicated region body
PF: predicated region fallthrough
CT: control target
= control target key end

     0   :  { %s1166_s12 = smov 0   ;;  %s1288_s0 = inlined_call_operand.vmem [shape: bf16[512,36], index: 0, kind: input, shape index: {}]   ;;  %s1289_s1 = inlined_call_operand.vmem [shape: bf16[36,128], index: 1, kind: input, shape index: {}]   ;;  %s1290_s2 = inlined_call_operand.vmem [shape: f32[1,128], index: 2, kind: input, shape index: {}]   ;;  %s1291_s3 = inlined_call_operand.vmem [shape: bf16[512,128], index: 3, kind: output, shape index: {}]  }
   0x1 LB: > { %s776_s13 = sadd.s32 4294967295, %s1144_s12   ;;  %p780_p0 = scmp.ge.s32.totalorder %s1144_s12, 1  ;;  %s1144_s12 = sphi %s1166_s12, %s13_s12  }
   0x2   : > { %p138_p1 = scmp.lt.s32.totalorder %s1144_s12, 3 }
   0x4   : > { %p139_p2 = pnand %p780_p0, %p138_p1 }
   0x5   : > { %v1055_v0 = vld [vmem:[%s1289_s1] sm:$0xff] (!%p139_p2)   ;;  %v1056_v1 = vld [vmem:[%s1289_s1 + $0x8] sm:$0xff] (!%p139_p2)   ;;  %s781_s18 = sshll.u32 (!%p139_p2), %s776_s13, 5  ;;  %v1057_v2 = vld [vmem:[%s1289_s1 + $0x10] ss:$0 sps:$4 sm:$0x33] (!%p139_p2)  }
   0x6   : > { %142 = sbr.rel (%p139_p2) target bundleno = 280 (0x118), region = 32  ;;  %1001 = vmatprep.subr.bf16.mxu0 (!%p139_p2), %v1055_v0  ;;  %1039 = vmatprep.subr.bf16.mxu1 (!%p139_p2), %v1055_v0  ;;  %p163_p3 = scmp.lt.s32.totalorder (!%p139_p2), %s781_s18, 63  ;;  %vm363_vm0 = vcmask (!%p139_p2), 1041408   ;;  %vm314_vm1 = vcmask (!%p139_p2), 293888   ;;  %v1228_v20 = vld [vmem:[%s1290_s2] ss:$0 sm:$0xff] (!%p139_p2) }
   0x7   : > { %1002 = vmatpush3.bf16.msra.mxu0 (!%p139_p2), %v1055_v0  ;;  %1042 = vmatpush3.bf16.msra.mxu1 (!%p139_p2), %v1055_v0  ;;  %v365_v3 = vsel (!%p139_p2), %vm363_vm0, %v1057_v2, 0 }
   0x8   : > { %1003 = vmatprep.subr.bf16.mxu0 (!%p139_p2), %v1056_v1  ;;  %1040 = vmatprep.subr.bf16.mxu1 (!%p139_p2), %v1056_v1 }
   0xb   : > { %1004 = vmatpush3.bf16.msra.mxu0 (!%p139_p2), %v1056_v1  ;;  %1043 = vmatpush3.bf16.msra.mxu1 (!%p139_p2), %v1056_v1 }
   0xc   : > { %1045 = vmatprep.subr.msk.bf16.mxu0 (!%p139_p2), %vm363_vm0, %v1057_v2  ;;  %1046 = vmatprep.subr.msk.bf16.mxu1 (!%p139_p2), %vm363_vm0, %v1057_v2 }
   0xd   : > { %s1293_s18 = smov (!%p163_p3, %s781_s18), 63 }
   0xe   : > { %s782_s21 = sshll.u32 %s1293_s18, 2 }
   0xf   : > { %s1191_s24 = scalar_lea.vmem %s1288_s0, %s782_s21  ;;  %1006 = vmatpush3.bf16.msra.mxu0 %v365_v3  ;;  %1044 = vmatpush3.bf16.msra.mxu1 %v365_v3  ;;  %s1251_s29 = scalar_lea.vmem %s1291_s3, %s782_s21 }
  0x10   : > { %v1058_v4 = vld [vmem:[%s1191_s24] sm:$0xff]   ;;  %v1060_v6 = vld [vmem:[%s1191_s24 + $0x8] sm:$0xff]   ;;  %v1062_v8 = vld [vmem:[%s1191_s24 + $0x10] sm:$0xff]  }
  0x11   : > { %v1059_v5 = vld [vmem:[%s1191_s24 + $0x40] sm:$0xff]   ;;  %1007 = vmatprep.mubr.msk.bf16.mxu0 %vm314_vm1, %v1058_v4  ;;  %v1061_v7 = vld [vmem:[%s1191_s24 + $0x48] sm:$0xff]   ;;  %v1063_v9 = vld [vmem:[%s1191_s24 + $0x50] sm:$0xff]  }
  0x12   : > { %1023 = vmatprep.mubr.msk.bf16.mxu1 %vm314_vm1, %v1059_v5  ;;  %1008 = vmatmul.mubr.msk.bf16.vlgmr.msra.gmra.mrb[0].mxu0 %vm314_vm1, %v1060_v6  ;;  %v1064_v10 = vld [vmem:[%s1191_s24 + $0x18] sm:$0xff]   ;;  %v1066_v12 = vld [vmem:[%s1191_s24 + $0x20] sm:$0xff]   ;;  %v1068_v14 = vld [vmem:[%s1191_s24 + $0x28] sm:$0xff]  }
  0x13   : > { %1024 = vmatmul.mubr.msk.bf16.vlgmr.msra.gmra.mrb[0].mxu1 %vm314_vm1, %v1061_v7  ;;  %1011 = vmatprep.mubr.msk.bf16.mxu0 %vm314_vm1, %v1062_v8  ;;  %v1065_v11 = vld [vmem:[%s1191_s24 + $0x58] sm:$0xff]   ;;  %v1067_v13 = vld [vmem:[%s1191_s24 + $0x60] sm:$0xff]   ;;  %v1069_v15 = vld [vmem:[%s1191_s24 + $0x68] sm:$0xff]  }
  0x14   : > { %1027 = vmatprep.mubr.msk.bf16.mxu1 %vm314_vm1, %v1063_v9  ;;  %v1070_v16 = vld [vmem:[%s1191_s24 + $0x30] sm:$0xff]   ;;  %v1072_v18 = vld [vmem:[%s1191_s24 + $0x38] sm:$0xff]  }
  0x15   : > { %v1071_v17 = vld [vmem:[%s1191_s24 + $0x70] sm:$0xff]   ;;  %v1073_v19 = vld [vmem:[%s1191_s24 + $0x78] sm:$0xff]  }
  0x1a   : > { %1012 = vmatmul.mubr.msk.bf16.gmra.mrb[4].mxu0 %vm314_vm1, %v1064_v10 }
  0x1b   : > { %1028 = vmatmul.mubr.msk.bf16.gmra.mrb[4].mxu1 %vm314_vm1, %v1065_v11  ;;  %1015 = vmatprep.mubr.msk.bf16.mxu0 %vm314_vm1, %v1066_v12 }
  0x1c   : > { %1031 = vmatprep.mubr.msk.bf16.mxu1 %vm314_vm1, %v1067_v13 }
  0x22   : > { %1016 = vmatmul.mubr.msk.bf16.gmra.mrb[8].mxu0 %vm314_vm1, %v1068_v14 }
  0x23   : > { %1032 = vmatmul.mubr.msk.bf16.gmra.mrb[8].mxu1 %vm314_vm1, %v1069_v15  ;;  %1019 = vmatprep.mubr.msk.bf16.mxu0 %vm314_vm1, %v1070_v16 }
  0x24   : > { %1035 = vmatprep.mubr.msk.bf16.mxu1 %vm314_vm1, %v1071_v17 }
  0x2a   : > { %1020 = vmatmul.mubr.msk.bf16.gmra.mrb[12].mxu0 %vm314_vm1, %v1072_v18 }
  0x2b   : > { %1036 = vmatmul.mubr.msk.bf16.gmra.mrb[12].mxu1 %vm314_vm1, %v1073_v19 }
  0xe5   : > { %v1009_v21 = vpop.f32.mrb[0].mxu0 }
  0xe6   : > { %v1025_v22 = vpop.f32.mrb[0].mxu1  ;;  %v410_v23 = vadd.f32 %v1009_v21, %v1228_v20  ;;  %v401_v25 = vpop.f32.mrb[1].mxu0 }
  0xe7   : > { %v474_v24 = vadd.f32 %v1025_v22, %v1228_v20  ;;  %v465_v26 = vpop.f32.mrb[1].mxu1  ;;  %v402_v27 = vadd.f32 %v1228_v20, %v401_v25  ;;  %v1010_v29 = vpop.f32.mrb[2].mxu0 }
  0xe8   : > { %v466_v28 = vadd.f32 %v1228_v20, %v465_v26  ;;  %v1026_v30 = vpop.f32.mrb[2].mxu1  ;;  %1074 = vtanh.f32 %v410_v23  ;;  %v413_v31 = vadd.f32 %v1010_v29, %v1228_v20  ;;  %v404_v32 = vpop.f32.mrb[3].mxu0 }
  0xe9   : > { %v468_v33 = vpop.f32.mrb[3].mxu1  ;;  %1076 = vtanh.f32 %v474_v24  ;;  %v477_v34 = vadd.f32 %v1026_v30, %v1228_v20  ;;  %v405_v35 = vadd.f32 %v1228_v20, %v404_v32 }
  0xea   : > { %1078 = vtanh.f32 %v402_v27  ;;  %v469_v36 = vadd.f32 %v1228_v20, %v468_v33 }
  0xeb   : > { %1080 = vtanh.f32 %v466_v28 }
  0xec   : > { %1082 = vtanh.f32 %v413_v31 }
  0xed   : > { %1084 = vtanh.f32 %v477_v34  ;;  %v1013_v37 = vpop.f32.mrb[4].mxu0 }
  0xee   : > { %v1029_v38 = vpop.f32.mrb[4].mxu1  ;;  %1086 = vtanh.f32 %v405_v35  ;;  %v426_v39 = vadd.f32 %v1013_v37, %v1228_v20  ;;  %v417_v41 = vpop.f32.mrb[5].mxu0 }
  0xef   : > { %v490_v40 = vadd.f32 %v1029_v38, %v1228_v20  ;;  %v481_v42 = vpop.f32.mrb[5].mxu1  ;;  %1088 = vtanh.f32 %v469_v36  ;;  %v418_v43 = vadd.f32 %v1228_v20, %v417_v41  ;;  %v1014_v45 = vpop.f32.mrb[6].mxu0 }
  0xf0   : > { %v482_v44 = vadd.f32 %v1228_v20, %v481_v42  ;;  %v1030_v46 = vpop.f32.mrb[6].mxu1  ;;  %1090 = vtanh.f32 %v426_v39  ;;  %v429_v47 = vadd.f32 %v1014_v45, %v1228_v20  ;;  %v420_v48 = vpop.f32.mrb[7].mxu0 }
  0xf1   : > { %v484_v49 = vpop.f32.mrb[7].mxu1  ;;  %1092 = vtanh.f32 %v490_v40  ;;  %v493_v50 = vadd.f32 %v1030_v46, %v1228_v20  ;;  %v421_v52 = vadd.f32 %v1228_v20, %v420_v48 }
  0xf2   : > { %v1075_v51 = vpop.eup %1074  ;;  %1094 = vtanh.f32 %v418_v43  ;;  %v485_v54 = vadd.f32 %v1228_v20, %v484_v49 }
  0xf3   : > { %v1077_v53 = vpop.eup %1076  ;;  %1096 = vtanh.f32 %v482_v44 }
  0xf4   : > { %v1079_v55 = vpop.eup %1078  ;;  %1098 = vtanh.f32 %v429_v47 }
  0xf5   : > { %v1081_v56 = vpop.eup %1080  ;;  %1100 = vtanh.f32 %v493_v50  ;;  %v1017_v57 = vpop.f32.mrb[8].mxu0 }
  0xf6   : > { %v1033_v58 = vpop.f32.mrb[8].mxu1  ;;  %v1083_v59 = vpop.eup %1082  ;;  %1102 = vtanh.f32 %v421_v52  ;;  %v442_v60 = vadd.f32 %v1017_v57, %v1228_v20 }
  0xf7   : > { %v506_v61 = vadd.f32 %v1033_v58, %v1228_v20  ;;  %v433_v62 = vpop.f32.mrb[9].mxu0  ;;  %v497_v63 = vpop.f32.mrb[9].mxu1  ;;  %v895_v1 = vpack.c.bf16 %v1083_v59, %v1075_v51  ;;  %1104 = vtanh.f32 %v485_v54 }
  0xf8   : > { %v1085_v0 = vpop.eup %1084  ;;  %v434_v2 = vadd.f32 %v1228_v20, %v433_v62  ;;  %v498_v3 = vadd.f32 %v1228_v20, %v497_v63  ;;  %v1018_v4 = vpop.f32.mrb[10].mxu0  ;;  %1106 = vtanh.f32 %v442_v60 }
  0xf9   : > { %v1034_v5 = vpop.f32.mrb[10].mxu1  ;;  %v1087_v6 = vpop.eup %1086  ;;  %v935_v7 = vpack.c.bf16 %v1085_v0, %v1077_v53  ;;  %v445_v8 = vadd.f32 %v1018_v4, %v1228_v20  ;;  %967 = vst [vmem:[%s1251_s29 + $0x8] sm:$0xff] %v895_v1   ;;  %1108 = vtanh.f32 %v506_v61 }
  0xfa   : > { %v436_v9 = vpop.f32.mrb[11].mxu0  ;;  %v500_v10 = vpop.f32.mrb[11].mxu1  ;;  %v890_v12 = vpack.c.bf16 %v1087_v6, %v1079_v55  ;;  %v509_v13 = vadd.f32 %v1034_v5, %v1228_v20  ;;  %1110 = vtanh.f32 %v434_v2 }
  0xfb   : > { %v1089_v11 = vpop.eup %1088  ;;  %975 = vst [vmem:[%s1251_s29 + $0x48] sm:$0xff] %v935_v7   ;;  %v437_v16 = vadd.f32 %v1228_v20, %v436_v9  ;;  %1112 = vtanh.f32 %v498_v3  ;;  %v501_v18 = vadd.f32 %v1228_v20, %v500_v10 }
  0xfc   : > { %v1091_v14 = vpop.eup %1090  ;;  %v930_v15 = vpack.c.bf16 %v1089_v11, %v1081_v56  ;;  %891 = vst [vmem:[%s1251_s29] sm:$0xff] %v890_v12   ;;  %1114 = vtanh.f32 %v445_v8 }
  0xfd   : > { %v1093_v17 = vpop.eup %1092  ;;  %1116 = vtanh.f32 %v509_v13  ;;  %v1021_v22 = vpop.f32.mrb[12].mxu0 }
  0xfe   : > { %v1095_v19 = vpop.eup %1094  ;;  %974 = vst [vmem:[%s1251_s29 + $0x40] sm:$0xff] %v930_v15   ;;  %v1037_v23 = vpop.f32.mrb[12].mxu1  ;;  %1118 = vtanh.f32 %v437_v16  ;;  %v458_v25 = vadd.f32 %v1021_v22, %v1228_v20 }
  0xff   : > { %v1097_v21 = vpop.eup %1096  ;;  %v522_v26 = vadd.f32 %v1037_v23, %v1228_v20  ;;  %v449_v27 = vpop.f32.mrb[13].mxu0  ;;  %1120 = vtanh.f32 %v501_v18 }
 0x100   : > { %v1099_v24 = vpop.eup %1098  ;;  %v513_v28 = vpop.f32.mrb[13].mxu1  ;;  %v450_v31 = vadd.f32 %v1228_v20, %v449_v27  ;;  %1122 = vtanh.f32 %v458_v25 }
 0x101   : > { %v1101_v29 = vpop.eup %1100  ;;  %v905_v30 = vpack.c.bf16 %v1099_v24, %v1091_v14  ;;  %v514_v32 = vadd.f32 %v1228_v20, %v513_v28  ;;  %v1022_v33 = vpop.f32.mrb[14].mxu0  ;;  %1124 = vtanh.f32 %v522_v26 }
 0x102   : > { %v1038_v34 = vpop.f32.mrb[14].mxu1  ;;  %v1103_v35 = vpop.eup %1102  ;;  %v945_v36 = vpack.c.bf16 %v1101_v29, %v1093_v17  ;;  %v461_v37 = vadd.f32 %v1022_v33, %v1228_v20  ;;  %1126 = vtanh.f32 %v450_v31 }
 0x103   : > { %v452_v38 = vpop.f32.mrb[15].mxu0  ;;  %v516_v39 = vpop.f32.mrb[15].mxu1  ;;  %969 = vst [vmem:[%s1251_s29 + $0x18] sm:$0xff] %v905_v30   ;;  %v900_v41 = vpack.c.bf16 %v1103_v35, %v1095_v19  ;;  %v525_v42 = vadd.f32 %v1038_v34, %v1228_v20  ;;  %1128 = vtanh.f32 %v514_v32 }
 0x104   : > { %v1105_v40 = vpop.eup %1104  ;;  %977 = vst [vmem:[%s1251_s29 + $0x58] sm:$0xff] %v945_v36   ;;  %v453_v45 = vadd.f32 %v1228_v20, %v452_v38  ;;  %v517_v47 = vadd.f32 %v1228_v20, %v516_v39  ;;  %1130 = vtanh.f32 %v461_v37 }
 0x105   : > { %v1107_v43 = vpop.eup %1106  ;;  %v940_v44 = vpack.c.bf16 %v1105_v40, %v1097_v21  ;;  %968 = vst [vmem:[%s1251_s29 + $0x10] sm:$0xff] %v900_v41   ;;  %1132 = vtanh.f32 %v525_v42 }
 0x106   : > { %v1109_v46 = vpop.eup %1108  ;;  %1134 = vtanh.f32 %v453_v45 }
 0x107   : > { %v1111_v48 = vpop.eup %1110  ;;  %976 = vst [vmem:[%s1251_s29 + $0x50] sm:$0xff] %v940_v44   ;;  %1136 = vtanh.f32 %v517_v47 }
 0x108   : > { %v1113_v49 = vpop.eup %1112 }
 0x109   : > { %v1115_v50 = vpop.eup %1114 }
 0x10a   : > { %v1117_v51 = vpop.eup %1116  ;;  %v915_v52 = vpack.c.bf16 %v1115_v50, %v1107_v43 }
 0x10b   : > { %v1119_v53 = vpop.eup %1118  ;;  %v955_v54 = vpack.c.bf16 %v1117_v51, %v1109_v46 }
 0x10c   : > { %v1121_v55 = vpop.eup %1120  ;;  %971 = vst [vmem:[%s1251_s29 + $0x28] sm:$0xff] %v915_v52   ;;  %v910_v56 = vpack.c.bf16 %v1119_v53, %v1111_v48 }
 0x10d   : > { %v1123_v20 = vpop.eup %1122  ;;  %979 = vst [vmem:[%s1251_s29 + $0x68] sm:$0xff] %v955_v54   ;;  %v950_v57 = vpack.c.bf16 %v1121_v55, %v1113_v49 }
 0x10e   : > { %v1125_v58 = vpop.eup %1124  ;;  %970 = vst [vmem:[%s1251_s29 + $0x20] sm:$0xff] %v910_v56  }
 0x10f   : > { %v1127_v59 = vpop.eup %1126  ;;  %978 = vst [vmem:[%s1251_s29 + $0x60] sm:$0xff] %v950_v57  }
 0x110   : > { %v1129_v60 = vpop.eup %1128 }
 0x111   : > { %v1131_v61 = vpop.eup %1130 }
 0x112   : > { %v1133_v62 = vpop.eup %1132  ;;  %v925_v63 = vpack.c.bf16 %v1131_v61, %v1123_v20 }
 0x113   : > { %v1135_v0 = vpop.eup %1134  ;;  %v965_v1 = vpack.c.bf16 %v1133_v62, %v1125_v58 }
 0x114   : > { %v1137_v2 = vpop.eup %1136  ;;  %973 = vst [vmem:[%s1251_s29 + $0x38] sm:$0xff] %v925_v63   ;;  %v920_v3 = vpack.c.bf16 %v1135_v0, %v1127_v59 }
 0x115   : > { %981 = vst [vmem:[%s1251_s29 + $0x78] sm:$0xff] %v965_v1   ;;  %v960_v4 = vpack.c.bf16 %v1137_v2, %v1129_v60 }
 0x116   : > { %972 = vst [vmem:[%s1251_s29 + $0x30] sm:$0xff] %v920_v3  }
 0x117   : > { %980 = vst [vmem:[%s1251_s29 + $0x70] sm:$0xff] %v960_v4  }
 0x118 PF: > { %s13_s12 = sadd.s32 1, %s1144_s12  }
 0x119   : > { %p10_p4 = scmp.ge.s32.totalorder %s13_s12, 4  }
 0x11b   :  { %12 = sbr.rel (!%p10_p4) target bundleno = 1 (0x1), region = 62 }

// kernel: _lambda_.10
= control target key start
LH: loop header
LB: loop body
LE: loop exit
PB: predicated region body
PF: predicated region fallthrough
CT: control target
= control target key end

     0   :  { %s1358_s12 = smov 0   ;;  %s1554_s0 = inlined_call_operand.vmem [shape: bf16[512,216], index: 0, kind: input, shape index: {}]   ;;  %s1555_s1 = inlined_call_operand.vmem [shape: bf16[216,128], index: 1, kind: input, shape index: {}]   ;;  %s1556_s2 = inlined_call_operand.vmem [shape: f32[1,128], index: 2, kind: input, shape index: {}]   ;;  %s1557_s3 = inlined_call_operand.vmem [shape: bf16[512,128], index: 3, kind: output, shape index: {}]  }
   0x1 LB: > { %s931_s13 = sadd.s32 4294967295, %s1335_s12   ;;  %p935_p0 = scmp.ge.s32.totalorder %s1335_s12, 1  ;;  %s1335_s12 = sphi %s1358_s12, %s13_s12  }
   0x2   : > { %p139_p1 = scmp.lt.s32.totalorder %s1335_s12, 3 }
   0x4   : > { %p140_p2 = pnand %p935_p0, %p139_p1 }
   0x5   : > { %v1203_v0 = vld [vmem:[%s1555_s1] sm:$0xff] (!%p140_p2)   ;;  %v1337_v1 = vmov (!%p140_p2), 0   ;;  %v1204_v2 = vld [vmem:[%s1555_s1 + $0x8] sm:$0xff] (!%p140_p2)   ;;  %s936_s18 = sshll.u32 (!%p140_p2), %s931_s13, 5  ;;  %v1205_v3 = vld [vmem:[%s1555_s1 + $0x10] sm:$0xff] (!%p140_p2)   ;;  %vm469_vm0 = vcmask (!%p140_p2), 719872  }
   0x6   : > { %143 = sbr.rel (%p140_p2) target bundleno = 349 (0x15d), region = 32  ;;  %522 = vmatprep.subr.bf16.mxu0 (!%p140_p2), %v1337_v1  ;;  %1166 = vmatprep.subr.bf16.mxu1 (!%p140_p2), %v1337_v1  ;;  %p165_p3 = scmp.lt.s32.totalorder (!%p140_p2), %s936_s18, 63  ;;  %v1206_v4 = vld [vmem:[%s1555_s1 + $0x18] sm:$0xff] (!%p140_p2)   ;;  %v1207_v5 = vld [vmem:[%s1555_s1 + $0x20] sm:$0xff] (!%p140_p2)   ;;  %v1208_v8 = vld [vmem:[%s1555_s1 + $0x28] sm:$0xff] (!%p140_p2)   ;;  %vm518_vm1 = vcmask (!%p140_p2), 1043456  }
   0x7   : > { %523 = vmatpush1.bf16.msra.mxu0 (!%p140_p2), %v1203_v0  ;;  %1180 = vmatpush1.bf16.msra.mxu1 (!%p140_p2), %v1203_v0  ;;  %v1209_v9 = vld [vmem:[%s1555_s1 + $0x30] sm:$0xff] (!%p140_p2)   ;;  %v1210_v10 = vld [vmem:[%s1555_s1 + $0x38] sm:$0xff] (!%p140_p2)   ;;  %v1211_v11 = vld [vmem:[%s1555_s1 + $0x40] sm:$0xff] (!%p140_p2)  }
   0x8   : > { %524 = vmatprep.subr.bf16.mxu0 (!%p140_p2), %v1337_v1  ;;  %1167 = vmatprep.subr.bf16.mxu1 (!%p140_p2), %v1337_v1  ;;  %v1212_v12 = vld [vmem:[%s1555_s1 + $0x48] sm:$0xff] (!%p140_p2)   ;;  %v1213_v13 = vld [vmem:[%s1555_s1 + $0x50] sm:$0xff] (!%p140_p2)   ;;  %v1214_v14 = vld [vmem:[%s1555_s1 + $0x58] sm:$0xff] (!%p140_p2)  }
   0x9   : > { %v1215_v15 = vld [vmem:[%s1555_s1 + $0x60] sm:$0xff] (!%p140_p2)   ;;  %v1216_v16 = vld [vmem:[%s1555_s1 + $0x68] ss:$0 sps:$4 sm:$0xff] (!%p140_p2)  }
   0xa   : > { %v520_v17 = vsel (!%p140_p2), %vm518_vm1, %v1216_v16, 0  ;;  %v1495_v48 = vld [vmem:[%s1556_s2] ss:$0 sm:$0xff] (!%p140_p2) }
   0xb   : > { %525 = vmatpush1.bf16.msra.mxu0 (!%p140_p2), %v1204_v2  ;;  %1181 = vmatpush1.bf16.msra.mxu1 (!%p140_p2), %v1204_v2 }
   0xc   : > { %526 = vmatprep.subr.bf16.mxu0 (!%p140_p2), %v1337_v1  ;;  %1168 = vmatprep.subr.bf16.mxu1 (!%p140_p2), %v1337_v1 }
   0xd   : > { %s1559_s18 = smov (!%p165_p3, %s936_s18), 63 }
   0xe   : > { %s1038_s21 = sshll.u32 %s1559_s18, 3  ;;  %s940_s24 = sshll.u32 %s1559_s18, 2 }
   0xf   : > { %527 = vmatpush1.bf16.msra.mxu0 %v1205_v3  ;;  %1182 = vmatpush1.bf16.msra.mxu1 %v1205_v3  ;;  %s1392_s26 = scalar_lea.vmem %s1554_s0, %s1038_s21  ;;  %s1509_s27 = scalar_lea.vmem %s1557_s3, %s940_s24 }
  0x10   : > { %528 = vmatprep.subr.bf16.mxu0 %v1337_v1  ;;  %1169 = vmatprep.subr.bf16.mxu1 %v1337_v1  ;;  %v1219_v6 = vld [vmem:[%s1392_s26 + $0x4] ss:$8 sps:$4 sm:$0xff]   ;;  %v1217_v18 = vld [vmem:[%s1392_s26] ss:$8 sps:$4 sm:$0xff]   ;;  %v1223_v20 = vld [vmem:[%s1392_s26 + $0x14] ss:$8 sps:$4 sm:$0xff]  }
  0x11   : > { %988 = vmatprep.mubr.msk.bf16.mxu0 %vm469_vm0, %v1219_v6  ;;  %v1222_v7 = vld [vmem:[%s1392_s26 + $0x84] ss:$8 sps:$4 sm:$0xff]   ;;  %v1220_v19 = vld [vmem:[%s1392_s26 + $0x80] ss:$8 sps:$4 sm:$0xff]   ;;  %v1225_v21 = vld [vmem:[%s1392_s26 + $0x94] ss:$8 sps:$4 sm:$0xff]  }
  0x12   : > { %996 = vmatprep.mubr.msk.bf16.mxu1 %vm469_vm0, %v1222_v7  ;;  %v1227_v22 = vld [vmem:[%s1392_s26 + $0x10] ss:$8 sps:$4 sm:$0xff]   ;;  %v1229_v24 = vld [vmem:[%s1392_s26 + $0x24] ss:$8 sps:$4 sm:$0xff]   ;;  %v1233_v26 = vld [vmem:[%s1392_s26 + $0x20] ss:$8 sps:$4 sm:$0xff]  }
  0x13   : > { %529 = vmatpush1.bf16.msra.mxu0 %v1206_v4  ;;  %1183 = vmatpush1.bf16.msra.mxu1 %v1206_v4  ;;  %v1228_v23 = vld [vmem:[%s1392_s26 + $0x90] ss:$8 sps:$4 sm:$0xff]   ;;  %v1231_v25 = vld [vmem:[%s1392_s26 + $0xa4] ss:$8 sps:$4 sm:$0xff]   ;;  %v1234_v27 = vld [vmem:[%s1392_s26 + $0xa0] ss:$8 sps:$4 sm:$0xff]  }
  0x14   : > { %530 = vmatprep.subr.bf16.mxu0 %v1337_v1  ;;  %1170 = vmatprep.subr.bf16.mxu1 %v1337_v1  ;;  %v1235_v28 = vld [vmem:[%s1392_s26 + $0x34] ss:$8 sps:$4 sm:$0xff]   ;;  %v1239_v30 = vld [vmem:[%s1392_s26 + $0x30] ss:$8 sps:$4 sm:$0xff]   ;;  %v1241_v32 = vld [vmem:[%s1392_s26 + $0x44] ss:$8 sps:$4 sm:$0xff]  }
  0x15   : > { %v1237_v29 = vld [vmem:[%s1392_s26 + $0xb4] ss:$8 sps:$4 sm:$0xff]   ;;  %v1240_v31 = vld [vmem:[%s1392_s26 + $0xb0] ss:$8 sps:$4 sm:$0xff]   ;;  %v1243_v33 = vld [vmem:[%s1392_s26 + $0xc4] ss:$8 sps:$4 sm:$0xff]  }
  0x16   : > { %v1245_v34 = vld [vmem:[%s1392_s26 + $0x40] ss:$8 sps:$4 sm:$0xff]   ;;  %v1247_v36 = vld [vmem:[%s1392_s26 + $0x54] ss:$8 sps:$4 sm:$0xff]   ;;  %v1251_v38 = vld [vmem:[%s1392_s26 + $0x50] ss:$8 sps:$4 sm:$0xff]  }
  0x17   : > { %531 = vmatpush1.bf16.msra.mxu0 %v1207_v5  ;;  %1184 = vmatpush1.bf16.msra.mxu1 %v1207_v5  ;;  %v1246_v35 = vld [vmem:[%s1392_s26 + $0xc0] ss:$8 sps:$4 sm:$0xff]   ;;  %v1249_v37 = vld [vmem:[%s1392_s26 + $0xd4] ss:$8 sps:$4 sm:$0xff]   ;;  %v1252_v39 = vld [vmem:[%s1392_s26 + $0xd0] ss:$8 sps:$4 sm:$0xff]  }
  0x18   : > { %532 = vmatprep.subr.bf16.mxu0 %v1337_v1  ;;  %1171 = vmatprep.subr.bf16.mxu1 %v1337_v1  ;;  %v1253_v40 = vld [vmem:[%s1392_s26 + $0x64] ss:$8 sps:$4 sm:$0xff]   ;;  %v1257_v42 = vld [vmem:[%s1392_s26 + $0x60] ss:$8 sps:$4 sm:$0xff]   ;;  %v1259_v44 = vld [vmem:[%s1392_s26 + $0x74] ss:$8 sps:$4 sm:$0xff]  }
  0x19   : > { %v1255_v41 = vld [vmem:[%s1392_s26 + $0xe4] ss:$8 sps:$4 sm:$0xff]   ;;  %v1258_v43 = vld [vmem:[%s1392_s26 + $0xe0] ss:$8 sps:$4 sm:$0xff]   ;;  %v1261_v45 = vld [vmem:[%s1392_s26 + $0xf4] ss:$8 sps:$4 sm:$0xff]  }
  0x1a   : > { %v1263_v46 = vld [vmem:[%s1392_s26 + $0x70] ss:$8 sps:$4 sm:$0xff]  }
  0x1b   : > { %533 = vmatpush1.bf16.msra.mxu0 %v1208_v8  ;;  %1185 = vmatpush1.bf16.msra.mxu1 %v1208_v8  ;;  %v1264_v47 = vld [vmem:[%s1392_s26 + $0xf0] ss:$8 sps:$4 sm:$0xff]  }
  0x1c   : > { %534 = vmatprep.subr.bf16.mxu0 %v1337_v1  ;;  %1172 = vmatprep.subr.bf16.mxu1 %v1337_v1 }
  0x1f   : > { %535 = vmatpush1.bf16.msra.mxu0 %v1209_v9  ;;  %1186 = vmatpush1.bf16.msra.mxu1 %v1209_v9 }
  0x20   : > { %536 = vmatprep.subr.bf16.mxu0 %v1337_v1  ;;  %1173 = vmatprep.subr.bf16.mxu1 %v1337_v1 }
  0x23   : > { %537 = vmatpush1.bf16.msra.mxu0 %v1210_v10  ;;  %1187 = vmatpush1.bf16.msra.mxu1 %v1210_v10 }
  0x24   : > { %538 = vmatprep.subr.bf16.mxu0 %v1337_v1  ;;  %1174 = vmatprep.subr.bf16.mxu1 %v1337_v1 }
  0x27   : > { %539 = vmatpush1.bf16.msra.mxu0 %v1211_v11  ;;  %1188 = vmatpush1.bf16.msra.mxu1 %v1211_v11 }
  0x28   : > { %540 = vmatprep.subr.bf16.mxu0 %v1337_v1  ;;  %1175 = vmatprep.subr.bf16.mxu1 %v1337_v1 }
  0x2b   : > { %541 = vmatpush1.bf16.msra.mxu0 %v1212_v12  ;;  %1189 = vmatpush1.bf16.msra.mxu1 %v1212_v12 }
  0x2c   : > { %542 = vmatprep.subr.bf16.mxu0 %v1337_v1  ;;  %1176 = vmatprep.subr.bf16.mxu1 %v1337_v1 }
  0x2f   : > { %543 = vmatpush1.bf16.msra.mxu0 %v1213_v13  ;;  %1190 = vmatpush1.bf16.msra.mxu1 %v1213_v13 }
  0x30   : > { %544 = vmatprep.subr.bf16.mxu0 %v1337_v1  ;;  %1177 = vmatprep.subr.bf16.mxu1 %v1337_v1 }
  0x33   : > { %545 = vmatpush1.bf16.msra.mxu0 %v1214_v14  ;;  %1191 = vmatpush1.bf16.msra.mxu1 %v1214_v14 }
  0x34   : > { %546 = vmatprep.subr.bf16.mxu0 %v1337_v1  ;;  %1178 = vmatprep.subr.bf16.mxu1 %v1337_v1 }
  0x37   : > { %547 = vmatpush1.bf16.msra.mxu0 %v1215_v15  ;;  %1192 = vmatpush1.bf16.msra.mxu1 %v1215_v15 }
  0x38   : > { %548 = vmatprep.subr.bf16.mxu0 %v1337_v1  ;;  %1179 = vmatprep.subr.bf16.mxu1 %v1337_v1 }
  0x3b   : > { %549 = vmatpush1.bf16.msra.mxu0 %v520_v17  ;;  %1193 = vmatpush1.bf16.msra.mxu1 %v520_v17 }
  0x3e   : > { %555 = vmatmul.mubr.bf16.vlgmr.msra.gmra.mrb[0].mxu0 %v1217_v18  ;;  %619 = vmatmul.mubr.bf16.vlgmr.msra.gmra.mrb[0].mxu1 %v1220_v19 }
  0x3f   : > { %989 = vmatprep.mubr.msk.bf16.mxu0 %vm469_vm0, %v1223_v20  ;;  %997 = vmatprep.mubr.msk.bf16.mxu1 %vm469_vm0, %v1225_v21 }
  0x46   : > { %563 = vmatmul.mubr.bf16.gmra.mrb[4].mxu0 %v1227_v22  ;;  %627 = vmatmul.mubr.bf16.gmra.mrb[4].mxu1 %v1228_v23 }
  0x47   : > { %990 = vmatprep.mubr.msk.bf16.mxu0 %vm469_vm0, %v1229_v24  ;;  %998 = vmatprep.mubr.msk.bf16.mxu1 %vm469_vm0, %v1231_v25 }
  0x4e   : > { %571 = vmatmul.mubr.bf16.gmra.mrb[8].mxu0 %v1233_v26  ;;  %635 = vmatmul.mubr.bf16.gmra.mrb[8].mxu1 %v1234_v27 }
  0x4f   : > { %991 = vmatprep.mubr.msk.bf16.mxu0 %vm469_vm0, %v1235_v28  ;;  %999 = vmatprep.mubr.msk.bf16.mxu1 %vm469_vm0, %v1237_v29 }
  0x56   : > { %579 = vmatmul.mubr.bf16.gmra.mrb[12].mxu0 %v1239_v30  ;;  %643 = vmatmul.mubr.bf16.gmra.mrb[12].mxu1 %v1240_v31 }
  0x57   : > { %992 = vmatprep.mubr.msk.bf16.mxu0 %vm469_vm0, %v1241_v32  ;;  %1000 = vmatprep.mubr.msk.bf16.mxu1 %vm469_vm0, %v1243_v33 }
  0x5e   : > { %587 = vmatmul.mubr.bf16.gmra.mrb[16].mxu0 %v1245_v34  ;;  %651 = vmatmul.mubr.bf16.gmra.mrb[16].mxu1 %v1246_v35 }
  0x5f   : > { %993 = vmatprep.mubr.msk.bf16.mxu0 %vm469_vm0, %v1247_v36  ;;  %1001 = vmatprep.mubr.msk.bf16.mxu1 %vm469_vm0, %v1249_v37 }
  0x66   : > { %595 = vmatmul.mubr.bf16.gmra.mrb[20].mxu0 %v1251_v38  ;;  %659 = vmatmul.mubr.bf16.gmra.mrb[20].mxu1 %v1252_v39 }
  0x67   : > { %994 = vmatprep.mubr.msk.bf16.mxu0 %vm469_vm0, %v1253_v40  ;;  %1002 = vmatprep.mubr.msk.bf16.mxu1 %vm469_vm0, %v1255_v41 }
  0x6e   : > { %603 = vmatmul.mubr.bf16.gmra.mrb[24].mxu0 %v1257_v42  ;;  %667 = vmatmul.mubr.bf16.gmra.mrb[24].mxu1 %v1258_v43 }
  0x6f   : > { %995 = vmatprep.mubr.msk.bf16.mxu0 %vm469_vm0, %v1259_v44  ;;  %1003 = vmatprep.mubr.msk.bf16.mxu1 %vm469_vm0, %v1261_v45 }
  0x76   : > { %611 = vmatmul.mubr.bf16.gmra.mrb[28].mxu0 %v1263_v46  ;;  %675 = vmatmul.mubr.bf16.gmra.mrb[28].mxu1 %v1264_v47 }
 0x111   : > { %v556_v49 = vpop.f32.mrb[0].mxu0  ;;  %v620_v50 = vpop.f32.mrb[0].mxu1 }
 0x112   : > { %v557_v51 = vadd.f32 %v1495_v48, %v556_v49  ;;  %v621_v52 = vadd.f32 %v1495_v48, %v620_v50  ;;  %v558_v53 = vpop.f32.mrb[1].mxu0  ;;  %v622_v54 = vpop.f32.mrb[1].mxu1 }
 0x113   : > { %v559_v55 = vpop.f32.mrb[2].mxu0  ;;  %v623_v56 = vpop.f32.mrb[2].mxu1 }
 0x114   : > { %1265 = vtanh.f32 %v557_v51  ;;  %v560_v57 = vadd.f32 %v1495_v48, %v559_v55  ;;  %v624_v58 = vadd.f32 %v1495_v48, %v623_v56  ;;  %v561_v59 = vpop.f32.mrb[3].mxu0  ;;  %v625_v60 = vpop.f32.mrb[3].mxu1 }
 0x115   : > { %1267 = vtanh.f32 %v621_v52 }
 0x116   : > { %1269 = vtanh.f32 %v560_v57 }
 0x117   : > { %1271 = vtanh.f32 %v624_v58 }
 0x119   : > { %v564_v61 = vpop.f32.mrb[4].mxu0  ;;  %v628_v62 = vpop.f32.mrb[4].mxu1 }
 0x11a   : > { %v565_v63 = vadd.f32 %v1495_v48, %v564_v61  ;;  %v629_v0 = vadd.f32 %v1495_v48, %v628_v62  ;;  %v566_v1 = vpop.f32.mrb[5].mxu0  ;;  %v630_v2 = vpop.f32.mrb[5].mxu1 }
 0x11b   : > { %v567_v3 = vpop.f32.mrb[6].mxu0  ;;  %v631_v4 = vpop.f32.mrb[6].mxu1 }
 0x11c   : > { %1273 = vtanh.f32 %v565_v63  ;;  %v568_v5 = vadd.f32 %v1495_v48, %v567_v3  ;;  %v632_v6 = vadd.f32 %v1495_v48, %v631_v4  ;;  %v569_v7 = vpop.f32.mrb[7].mxu0  ;;  %v633_v8 = vpop.f32.mrb[7].mxu1 }
 0x11d   : > { %1275 = vtanh.f32 %v629_v0 }
 0x11e   : > { %v1266_v9 = vpop.eup %1265  ;;  %1277 = vtanh.f32 %v568_v5 }
 0x11f   : > { %v1268_v10 = vpop.eup %1267  ;;  %1279 = vtanh.f32 %v632_v6 }
 0x120   : > { %v1270_v11 = vpop.eup %1269 }
 0x121   : > { %v1272_v12 = vpop.eup %1271  ;;  %v1074_v13 = vpack.c.bf16 %v1270_v11, %v1266_v9  ;;  %v572_v14 = vpop.f32.mrb[8].mxu0 }
 0x122   : > { %v636_v15 = vpop.f32.mrb[8].mxu1  ;;  %v1114_v16 = vpack.c.bf16 %v1272_v12, %v1268_v10  ;;  %v573_v17 = vadd.f32 %v1495_v48, %v572_v14  ;;  %v574_v19 = vpop.f32.mrb[9].mxu0 }
 0x123   : > { %v637_v18 = vadd.f32 %v1495_v48, %v636_v15  ;;  %v638_v20 = vpop.f32.mrb[9].mxu1  ;;  %1075 = vst [vmem:[%s1509_s27] sm:$0xff] %v1074_v13   ;;  %v575_v21 = vpop.f32.mrb[10].mxu0 }
 0x124   : > { %v639_v22 = vpop.f32.mrb[10].mxu1  ;;  %1158 = vst [vmem:[%s1509_s27 + $0x40] sm:$0xff] %v1114_v16   ;;  %1281 = vtanh.f32 %v573_v17  ;;  %v576_v23 = vadd.f32 %v1495_v48, %v575_v21  ;;  %v577_v25 = vpop.f32.mrb[11].mxu0 }
 0x125   : > { %v640_v24 = vadd.f32 %v1495_v48, %v639_v22  ;;  %v641_v26 = vpop.f32.mrb[11].mxu1  ;;  %1283 = vtanh.f32 %v637_v18 }
 0x126   : > { %v1274_v27 = vpop.eup %1273  ;;  %1285 = vtanh.f32 %v576_v23 }
 0x127   : > { %v1276_v28 = vpop.eup %1275  ;;  %1287 = vtanh.f32 %v640_v24 }
 0x128   : > { %v1278_v29 = vpop.eup %1277 }
 0x129   : > { %v1280_v30 = vpop.eup %1279  ;;  %v1079_v31 = vpack.c.bf16 %v1278_v29, %v1274_v27  ;;  %v580_v32 = vpop.f32.mrb[12].mxu0 }
 0x12a   : > { %v644_v33 = vpop.f32.mrb[12].mxu1  ;;  %v1119_v34 = vpack.c.bf16 %v1280_v30, %v1276_v28  ;;  %v581_v35 = vadd.f32 %v1495_v48, %v580_v32  ;;  %v582_v37 = vpop.f32.mrb[13].mxu0 }
 0x12b   : > { %v645_v36 = vadd.f32 %v1495_v48, %v644_v33  ;;  %v646_v38 = vpop.f32.mrb[13].mxu1  ;;  %1151 = vst [vmem:[%s1509_s27 + $0x8] sm:$0xff] %v1079_v31   ;;  %v583_v39 = vpop.f32.mrb[14].mxu0 }
 0x12c   : > { %v647_v40 = vpop.f32.mrb[14].mxu1  ;;  %1159 = vst [vmem:[%s1509_s27 + $0x48] sm:$0xff] %v1119_v34   ;;  %1289 = vtanh.f32 %v581_v35  ;;  %v584_v41 = vadd.f32 %v1495_v48, %v583_v39  ;;  %v585_v43 = vpop.f32.mrb[15].mxu0 }
 0x12d   : > { %v648_v42 = vadd.f32 %v1495_v48, %v647_v40  ;;  %v649_v44 = vpop.f32.mrb[15].mxu1  ;;  %1291 = vtanh.f32 %v645_v36 }
 0x12e   : > { %v1282_v45 = vpop.eup %1281  ;;  %1293 = vtanh.f32 %v584_v41 }
 0x12f   : > { %v1284_v46 = vpop.eup %1283  ;;  %1295 = vtanh.f32 %v648_v42 }
 0x130   : > { %v1286_v47 = vpop.eup %1285 }
 0x131   : > { %v1288_v49 = vpop.eup %1287  ;;  %v1084_v50 = vpack.c.bf16 %v1286_v47, %v1282_v45  ;;  %v588_v51 = vpop.f32.mrb[16].mxu0 }
 0x132   : > { %v652_v52 = vpop.f32.mrb[16].mxu1  ;;  %v1124_v53 = vpack.c.bf16 %v1288_v49, %v1284_v46  ;;  %v589_v54 = vadd.f32 %v1495_v48, %v588_v51  ;;  %v590_v56 = vpop.f32.mrb[17].mxu0 }
 0x133   : > { %v653_v55 = vadd.f32 %v1495_v48, %v652_v52  ;;  %v654_v57 = vpop.f32.mrb[17].mxu1  ;;  %1152 = vst [vmem:[%s1509_s27 + $0x10] sm:$0xff] %v1084_v50   ;;  %v591_v58 = vpop.f32.mrb[18].mxu0 }
 0x134   : > { %v655_v59 = vpop.f32.mrb[18].mxu1  ;;  %1160 = vst [vmem:[%s1509_s27 + $0x50] sm:$0xff] %v1124_v53   ;;  %1297 = vtanh.f32 %v589_v54  ;;  %v592_v60 = vadd.f32 %v1495_v48, %v591_v58  ;;  %v593_v62 = vpop.f32.mrb[19].mxu0 }
 0x135   : > { %v656_v61 = vadd.f32 %v1495_v48, %v655_v59  ;;  %v657_v63 = vpop.f32.mrb[19].mxu1  ;;  %1299 = vtanh.f32 %v653_v55 }
 0x136   : > { %v1290_v0 = vpop.eup %1289  ;;  %1301 = vtanh.f32 %v592_v60 }
 0x137   : > { %v1292_v1 = vpop.eup %1291  ;;  %1303 = vtanh.f32 %v656_v61 }
 0x138   : > { %v1294_v2 = vpop.eup %1293 }
 0x139   : > { %v1296_v3 = vpop.eup %1295  ;;  %v1089_v4 = vpack.c.bf16 %v1294_v2, %v1290_v0  ;;  %v596_v5 = vpop.f32.mrb[20].mxu0 }
 0x13a   : > { %v660_v6 = vpop.f32.mrb[20].mxu1  ;;  %v1129_v7 = vpack.c.bf16 %v1296_v3, %v1292_v1  ;;  %v597_v8 = vadd.f32 %v1495_v48, %v596_v5  ;;  %v598_v10 = vpop.f32.mrb[21].mxu0 }
 0x13b   : > { %v661_v9 = vadd.f32 %v1495_v48, %v660_v6  ;;  %v662_v11 = vpop.f32.mrb[21].mxu1  ;;  %1153 = vst [vmem:[%s1509_s27 + $0x18] sm:$0xff] %v1089_v4   ;;  %v599_v12 = vpop.f32.mrb[22].mxu0 }
 0x13c   : > { %v663_v13 = vpop.f32.mrb[22].mxu1  ;;  %1161 = vst [vmem:[%s1509_s27 + $0x58] sm:$0xff] %v1129_v7   ;;  %1305 = vtanh.f32 %v597_v8  ;;  %v600_v14 = vadd.f32 %v1495_v48, %v599_v12  ;;  %v601_v16 = vpop.f32.mrb[23].mxu0 }
 0x13d   : > { %v664_v15 = vadd.f32 %v1495_v48, %v663_v13  ;;  %v665_v17 = vpop.f32.mrb[23].mxu1  ;;  %1307 = vtanh.f32 %v661_v9 }
 0x13e   : > { %v1298_v18 = vpop.eup %1297  ;;  %1309 = vtanh.f32 %v600_v14 }
 0x13f   : > { %v1300_v19 = vpop.eup %1299  ;;  %1311 = vtanh.f32 %v664_v15 }
 0x140   : > { %v1302_v20 = vpop.eup %1301 }
 0x141   : > { %v1304_v21 = vpop.eup %1303  ;;  %v1094_v22 = vpack.c.bf16 %v1302_v20, %v1298_v18  ;;  %v604_v23 = vpop.f32.mrb[24].mxu0 }
 0x142   : > { %v668_v24 = vpop.f32.mrb[24].mxu1  ;;  %v1134_v25 = vpack.c.bf16 %v1304_v21, %v1300_v19  ;;  %v605_v26 = vadd.f32 %v1495_v48, %v604_v23  ;;  %v606_v28 = vpop.f32.mrb[25].mxu0 }
 0x143   : > { %v669_v27 = vadd.f32 %v1495_v48, %v668_v24  ;;  %v670_v29 = vpop.f32.mrb[25].mxu1  ;;  %1154 = vst [vmem:[%s1509_s27 + $0x20] sm:$0xff] %v1094_v22   ;;  %v607_v30 = vpop.f32.mrb[26].mxu0 }
 0x144   : > { %v671_v31 = vpop.f32.mrb[26].mxu1  ;;  %1162 = vst [vmem:[%s1509_s27 + $0x60] sm:$0xff] %v1134_v25   ;;  %1313 = vtanh.f32 %v605_v26  ;;  %v608_v32 = vadd.f32 %v1495_v48, %v607_v30  ;;  %v609_v34 = vpop.f32.mrb[27].mxu0 }
 0x145   : > { %v672_v33 = vadd.f32 %v1495_v48, %v671_v31  ;;  %v673_v35 = vpop.f32.mrb[27].mxu1  ;;  %1315 = vtanh.f32 %v669_v27 }
 0x146   : > { %v1306_v36 = vpop.eup %1305  ;;  %1317 = vtanh.f32 %v608_v32 }
 0x147   : > { %v1308_v37 = vpop.eup %1307  ;;  %1319 = vtanh.f32 %v672_v33 }
 0x148   : > { %v1310_v38 = vpop.eup %1309 }
 0x149   : > { %v1312_v39 = vpop.eup %1311  ;;  %v1099_v40 = vpack.c.bf16 %v1310_v38, %v1306_v36  ;;  %v612_v41 = vpop.f32.mrb[28].mxu0 }
 0x14a   : > { %v676_v42 = vpop.f32.mrb[28].mxu1  ;;  %v1139_v43 = vpack.c.bf16 %v1312_v39, %v1308_v37  ;;  %v613_v44 = vadd.f32 %v1495_v48, %v612_v41  ;;  %v614_v46 = vpop.f32.mrb[29].mxu0 }
 0x14b   : > { %v677_v45 = vadd.f32 %v1495_v48, %v676_v42  ;;  %v678_v47 = vpop.f32.mrb[29].mxu1  ;;  %1155 = vst [vmem:[%s1509_s27 + $0x28] sm:$0xff] %v1099_v40   ;;  %v615_v49 = vpop.f32.mrb[30].mxu0 }
 0x14c   : > { %v679_v50 = vpop.f32.mrb[30].mxu1  ;;  %1163 = vst [vmem:[%s1509_s27 + $0x68] sm:$0xff] %v1139_v43   ;;  %1321 = vtanh.f32 %v613_v44  ;;  %v616_v51 = vadd.f32 %v1495_v48, %v615_v49  ;;  %v617_v53 = vpop.f32.mrb[31].mxu0 }
 0x14d   : > { %v680_v52 = vadd.f32 %v1495_v48, %v679_v50  ;;  %v681_v54 = vpop.f32.mrb[31].mxu1  ;;  %1323 = vtanh.f32 %v677_v45 }
 0x14e   : > { %v1314_v55 = vpop.eup %1313  ;;  %1325 = vtanh.f32 %v616_v51 }
 0x14f   : > { %v1316_v56 = vpop.eup %1315  ;;  %1327 = vtanh.f32 %v680_v52 }
 0x150   : > { %v1318_v57 = vpop.eup %1317 }
 0x151   : > { %v1320_v58 = vpop.eup %1319  ;;  %v1104_v59 = vpack.c.bf16 %v1318_v57, %v1314_v55 }
 0x152   : > { %v1144_v60 = vpack.c.bf16 %v1320_v58, %v1316_v56 }
 0x153   : > { %1156 = vst [vmem:[%s1509_s27 + $0x30] sm:$0xff] %v1104_v59  }
 0x154   : > { %1164 = vst [vmem:[%s1509_s27 + $0x70] sm:$0xff] %v1144_v60  }
 0x156   : > { %v1322_v61 = vpop.eup %1321 }
 0x157   : > { %v1324_v62 = vpop.eup %1323 }
 0x158   : > { %v1326_v63 = vpop.eup %1325 }
 0x159   : > { %v1328_v0 = vpop.eup %1327  ;;  %v1109_v48 = vpack.c.bf16 %v1326_v63, %v1322_v61 }
 0x15a   : > { %v1149_v1 = vpack.c.bf16 %v1328_v0, %v1324_v62 }
 0x15b   : > { %1157 = vst [vmem:[%s1509_s27 + $0x38] sm:$0xff] %v1109_v48  }
 0x15c   : > { %1165 = vst [vmem:[%s1509_s27 + $0x78] sm:$0xff] %v1149_v1  }
 0x15d PF: > { %s13_s12 = sadd.s32 1, %s1335_s12  }
 0x15e   : > { %p10_p4 = scmp.ge.s32.totalorder %s13_s12, 4  }
 0x160   :  { %12 = sbr.rel (!%p10_p4) target bundleno = 1 (0x1), region = 62 }

// kernel: _lambda_.11
= control target key start
LH: loop header
LB: loop body
LE: loop exit
PB: predicated region body
PF: predicated region fallthrough
CT: control target
= control target key end

     0   :  { %s120_s0 = inlined_call_operand.vmem [shape: bf16[16,128], index: 0, kind: input, shape index: {}]   ;;  %s121_s1 = inlined_call_operand.vmem [shape: bf16[16,128], index: 1, kind: input, shape index: {}]   ;;  %s122_s2 = inlined_call_operand.vmem [shape: bf16[16,128], index: 2, kind: input, shape index: {}]   ;;  %s123_s3 = inlined_call_operand.vmem [shape: bf16[16,128], index: 3, kind: input, shape index: {}]   ;;  %s124_s4 = inlined_call_operand.vmem [shape: bf16[16,128], index: 4, kind: output, shape index: {}]  }
   0x1   :  { %v60_v0 = vld [vmem:[%s120_s0] sm:$0xff]  }
   0x2   :  { %v64_v1 = vld [vmem:[%s121_s1] sm:$0xff]   ;;  %v61_v3 = vunpack.c.l.bf16 %v60_v0  ;;  %v62_v4 = vunpack.c.h.bf16 %v60_v0 }
   0x3   :  { %v68_v2 = vld [vmem:[%s122_s2] sm:$0xff]   ;;  %v65_v5 = vunpack.c.l.bf16 %v64_v1  ;;  %v66_v6 = vunpack.c.h.bf16 %v64_v1 }
   0x4   :  { %v72_v7 = vld [vmem:[%s123_s3] sm:$0xff]   ;;  %v69_v8 = vunpack.c.l.bf16 %v68_v2  ;;  %v70_v9 = vunpack.c.h.bf16 %v68_v2 }
   0x5   :  { %v25_v10 = vadd.f32 %v65_v5, %v61_v3  ;;  %v26_v11 = vadd.f32 %v66_v6, %v62_v4  ;;  %v73_v12 = vunpack.c.l.bf16 %v72_v7  ;;  %v74_v13 = vunpack.c.h.bf16 %v72_v7 }
   0x7   :  { %v31_v14 = vadd.f32 %v69_v8, %v25_v10  ;;  %v32_v15 = vadd.f32 %v70_v9, %v26_v11 }
   0x9   :  { %v37_v16 = vadd.f32 %v73_v12, %v31_v14  ;;  %v38_v17 = vadd.f32 %v74_v13, %v32_v15 }
   0xb   :  { %v39_v18 = vmul.f32 0.25, %v37_v16  ;;  %v40_v19 = vmul.f32 0.25, %v38_v17 }
   0xd   :  { %v78_v20 = vpack.c.bf16 %v40_v19, %v39_v18 }
   0xf   :  { %79 = vst [vmem:[%s124_s4] sm:$0xff] %v78_v20  }

// kernel: _lambda_.12
= control target key start
LH: loop header
LB: loop body
LE: loop exit
PB: predicated region body
PF: predicated region fallthrough
CT: control target
= control target key end

     0   :  { %s501_s12 = smov 0   ;;  %s544_s0 = inlined_call_operand.vmem [shape: bf16[128,72], index: 0, kind: input, shape index: {}]   ;;  %s545_s1 = inlined_call_operand.vmem [shape: bf16[72,128], index: 1, kind: input, shape index: {}]   ;;  %s546_s2 = inlined_call_operand.vmem [shape: f32[1,128], index: 2, kind: input, shape index: {}]   ;;  %s547_s3 = inlined_call_operand.vmem [shape: f32[128,128], index: 3, kind: output, shape index: {}]  }
   0x1 LB: > { %s392_s13 = sadd.s32 4294967295, %s479_s12   ;;  %p396_p0 = scmp.ge.s32.totalorder %s479_s12, 1  ;;  %s479_s12 = sphi %s501_s12, %s13_s12  }
   0x2   : > { %p138_p1 = scmp.lt.s32.totalorder %s479_s12, 3 }
   0x4   : > { %p139_p2 = pnand %p396_p0, %p138_p1 }
   0x5   : > { %v464_v0 = vld [vmem:[%s545_s1] sm:$0xff] (!%p139_p2)   ;;  %v465_v1 = vld [vmem:[%s545_s1 + $0x8] sm:$0xff] (!%p139_p2)   ;;  %s397_s18 = sshll.u32 (!%p139_p2), %s392_s13, 3  ;;  %v466_v2 = vld [vmem:[%s545_s1 + $0x10] sm:$0xff] (!%p139_p2)   ;;  %vm246_vm0 = vcmask (!%p139_p2), 588800   ;;  %vm259_vm1 = vcmask (!%p139_p2), 1043456  }
   0x6   : > { %142 = sbr.rel (%p139_p2) target bundleno = 244 (0xf4), region = 32  ;;  %426 = vmatprep.subr.bf16.mxu0 (!%p139_p2), %v464_v0  ;;  %444 = vmatprep.subr.bf16.mxu1 (!%p139_p2), %v464_v0  ;;  %p163_p3 = scmp.lt.s32.totalorder (!%p139_p2), %s397_s18, 15  ;;  %v467_v3 = vld [vmem:[%s545_s1 + $0x18] sm:$0xff] (!%p139_p2)   ;;  %v468_v6 = vld [vmem:[%s545_s1 + $0x20] ss:$0 sps:$4 sm:$0xff] (!%p139_p2)  }
   0x7   : > { %427 = vmatpush3.bf16.msra.mxu0 (!%p139_p2), %v464_v0  ;;  %449 = vmatpush3.bf16.msra.mxu1 (!%p139_p2), %v464_v0  ;;  %v261_v7 = vsel (!%p139_p2), %vm259_vm1, %v468_v6, 0  ;;  %v401_v10 = vld [vmem:[%s546_s2] ss:$0 sm:$0xff] (!%p139_p2) }
   0x8   : > { %428 = vmatprep.subr.bf16.mxu0 (!%p139_p2), %v465_v1  ;;  %445 = vmatprep.subr.bf16.mxu1 (!%p139_p2), %v465_v1 }
   0xb   : > { %429 = vmatpush3.bf16.msra.mxu0 (!%p139_p2), %v465_v1  ;;  %450 = vmatpush3.bf16.msra.mxu1 (!%p139_p2), %v465_v1 }
   0xc   : > { %430 = vmatprep.subr.bf16.mxu0 (!%p139_p2), %v466_v2  ;;  %446 = vmatprep.subr.bf16.mxu1 (!%p139_p2), %v466_v2 }
   0xd   : > { %s549_s18 = smov (!%p163_p3, %s397_s18), 15 }
   0xe   : > { %s398_s21 = sshll.u32 %s549_s18, 2  ;;  %s400_s29 = sshll.u32 %s549_s18, 3 }
   0xf   : > { %s166_s26 = scalar_lea.vmem %s544_s0, %s398_s21  ;;  %431 = vmatpush3.bf16.msra.mxu0 %v466_v2  ;;  %451 = vmatpush3.bf16.msra.mxu1 %v466_v2  ;;  %s172_s7 = scalar_lea.vmem %s547_s3, %s400_s29 }
  0x10   : > { %v469_v4 = vld [vmem:[%s166_s26] sm:$0xff]   ;;  %v470_v5 = vld [vmem:[%s166_s26 + $0x10] sm:$0xff]   ;;  %432 = vmatprep.subr.bf16.mxu0 %v467_v3  ;;  %447 = vmatprep.subr.bf16.mxu1 %v467_v3  ;;  %v471_v8 = vld [vmem:[%s166_s26 + $0x8] sm:$0xff]  }
  0x11   : > { %436 = vmatprep.mubr.msk.bf16.mxu0 %vm246_vm0, %v469_v4  ;;  %440 = vmatprep.mubr.msk.bf16.mxu1 %vm246_vm0, %v470_v5  ;;  %v472_v9 = vld [vmem:[%s166_s26 + $0x18] sm:$0xff]  }
  0x13   : > { %433 = vmatpush3.bf16.msra.mxu0 %v467_v3  ;;  %452 = vmatpush3.bf16.msra.mxu1 %v467_v3 }
  0x14   : > { %454 = vmatprep.subr.msk.bf16.mxu0 %vm259_vm1, %v468_v6  ;;  %455 = vmatprep.subr.msk.bf16.mxu1 %vm259_vm1, %v468_v6 }
  0x17   : > { %435 = vmatpush3.bf16.msra.mxu0 %v261_v7  ;;  %453 = vmatpush3.bf16.msra.mxu1 %v261_v7 }
  0x1a   : > { %437 = vmatmul.mubr.msk.bf16.vlgmr.msra.gmra.mrb[0].mxu0 %vm246_vm0, %v471_v8  ;;  %441 = vmatmul.mubr.msk.bf16.vlgmr.msra.gmra.mrb[0].mxu1 %vm246_vm0, %v472_v9 }
  0xed   : > { %v438_v11 = vpop.f32.mrb[0].mxu0  ;;  %v442_v12 = vpop.f32.mrb[0].mxu1 }
  0xee   : > { %v306_v13 = vadd.f32 %v438_v11, %v401_v10  ;;  %v322_v14 = vadd.f32 %v442_v12, %v401_v10  ;;  %v297_v15 = vpop.f32.mrb[1].mxu0  ;;  %v313_v16 = vpop.f32.mrb[1].mxu1 }
  0xef   : > { %v298_v17 = vadd.f32 %v401_v10, %v297_v15  ;;  %v314_v18 = vadd.f32 %v401_v10, %v313_v16  ;;  %v439_v19 = vpop.f32.mrb[2].mxu0  ;;  %v443_v20 = vpop.f32.mrb[2].mxu1 }
  0xf0   : > { %330 = vst [vmem:[%s172_s7 + $0x10] sm:$0xff] %v306_v13  ;;  %334 = vst [vmem:[%s172_s7 + $0x30] sm:$0xff] %v322_v14  ;;  %v309_v21 = vadd.f32 %v439_v19, %v401_v10  ;;  %v325_v22 = vadd.f32 %v443_v20, %v401_v10  ;;  %v300_v23 = vpop.f32.mrb[3].mxu0  ;;  %v316_v24 = vpop.f32.mrb[3].mxu1 }
  0xf1   : > { %328 = vst [vmem:[%s172_s7] sm:$0xff] %v298_v17  ;;  %332 = vst [vmem:[%s172_s7 + $0x20] sm:$0xff] %v314_v18  ;;  %v301_v25 = vadd.f32 %v401_v10, %v300_v23  ;;  %v317_v26 = vadd.f32 %v401_v10, %v316_v24 }
  0xf2   : > { %331 = vst [vmem:[%s172_s7 + $0x18] sm:$0xff] %v309_v21  ;;  %335 = vst [vmem:[%s172_s7 + $0x38] sm:$0xff] %v325_v22 }
  0xf3   : > { %329 = vst [vmem:[%s172_s7 + $0x8] sm:$0xff] %v301_v25  ;;  %333 = vst [vmem:[%s172_s7 + $0x28] sm:$0xff] %v317_v26 }
  0xf4 PF: > { %s13_s12 = sadd.s32 1, %s479_s12  }
  0xf5   : > { %p10_p4 = scmp.ge.s32.totalorder %s13_s12, 4  }
  0xf7   :  { %12 = sbr.rel (!%p10_p4) target bundleno = 1 (0x1), region = 62 }

// kernel: _lambda_.13
= control target key start
LH: loop header
LB: loop body
LE: loop exit
PB: predicated region body
PF: predicated region fallthrough
CT: control target
= control target key end

     0   :  { %s1903_s12 = smov 0   ;;  %s1905_s13 = smov 0   ;;  %s2130_s0 = inlined_call_operand.vmem [shape: f32[2,4,28,24], index: 0, kind: input, shape index: {}]   ;;  %s2131_s1 = inlined_call_operand.vmem [shape: f32[9,8,24], index: 1, kind: input, shape index: {}]   ;;  %s2132_s2 = inlined_call_operand.vmem [shape: f32[1,24], index: 2, kind: input, shape index: {}]   ;;  %s2133_s3 = inlined_call_operand.vmem [shape: f32[2,4,28,8], index: 3, kind: output, shape index: {}]  }
   0x1   :  { %s1907_s14 = smov 0   ;;  %s1909_s15 = smov 0  }
   0x2   :  { %s1911_s16 = smov 0  }
   0x3 LB: > { %s22_s17 = sadd.s32 1, %s1867_s14  ;;  %s25_s18 = sadd.s32 1, %s1871_s15  ;;  %s1875_s16 = sphi %s1911_s16, %s13_s16   ;;  %s1871_s15 = sphi %s1909_s15, %s2143_s15   ;;  %s1867_s14 = sphi %s1907_s14, %s2142_s14   ;;  %s1863_s13 = sphi %s1905_s13, %s2141_s13   ;;  %s1859_s12 = sphi %s1903_s12, %s2140_s12  }
   0x4   : > { %p23_p0 = scmp.ge.s32.totalorder %s22_s17, 4  ;;  %p1545_p1 = scmp.ge.s32.totalorder %s1875_s16, 1 }
   0x5   : > { %p157_p2 = scmp.lt.s32.totalorder %s1875_s16, 9 }
   0x6   : > { %s2145_s17 = smov (%p23_p0, %s22_s17), 0  ;;  %s2147_s18 = smov (!%p23_p0, %s25_s18), %s1871_s15 }
   0x7   : > { %p158_p3 = pnand %p1545_p1, %p157_p2  ;;  %p27_p4 = scmp.ge.s32.totalorder %s2147_s18, 2 }
   0x8   : > { %p189_p5 = scmp.lt.s32.totalorder (!%p158_p3), %s1863_s13, 1  ;;  %p191_p6 = scmp.lt.s32.totalorder (!%p158_p3), %s1859_s12, 3 }
   0x9   : > { %s2149_s18 = smov (%p27_p4, %s2147_s18), 0  ;;  %161 = sbr.rel (%p158_p3) target bundleno = 773 (0x305), region = 32 }
   0xa   : > { %p1552_p7 = scmp.ne.s32.totalorder (!%p158_p3), %s1859_s12, 0 }
  0x10   : > { %s2151_s13 = smov (!%p189_p5, %s1863_s13), 1  ;;  %210 = sbr.rel (%p1552_p7) target bundleno = 23 (0x17), region = 36 }
  0x11   : > { %s192_s19 = scalar_select %p191_p6, %s1859_s12, 3 }
  0x12   : > { %s1547_s20 = sshll.u32 %s2151_s13, 4  ;;  %vm211_vm0 = vcmask (!%p1552_p7), 64512   ;;  %v1877_v0 = vmov (!%p1552_p7), 0.0  }
  0x13   : > { %s1546_s21 = sshll.u32 %s192_s19, 2  ;;  %212 = vst.msk [vmem:[#allocation2] sm:$0xff] (!%p1552_p7), %vm211_vm0, %v1877_v0  ;;  %213 = vst.msk [vmem:[#allocation2 + $0x8] sm:$0xff] (!%p1552_p7), %vm211_vm0, %v1877_v0 }
  0x14   : > { %s195_s22 = sadd.s32 %s1547_s20, %s1546_s21  ;;  %214 = vst.msk [vmem:[#allocation2 + $0x10] sm:$0xff] (!%p1552_p7), %vm211_vm0, %v1877_v0  ;;  %215 = vst.msk [vmem:[#allocation2 + $0x18] sm:$0xff] (!%p1552_p7), %vm211_vm0, %v1877_v0 }
  0x15   : > { %s1548_s23 = sshll.u32 %s195_s22, 3  ;;  %216 = vst.msk [vmem:[#allocation2 + $0x20] sm:$0xff] (!%p1552_p7), %vm211_vm0, %v1877_v0  ;;  %217 = vst.msk [vmem:[#allocation2 + $0x28] sm:$0xff] (!%p1552_p7), %vm211_vm0, %v1877_v0 }
  0x16   : > { %s1936_s26 = scalar_lea.vmem %s2130_s0, %s1548_s23  ;;  %s1941_s29 = scalar_lea.vmem %s2133_s3, %s1548_s23 }
  0x17 PF: > { %v233_v1 = vld [vmem:[%s2131_s1] sm:$0xff]  ;;  %vm234_vm1 = vcmask 64512   ;;  %v1558_v5 = vld [vmem:[%s2131_s1 + $0x8] sm:$0xff]  ;;  %v1563_v10 = vld [vmem:[%s2131_s1 + $0x10] sm:$0xff]  ;;  %s1878_s30 = smov 112   ;;  %s1880_s4 = smov 8  }
  0x18   : > { %v1949_v2 = vld [vmem:[%s2131_s1 + $0x20] sm:$0xff]  ;;  %1649 = vmatprep.subr.mxu1 %v233_v1  ;;  %v1578_v7 = vld [vmem:[%s2131_s1 + $0x28] sm:$0xff]  ;;  %v1583_v12 = vld [vmem:[%s2131_s1 + $0x30] sm:$0xff]  ;;  %s1881_s5 = smov 120  }
  0x19   : > { %1681 = vmatprep.subr.mxu0 %v1949_v2  ;;  %1650 = vmatpush3.msra.mxu1 %v233_v1  ;;  %v1568_v15 = vld [vmem:[%s2131_s1 + $0x18] sm:$0xff]  ;;  %v1593_v26 = vld [vmem:[%s2131_s1 + $0x40] sm:$0xff]  ;;  %v219_v57 = vld [vmem:[%s1936_s26 + $0x8] sm:$0xff] }
  0x1a   : > { %v229_v3 = vld [vmem:[#allocation2] sm:$0xff]  ;;  %v1952_v4 = vld [vmem:[#allocation2 + $0x8] sm:$0xff]  ;;  %1682 = vmatpush3.msra.mxu0 %v1949_v2  ;;  %1657 = vmatprep.subr.mxu1 %v1558_v5  ;;  %v1588_v17 = vld [vmem:[%s2131_s1 + $0x38] sm:$0xff] }
  0x1b   : > { %1651 = vmatprep.mubr.msk.f32.mxu1 %vm234_vm1, %v229_v3  ;;  %v1958_v6 = vld [vmem:[#allocation2 + $0x10] sm:$0xff]  ;;  %1683 = vmatprep.mubr.msk.f32.mxu0 %vm234_vm1, %v1952_v4  ;;  %v232_v9 = vld [vmem:[#allocation2 + $0x18] sm:$0xf]  ;;  %v336_v11 = vld [vmem:[#allocation2 + $0x1] sm:$0xff] }
  0x1c   : > { %1652 = vmatmul.mubr.msk.f32.vlgmr.msra.gmra.mrb[0].mxu1 %vm234_vm1, %v1952_v4  ;;  %v764_v8 = vld [vmem:[#allocation2 + $0x9] sm:$0xff]  ;;  %1684 = vmatmul.mubr.msk.f32.vlgmr.msra.gmra.mrb[0].mxu0 %vm234_vm1, %v1958_v6  ;;  %v765_v13 = vld [vmem:[#allocation2 + $0x11] sm:$0xff]  ;;  %v766_v14 = vld [vmem:[#allocation2 + $0x19] sm:$0xff] }
  0x1d   : > { %1658 = vmatpush3.msra.mxu1 %v1558_v5  ;;  %1689 = vmatprep.subr.mxu0 %v1578_v7  ;;  %v339_v16 = vld [vmem:[#allocation2 + $0x19] sm:$0xf]  ;;  %v767_v18 = vld [vmem:[#allocation2 + $0x21] sm:$0xf]  ;;  %v871_v20 = vld [vmem:[#allocation2 + $0xe] sm:$0xff] }
  0x1e   : > { %1654 = vmatprep.mubr.msk.f32.mxu1 %vm234_vm1, %v1958_v6  ;;  %1690 = vmatpush3.msra.mxu0 %v1578_v7  ;;  %v443_v19 = vld [vmem:[#allocation2 + $0x2] sm:$0xff]  ;;  %v444_v21 = vld [vmem:[#allocation2 + $0xa] sm:$0xff]  ;;  %v872_v22 = vld [vmem:[#allocation2 + $0x16] sm:$0xff] }
  0x1f   : > { %1691 = vmatprep.mubr.msk.f32.mxu0 %vm234_vm1, %v764_v8  ;;  %1665 = vmatprep.subr.mxu1 %v1563_v10  ;;  %v445_v23 = vld [vmem:[#allocation2 + $0x12] sm:$0xff]  ;;  %v873_v24 = vld [vmem:[#allocation2 + $0x1e] sm:$0xff]  ;;  %v446_v25 = vld [vmem:[#allocation2 + $0x1a] sm:$0xf] }
  0x20   : > { %1655 = vmatmul.mubr.msk.f32.gmra.mrb[2].mxu1 %vm234_vm1, %v232_v9  ;;  %1697 = vmatprep.subr.mxu0 %v1583_v12  ;;  %v874_v27 = vld [vmem:[#allocation2 + $0x26] sm:$0xf]  ;;  %v978_v29 = vld [vmem:[#allocation2 + $0xf] sm:$0xff]  ;;  %v979_v30 = vld [vmem:[#allocation2 + $0x17] sm:$0xff] }
  0x21   : > { %1659 = vmatprep.mubr.msk.f32.mxu1 %vm234_vm1, %v336_v11  ;;  %v550_v28 = vld [vmem:[#allocation2 + $0x7] sm:$0xff]  ;;  %v980_v31 = vld [vmem:[#allocation2 + $0x1f] sm:$0xff]  ;;  %v220_v58 = vld [vmem:[%s1936_s26 + $0x10] sm:$0xff] }
  0x22   : > { %v553_v32 = vld [vmem:[#allocation2 + $0x1f] sm:$0xf]  ;;  %v981_v33 = vld [vmem:[#allocation2 + $0x27] sm:$0xf]  ;;  %v221_v62 = vld [vmem:[%s1936_s26 + $0x18] sm:$0xf] }
  0x23   : > { %v2013_v34 = vld [vmem:[#allocation2 + $0x18] sm:$0xff]  ;;  %v1087_v35 = vld [vmem:[#allocation2 + $0x20] sm:$0xff]  ;;  %v1088_v37 = vld [vmem:[#allocation2 + $0x28] sm:$0xf] }
  0x24   : > { %1660 = vmatmul.mubr.msk.f32.vlgmr.msra.gmra.mrb[0].mxu1 %vm234_vm1, %v764_v8  ;;  %1692 = vmatmul.mubr.msk.f32.vlgmr.msra.gmra.mrb[0].mxu0 %vm234_vm1, %v765_v13  ;;  %v2022_v36 = vld [vmem:[#allocation2 + $0x20] sm:$0xf] }
  0x25   : > { %1666 = vmatpush3.msra.mxu1 %v1563_v10  ;;  %1662 = vmatprep.mubr.msk.f32.mxu1 %vm234_vm1, %v765_v13  ;;  %v1553_v40 = vld [vmem:[%s2132_s2] ss:$0 sm:$0xff] }
  0x26   : > { %1694 = vmatprep.mubr.msk.f32.mxu0 %vm234_vm1, %v766_v14  ;;  %1698 = vmatpush3.msra.mxu0 %v1583_v12  ;;  %v218_v55 = vld [vmem:[%s1936_s26] sm:$0xff]  ;;  %s1879_s26 = smov 16  }
  0x27   : > { %1673 = vmatprep.subr.mxu1 %v1568_v15  ;;  %1705 = vmatprep.subr.mxu0 %v1588_v17 }
  0x28   : > { %1663 = vmatmul.mubr.msk.f32.gmra.mrb[2].mxu1 %vm234_vm1, %v339_v16  ;;  %1695 = vmatmul.mubr.msk.f32.gmra.mrb[2].mxu0 %vm234_vm1, %v767_v18 }
  0x29   : > { %1667 = vmatprep.mubr.msk.f32.mxu1 %vm234_vm1, %v443_v19  ;;  %1699 = vmatprep.mubr.msk.f32.mxu0 %vm234_vm1, %v871_v20 }
  0x2c   : > { %1668 = vmatmul.mubr.msk.f32.vlgmr.msra.gmra.mrb[0].mxu1 %vm234_vm1, %v444_v21  ;;  %1700 = vmatmul.mubr.msk.f32.vlgmr.msra.gmra.mrb[0].mxu0 %vm234_vm1, %v872_v22 }
  0x2d   : > { %1674 = vmatpush3.msra.mxu1 %v1568_v15  ;;  %1670 = vmatprep.mubr.msk.f32.mxu1 %vm234_vm1, %v445_v23 }
  0x2e   : > { %1702 = vmatprep.mubr.msk.f32.mxu0 %vm234_vm1, %v873_v24  ;;  %1706 = vmatpush3.msra.mxu0 %v1588_v17 }
  0x2f   : > { %1721 = vmatprep.subr.mxu1 %v1949_v2  ;;  %1713 = vmatprep.subr.mxu0 %v1593_v26 }
  0x30   : > { %1671 = vmatmul.mubr.msk.f32.gmra.mrb[2].mxu1 %vm234_vm1, %v446_v25  ;;  %1703 = vmatmul.mubr.msk.f32.gmra.mrb[2].mxu0 %vm234_vm1, %v874_v27 }
  0x31   : > { %1675 = vmatprep.mubr.msk.f32.mxu1 %vm234_vm1, %v550_v28  ;;  %1707 = vmatprep.mubr.msk.f32.mxu0 %vm234_vm1, %v978_v29 }
  0x34   : > { %1676 = vmatmul.mubr.msk.f32.vlgmr.msra.gmra.mrb[0].mxu1 %vm234_vm1, %v978_v29  ;;  %1708 = vmatmul.mubr.msk.f32.vlgmr.msra.gmra.mrb[0].mxu0 %vm234_vm1, %v979_v30 }
  0x35   : > { %1722 = vmatpush3.msra.mxu1 %v1949_v2  ;;  %1678 = vmatprep.mubr.msk.f32.mxu1 %vm234_vm1, %v979_v30 }
  0x36   : > { %1710 = vmatprep.mubr.msk.f32.mxu0 %vm234_vm1, %v980_v31  ;;  %1714 = vmatpush3.msra.mxu0 %v1593_v26 }
  0x38   : > { %1679 = vmatmul.mubr.msk.f32.gmra.mrb[2].mxu1 %vm234_vm1, %v553_v32  ;;  %1711 = vmatmul.mubr.msk.f32.gmra.mrb[2].mxu0 %vm234_vm1, %v981_v33 }
  0x39   : > { %1686 = vmatprep.mubr.msk.f32.mxu1 %vm234_vm1, %v2013_v34  ;;  %1715 = vmatprep.mubr.msk.f32.mxu0 %vm234_vm1, %v1958_v6 }
  0x3c   : > { %1716 = vmatmul.mubr.msk.f32.vlgmr.msra.gmra.mrb[0].mxu0 %vm234_vm1, %v2013_v34 }
  0x3d   : > { %1718 = vmatprep.mubr.msk.f32.mxu0 %vm234_vm1, %v1087_v35 }
  0x40   : > { %1687 = vmatmul.mubr.msk.f32.vlgmr.msra.gmra.mrb[2].mxu1 %vm234_vm1, %v2022_v36  ;;  %1719 = vmatmul.mubr.msk.f32.gmra.mrb[2].mxu0 %vm234_vm1, %v1088_v37  ;;  %v1329_v37 = vlaneseq }
 0x107   : > { %v1677_v38 = vpop.f32.mrb[0].mxu1 }
 0x108   : > { %v634_v39 = vpop.f32.mrb[1].mxu1  ;;  %v1723_v41 = vadd.f32 %v1677_v38, %v1553_v40  ;;  %v1330_v38 = vshrl.u32 %v1329_v37, 7 }
 0x109   : > { %v1725_v42 = vadd.f32 %v1553_v40, %v634_v39 }
 0x10f   : > { %v1717_v43 = vpop.f32.mrb[0].mxu0 }
 0x110   : > { %v1724_v44 = vadd.f32 %v1723_v41, %v1717_v43  ;;  %v1169_v45 = vpop.f32.mrb[1].mxu0  ;;  %v1331_v41 = vadd.s32 8, %v1330_v38 }
 0x111   : > { %v1726_v46 = vadd.f32 %v1725_v42, %v1169_v45  ;;  %v1882_v45 = vmov 0  }
 0x112   : > { %v1193_v59 = vadd.f32 %v1724_v44, %v219_v57  ;;  %v2058_v42 = vmul.u32.u64.low 2454267026, %v1331_v41  ;;  %v2059_v43 = vmul.u32.u64.high 2454267026, %v1331_v41, %v2058_v42 }
 0x113   : > { %v1688_v47 = vpop.f32.mrb[2].mxu1  ;;  %v1720_v49 = vpop.f32.mrb[2].mxu0  ;;  %1224 = vrot.lane.b32.xlu0 %v1726_v46, %s1878_s30  ;;  %v1192_v56 = vadd.f32 %v1726_v46, %v218_v55 }
 0x114   : > { %v1727_v48 = vadd.f32 %v1688_v47, %v1553_v40  ;;  %v751_v50 = vpop.f32.mrb[3].mxu1  ;;  %v1179_v52 = vpop.f32.mrb[3].mxu0  ;;  %v1599_v63 = vmul.f32 -1.442695, %v1193_v59  ;;  %vm1354_vm3 = vc.u32 %v2058_v42, 2454267026 }
 0x115   : > { %v1729_v51 = vadd.f32 %v1553_v40, %v751_v50  ;;  %v1598_v60 = vmul.f32 -1.442695, %v1192_v56  ;;  %v2055_v39 = vmul.u32.u64.low 2454267026, %v1330_v38  ;;  %v2056_v40 = vmul.u32.u64.high 2454267026, %v1330_v38, %v2055_v39 }
 0x116   : > { %v1728_v53 = vadd.f32 %v1727_v48, %v1720_v49  ;;  %v1355_v49 = vsel %vm1354_vm3, 1, %v1882_v45 }
 0x117   : > { %v1730_v54 = vadd.f32 %v1729_v51, %v1179_v52  ;;  %1226 = vrot.lane.b32.xlu0 %v1724_v44, %s1878_s30  ;;  %1813 = vpow2.f32 %v1598_v60  ;;  %vm1340_vm2 = vc.u32 %v2055_v39, 2454267026  ;;  %v1332_v44 = vadd.s32 16, %v1330_v38 }
 0x118   : > { %v1195_v0 = vadd.f32 %v1728_v53, %v221_v62  ;;  %1815 = vpow2.f32 %v1599_v63  ;;  %v1341_v46 = vsel %vm1340_vm2, 1, %v1882_v45 }
 0x119   : > { %1228 = vrot.lane.b32.xlu1 %v1730_v54, %s1878_s30  ;;  %v1194_v61 = vadd.f32 %v1730_v54, %v220_v58  ;;  %v2061_v47 = vmul.u32.u64.low 2454267026, %v1332_v44  ;;  %v2062_v48 = vmul.u32.u64.high 2454267026, %v1332_v44, %v2061_v47 }
 0x11a   : > { %v1601_v2 = vmul.f32 -1.442695, %v1195_v0 }
 0x11b   : > { %v1600_v1 = vmul.f32 -1.442695, %v1194_v61  ;;  %vm1368_vm4 = vc.u32 %v2061_v47, 2454267026 }
 0x11c   : > { %v1369_v54 = vsel %vm1368_vm4, 1, %v1882_v45 }
 0x11d   : > { %1230 = vrot.lane.b32.xlu1 %v1728_v53, %s1878_s30  ;;  %1817 = vpow2.f32 %v1600_v1  ;;  %v1356_v53 = vadd.s32 %v2059_v43, %v1355_v49 }
 0x11e   : > { %1819 = vpow2.f32 %v1601_v2 }
 0x11f   : > { %v1357_v56 = vshrl.u32 %v1356_v53, 2 }
 0x121   : > { %v1814_v3 = vpop.eup %1813  ;;  %v1358_v60 = vmul.u32 7, %v1357_v56 }
 0x122   : > { %v1208_v5 = vadd.f32 1.0, %v1814_v3  ;;  %v1816_v7 = vpop.eup %1815 }
 0x123   : > { %v1209_v9 = vadd.f32 1.0, %v1816_v7  ;;  %v1359_v0 = vsub.s32 %v1331_v41, %v1358_v60 }
 0x124   : > { %1821 = vrcp.f32 %v1208_v5 }
 0x125   : > { %1823 = vrcp.f32 %v1209_v9  ;;  %vm1391_vm9 = vcmp.ne.s32.totalorder %v1359_v0, 0  ;;  %vm1395_vm10 = vcmp.lt.s32.totalorder %v1359_v0, 0 }
 0x126   : > { %vm2080_vm11 = vmand %vm1395_vm10, %vm1391_vm9 }
 0x127   : > { %v1818_v8 = vpop.eup %1817 }
 0x128   : > { %v1210_v10 = vadd.f32 1.0, %v1818_v8  ;;  %v1820_v11 = vpop.eup %1819 }
 0x129   : > { %v1211_v12 = vadd.f32 1.0, %v1820_v11 }
 0x12a   : > { %1825 = vrcp.f32 %v1210_v10 }
 0x12b   : > { %1827 = vrcp.f32 %v1211_v12 }
 0x12e   : > { %v2035_v13 = vpop.eup %1821 }
 0x12f   : > { %v2038_v16 = vpop.eup %1823  ;;  %v1264_v7 = vsub.f32 1.0, %v2035_v13 }
 0x134   : > { %v2040_v18 = vpop.eup %1825 }
 0x135   : > { %v2044_v22 = vpop.eup %1827 }
 0x185   : > { %v1225_v14 = vpop.permute.xlu0 %1224 }
 0x186   : > { %v1236_v15 = vmul.f32 %v2035_v13, %v1225_v14 }
 0x188   : > { %1244 = vrot.lane.b32.xlu0 %v1236_v15, %s1879_s26 }
 0x189   : > { %v1227_v17 = vpop.permute.xlu0 %1226 }
 0x18a   : > { %v1237_v19 = vmul.f32 %v2038_v16, %v1227_v17  ;;  %v1403_v17 = vadd.s32 7, %v1359_v0 }
 0x18b   : > { %v1229_v20 = vpop.permute.xlu1 %1228 }
 0x18c   : > { %v1238_v21 = vmul.f32 %v2040_v18, %v1229_v20  ;;  %1246 = vrot.lane.b32.xlu1 %v1237_v19, %s1879_s26  ;;  %v1265_v20 = vsub.f32 1.0, %v2038_v16 }
 0x18e   : > { %1248 = vrot.lane.b32.xlu0 %v1238_v21, %s1879_s26 }
 0x18f   : > { %v1231_v23 = vpop.permute.xlu1 %1230 }
 0x190   : > { %v1239_v24 = vmul.f32 %v2044_v22, %v1231_v23 }
 0x192   : > { %1250 = vrot.lane.b32.xlu1 %v1239_v24, %s1879_s26  ;;  %1288 = vrot.lane.b32.xlu0 %v1952_v4, %s1880_s4 }
 0x196   : > { %1290 = vrot.lane.b32.xlu1 %v1958_v6, %s1880_s4 }
 0x1fa   : > { %v1245_v25 = vpop.permute.xlu0 %1244 }
 0x1fb   : > { %v1256_v26 = vadd.f32 %v1245_v25, %v218_v55 }
 0x1fd   : > { %1829 = vtanh.f32 %v1256_v26 }
 0x1fe   : > { %v1247_v27 = vpop.permute.xlu1 %1246 }
 0x1ff   : > { %v1257_v28 = vadd.f32 %v1247_v27, %v219_v57  ;;  %v1370_v57 = vadd.s32 %v2062_v48, %v1369_v54  ;;  %v1407_v27 = vsel %vm2080_vm11, %v1403_v17, %v1359_v0 }
 0x200   : > { %v1249_v29 = vpop.permute.xlu0 %1248  ;;  %vm1411_vm0 = vcmp.lt.s32.totalorder %v1407_v27, 4 }
 0x201   : > { %v1258_v30 = vadd.f32 %v1249_v29, %v220_v58  ;;  %1831 = vtanh.f32 %v1257_v28  ;;  %v1371_v61 = vshrl.u32 %v1370_v57, 2 }
 0x203   : > { %1833 = vtanh.f32 %v1258_v30  ;;  %v1372_v1 = vmul.u32 7, %v1371_v61  ;;  %v1266_v30 = vsub.f32 1.0, %v2040_v18 }
 0x204   : > { %v1251_v31 = vpop.permute.xlu1 %1250  ;;  %v1289_v63 = vpop.permute.xlu0 %1288 }
 0x205   : > { %v1259_v32 = vadd.f32 %v1251_v31, %v221_v62  ;;  %v1373_v10 = vsub.s32 %v1332_v44, %v1372_v1  ;;  %v1300_v11 = vmul.f32 %v2035_v13, %v1289_v63 }
 0x207   : > { %1835 = vtanh.f32 %v1259_v32  ;;  %v1830_v33 = vpop.eup %1829  ;;  %vm1392_vm13 = vcmp.ne.s32.totalorder %v1373_v10, 0  ;;  %vm1396_vm14 = vcmp.lt.s32.totalorder %v1373_v10, 0  ;;  %v1404_v29 = vadd.s32 7, %v1373_v10 }
 0x208   : > { %1272 = vrot.lane.b32.xlu0 %v1830_v33, %s1881_s5  ;;  %v1291_v8 = vpop.permute.xlu1 %1290  ;;  %vm2089_vm15 = vmand %vm1396_vm14, %vm1392_vm13 }
 0x209   : > { %v1301_v24 = vmul.f32 %v2038_v16, %v1291_v8 }
 0x20b   : > { %v1832_v35 = vpop.eup %1831 }
 0x20c   : > { %1274 = vrot.lane.b32.xlu1 %v1832_v35, %s1881_s5 }
 0x20d   : > { %v1834_v4 = vpop.eup %1833 }
 0x20e   : > { %1276 = vrot.lane.b32.xlu0 %v1834_v4, %s1881_s5 }
 0x211   : > { %v1836_v6 = vpop.eup %1835 }
 0x212   : > { %1278 = vrot.lane.b32.xlu1 %v1836_v6, %s1881_s5  ;;  %1292 = vrot.lane.b32.xlu0 %v2013_v34, %s1880_s4  ;;  %v1342_v34 = vadd.s32 %v2056_v40, %v1341_v46  ;;  %v1408_v6 = vsel %vm2089_vm15, %v1404_v29, %v1373_v10 }
 0x214   : > { %v1343_v50 = vshrl.u32 %v1342_v34, 2 }
 0x216   : > { %1294 = vrot.lane.b32.xlu1 %v2022_v36, %s1880_s4  ;;  %v1333_v36 = vadd.s32 24, %v1330_v38  ;;  %v1344_v55 = vmul.u32 7, %v1343_v50 }
 0x218   : > { %v2065_v51 = vmul.u32.u64.low 2454267026, %v1333_v36  ;;  %v2066_v52 = vmul.u32.u64.high 2454267026, %v1333_v36, %v2065_v51  ;;  %v1345_v59 = vsub.s32 %v1330_v38, %v1344_v55  ;;  %v1267_v38 = vsub.f32 1.0, %v2044_v22 }
 0x21a   : > { %vm1382_vm5 = vc.u32 %v2065_v51, 2454267026  ;;  %vm1390_vm6 = vcmp.ne.s32.totalorder %v1345_v59, 0  ;;  %vm1394_vm7 = vcmp.lt.s32.totalorder %v1345_v59, 0  ;;  %v1402_v2 = vadd.s32 7, %v1345_v59 }
 0x21b   : > { %v1383_v58 = vsel %vm1382_vm5, 1, %v1882_v45  ;;  %vm2071_vm8 = vmand %vm1394_vm7, %vm1390_vm6  ;;  %vm1412_vm5 = vcmp.lt.s32.totalorder %v1408_v6, 4  ;;  %vm1327_vm7 = vcmask 60416  }
 0x21c   : > { %v1384_v62 = vadd.s32 %v2066_v52, %v1383_v58  ;;  %v1406_v14 = vsel %vm2071_vm8, %v1402_v2, %v1345_v59 }
 0x21d   : > { %vm1410_vm12 = vcmp.lt.s32.totalorder %v1406_v14, 4 }
 0x21e   : > { %v1385_v3 = vshrl.u32 %v1384_v62, 2 }
 0x220   : > { %v1386_v15 = vmul.u32 7, %v1385_v3 }
 0x222   : > { %v1387_v26 = vsub.s32 %v1333_v36, %v1386_v15 }
 0x224   : > { %vm1393_vm2 = vcmp.ne.s32.totalorder %v1387_v26, 0  ;;  %vm1397_vm3 = vcmp.lt.s32.totalorder %v1387_v26, 0  ;;  %v1405_v37 = vadd.s32 7, %v1387_v26 }
 0x225   : > { %vm1401_vm4 = vmand %vm1397_vm3, %vm1393_vm2 }
 0x27a   : > { %v1273_v9 = vpop.permute.xlu0 %1272 }
 0x27b   : > { %v1284_v12 = vmul.f32 %v1273_v9, %v1264_v7 }
 0x27d   : > { %v1304_v19 = vadd.f32 %v1300_v11, %v1284_v12 }
 0x27e   : > { %v1275_v23 = vpop.permute.xlu1 %1274 }
 0x27f   : > { %v1285_v25 = vmul.f32 %v1275_v23, %v1265_v20  ;;  %1312 = vrot.lane.b32.xlu0 %v1304_v19, %s1881_s5  ;;  %v1422_v31 = vsel %vm1410_vm12, %v1304_v19, 0.0 }
 0x280   : > { %v1277_v13 = vpop.permute.xlu0 %1276 }
 0x281   : > { %v1305_v28 = vadd.f32 %v1301_v24, %v1285_v25  ;;  %v1286_v35 = vmul.f32 %v1277_v13, %v1266_v30 }
 0x283   : > { %1314 = vrot.lane.b32.xlu1 %v1305_v28, %s1881_s5  ;;  %1430 = vrot.lane.b32.xlu0 %v1422_v31, %s1881_s5  ;;  %v1423_v40 = vsel %vm1411_vm0, %v1305_v28, 0.0 }
 0x284   : > { %v1279_v16 = vpop.permute.xlu1 %1278  ;;  %v1293_v33 = vpop.permute.xlu0 %1292 }
 0x285   : > { %v1302_v4 = vmul.f32 %v2040_v18, %v1293_v33  ;;  %v1287_v42 = vmul.f32 %v1279_v16, %v1267_v38  ;;  %v1409_v18 = vsel %vm1401_vm4, %v1405_v37, %v1387_v26 }
 0x286   : > { %vm1413_vm6 = vcmp.lt.s32.totalorder %v1409_v18, 4 }
 0x287   : > { %v1306_v39 = vadd.f32 %v1302_v4, %v1286_v35  ;;  %1432 = vrot.lane.b32.xlu1 %v1423_v40, %s1881_s5 }
 0x288   : > { %v1295_v41 = vpop.permute.xlu1 %1294 }
 0x289   : > { %v1303_v43 = vmul.f32 %v2044_v22, %v1295_v41  ;;  %1316 = vrot.lane.b32.xlu0 %v1306_v39, %s1881_s5  ;;  %v1424_v45 = vsel %vm1412_vm5, %v1306_v39, 0.0 }
 0x28b   : > { %v1307_v44 = vadd.f32 %v1303_v43, %v1287_v42 }
 0x28d   : > { %1318 = vrot.lane.b32.xlu1 %v1307_v44, %s1881_s5  ;;  %1434 = vrot.lane.b32.xlu0 %v1424_v45, %s1881_s5  ;;  %v1425_v46 = vsel %vm1413_vm6, %v1307_v44, 0.0 }
 0x291   : > { %1436 = vrot.lane.b32.xlu1 %v1425_v46, %s1881_s5 }
 0x2f1   : > { %v1313_v47 = vpop.permute.xlu0 %1312 }
 0x2f2   : > { %1324 = vst.msk [vmem:[%s1941_s29] sm:$0xff] %vm234_vm1, %v1313_v47 }
 0x2f5   : > { %v1315_v22 = vpop.permute.xlu1 %1314  ;;  %v1431_v48 = vpop.permute.xlu0 %1430 }
 0x2f6   : > { %1325 = vst.msk [vmem:[%s1941_s29 + $0x8] sm:$0xff] %vm234_vm1, %v1315_v22  ;;  %1442 = vst.msk [vmem:[#allocation2 + $0x8] sm:$0xff] %vm234_vm1, %v1431_v48 }
 0x2f9   : > { %v1433_v34 = vpop.permute.xlu1 %1432 }
 0x2fa   : > { %1443 = vst.msk [vmem:[#allocation2 + $0x10] sm:$0xff] %vm234_vm1, %v1433_v34 }
 0x2fb   : > { %v1317_v36 = vpop.permute.xlu0 %1316 }
 0x2fc   : > { %1326 = vst.msk [vmem:[%s1941_s29 + $0x10] sm:$0xff] %vm234_vm1, %v1317_v36 }
 0x2ff   : > { %v1319_v49 = vpop.permute.xlu1 %1318  ;;  %v1435_v50 = vpop.permute.xlu0 %1434 }
 0x300   : > { %1328 = vst.msk [vmem:[%s1941_s29 + $0x18] sm:$0xf] %vm1327_vm7, %v1319_v49 }
 0x301   : > { %1444 = vst.msk [vmem:[#allocation2 + $0x18] sm:$0xff] %vm234_vm1, %v1435_v50 }
 0x303   : > { %v1437_v51 = vpop.permute.xlu1 %1436 }
 0x304   : > { %1445 = vst.msk [vmem:[#allocation2 + $0x20] sm:$0xf] %vm1327_vm7, %v1437_v51 }
 0x305 PF: > { %s13_s16 = sadd.s32 1, %s1875_s16   ;;  %s2140_s12 = smov %s1867_s14 }
 0x306   : > { %p10_p8 = scmp.ge.s32.totalorder %s13_s16, 10   ;;  %s2141_s13 = smov %s1871_s15 }
 0x307   : > { %s2142_s14 = smov %s2145_s17  ;;  %s2143_s15 = smov %s2149_s18 }
 0x308   :  { %12 = sbr.rel (!%p10_p8) target bundleno = 3 (0x3), region = 74 }

// kernel: _lambda_.14
= control target key start
LH: loop header
LB: loop body
LE: loop exit
PB: predicated region body
PF: predicated region fallthrough
CT: control target
= control target key end

     0   :  { %s1196_s12 = smov 0   ;;  %s1324_s0 = inlined_call_operand.vmem [shape: bf16[512,72], index: 0, kind: input, shape index: {}]   ;;  %s1325_s1 = inlined_call_operand.vmem [shape: bf16[72,128], index: 1, kind: input, shape index: {}]   ;;  %s1326_s2 = inlined_call_operand.vmem [shape: f32[1,128], index: 2, kind: input, shape index: {}]   ;;  %s1327_s3 = inlined_call_operand.vmem [shape: bf16[512,128], index: 3, kind: output, shape index: {}]  }
   0x1 LB: > { %s792_s13 = sadd.s32 4294967295, %s1174_s12   ;;  %p796_p0 = scmp.ge.s32.totalorder %s1174_s12, 1  ;;  %s1174_s12 = sphi %s1196_s12, %s13_s12  }
   0x2   : > { %p138_p1 = scmp.lt.s32.totalorder %s1174_s12, 3 }
   0x4   : > { %p139_p2 = pnand %p796_p0, %p138_p1 }
   0x5   : > { %v1083_v0 = vld [vmem:[%s1325_s1] sm:$0xff] (!%p139_p2)   ;;  %v1084_v1 = vld [vmem:[%s1325_s1 + $0x8] sm:$0xff] (!%p139_p2)   ;;  %s797_s18 = sshll.u32 (!%p139_p2), %s792_s13, 5  ;;  %v1085_v2 = vld [vmem:[%s1325_s1 + $0x10] sm:$0xff] (!%p139_p2)   ;;  %vm330_vm0 = vcmask (!%p139_p2), 588800   ;;  %vm379_vm1 = vcmask (!%p139_p2), 1043456  }
   0x6   : > { %142 = sbr.rel (%p139_p2) target bundleno = 288 (0x120), region = 32  ;;  %1021 = vmatprep.subr.bf16.mxu0 (!%p139_p2), %v1083_v0  ;;  %1063 = vmatprep.subr.bf16.mxu1 (!%p139_p2), %v1083_v0  ;;  %p163_p3 = scmp.lt.s32.totalorder (!%p139_p2), %s797_s18, 63  ;;  %v1086_v3 = vld [vmem:[%s1325_s1 + $0x18] sm:$0xff] (!%p139_p2)   ;;  %v1087_v6 = vld [vmem:[%s1325_s1 + $0x20] ss:$0 sps:$4 sm:$0xff] (!%p139_p2)  }
   0x7   : > { %1022 = vmatpush3.bf16.msra.mxu0 (!%p139_p2), %v1083_v0  ;;  %1068 = vmatpush3.bf16.msra.mxu1 (!%p139_p2), %v1083_v0  ;;  %v381_v7 = vsel (!%p139_p2), %vm379_vm1, %v1087_v6, 0  ;;  %v1264_v22 = vld [vmem:[%s1326_s2] ss:$0 sm:$0xff] (!%p139_p2) }
   0x8   : > { %1023 = vmatprep.subr.bf16.mxu0 (!%p139_p2), %v1084_v1  ;;  %1064 = vmatprep.subr.bf16.mxu1 (!%p139_p2), %v1084_v1 }
   0xb   : > { %1024 = vmatpush3.bf16.msra.mxu0 (!%p139_p2), %v1084_v1  ;;  %1069 = vmatpush3.bf16.msra.mxu1 (!%p139_p2), %v1084_v1 }
   0xc   : > { %1025 = vmatprep.subr.bf16.mxu0 (!%p139_p2), %v1085_v2  ;;  %1065 = vmatprep.subr.bf16.mxu1 (!%p139_p2), %v1085_v2 }
   0xd   : > { %s1329_s18 = smov (!%p163_p3, %s797_s18), 63 }
   0xe   : > { %s798_s21 = sshll.u32 %s1329_s18, 2 }
   0xf   : > { %s1224_s26 = scalar_lea.vmem %s1324_s0, %s798_s21  ;;  %1026 = vmatpush3.bf16.msra.mxu0 %v1085_v2  ;;  %1070 = vmatpush3.bf16.msra.mxu1 %v1085_v2  ;;  %s1287_s6 = scalar_lea.vmem %s1327_s3, %s798_s21 }
  0x10   : > { %v1088_v4 = vld [vmem:[%s1224_s26] sm:$0xff]   ;;  %1027 = vmatprep.subr.bf16.mxu0 %v1086_v3  ;;  %1066 = vmatprep.subr.bf16.mxu1 %v1086_v3  ;;  %v1090_v8 = vld [vmem:[%s1224_s26 + $0x8] sm:$0xff]   ;;  %v1092_v10 = vld [vmem:[%s1224_s26 + $0x10] sm:$0xff]  }
  0x11   : > { %v1089_v5 = vld [vmem:[%s1224_s26 + $0x40] sm:$0xff]   ;;  %1031 = vmatprep.mubr.msk.bf16.mxu0 %vm330_vm0, %v1088_v4  ;;  %v1091_v9 = vld [vmem:[%s1224_s26 + $0x48] sm:$0xff]   ;;  %v1093_v11 = vld [vmem:[%s1224_s26 + $0x50] sm:$0xff]  }
  0x12   : > { %1047 = vmatprep.mubr.msk.bf16.mxu1 %vm330_vm0, %v1089_v5  ;;  %v1094_v12 = vld [vmem:[%s1224_s26 + $0x18] sm:$0xff]   ;;  %v1096_v14 = vld [vmem:[%s1224_s26 + $0x20] sm:$0xff]   ;;  %v1098_v16 = vld [vmem:[%s1224_s26 + $0x28] sm:$0xff]  }
  0x13   : > { %1028 = vmatpush3.bf16.msra.mxu0 %v1086_v3  ;;  %1071 = vmatpush3.bf16.msra.mxu1 %v1086_v3  ;;  %v1095_v13 = vld [vmem:[%s1224_s26 + $0x58] sm:$0xff]   ;;  %v1097_v15 = vld [vmem:[%s1224_s26 + $0x60] sm:$0xff]   ;;  %v1099_v17 = vld [vmem:[%s1224_s26 + $0x68] sm:$0xff]  }
  0x14   : > { %1073 = vmatprep.subr.msk.bf16.mxu0 %vm379_vm1, %v1087_v6  ;;  %1074 = vmatprep.subr.msk.bf16.mxu1 %vm379_vm1, %v1087_v6  ;;  %v1100_v18 = vld [vmem:[%s1224_s26 + $0x30] sm:$0xff]   ;;  %v1102_v20 = vld [vmem:[%s1224_s26 + $0x38] sm:$0xff]  }
  0x15   : > { %v1101_v19 = vld [vmem:[%s1224_s26 + $0x70] sm:$0xff]   ;;  %v1103_v21 = vld [vmem:[%s1224_s26 + $0x78] sm:$0xff]  }
  0x17   : > { %1030 = vmatpush3.bf16.msra.mxu0 %v381_v7  ;;  %1072 = vmatpush3.bf16.msra.mxu1 %v381_v7 }
  0x1a   : > { %1032 = vmatmul.mubr.msk.bf16.vlgmr.msra.gmra.mrb[0].mxu0 %vm330_vm0, %v1090_v8  ;;  %1048 = vmatmul.mubr.msk.bf16.vlgmr.msra.gmra.mrb[0].mxu1 %vm330_vm0, %v1091_v9 }
  0x1b   : > { %1035 = vmatprep.mubr.msk.bf16.mxu0 %vm330_vm0, %v1092_v10  ;;  %1051 = vmatprep.mubr.msk.bf16.mxu1 %vm330_vm0, %v1093_v11 }
  0x22   : > { %1036 = vmatmul.mubr.msk.bf16.gmra.mrb[4].mxu0 %vm330_vm0, %v1094_v12  ;;  %1052 = vmatmul.mubr.msk.bf16.gmra.mrb[4].mxu1 %vm330_vm0, %v1095_v13 }
  0x23   : > { %1039 = vmatprep.mubr.msk.bf16.mxu0 %vm330_vm0, %v1096_v14  ;;  %1055 = vmatprep.mubr.msk.bf16.mxu1 %vm330_vm0, %v1097_v15 }
  0x2a   : > { %1040 = vmatmul.mubr.msk.bf16.gmra.mrb[8].mxu0 %vm330_vm0, %v1098_v16  ;;  %1056 = vmatmul.mubr.msk.bf16.gmra.mrb[8].mxu1 %vm330_vm0, %v1099_v17 }
  0x2b   : > { %1043 = vmatprep.mubr.msk.bf16.mxu0 %vm330_vm0, %v1100_v18  ;;  %1059 = vmatprep.mubr.msk.bf16.mxu1 %vm330_vm0, %v1101_v19 }
  0x32   : > { %1044 = vmatmul.mubr.msk.bf16.gmra.mrb[12].mxu0 %vm330_vm0, %v1102_v20  ;;  %1060 = vmatmul.mubr.msk.bf16.gmra.mrb[12].mxu1 %vm330_vm0, %v1103_v21 }
  0xed   : > { %v1033_v23 = vpop.f32.mrb[0].mxu0  ;;  %v1049_v24 = vpop.f32.mrb[0].mxu1 }
  0xee   : > { %v426_v25 = vadd.f32 %v1033_v23, %v1264_v22  ;;  %v490_v26 = vadd.f32 %v1049_v24, %v1264_v22  ;;  %v417_v27 = vpop.f32.mrb[1].mxu0  ;;  %v481_v28 = vpop.f32.mrb[1].mxu1 }
  0xef   : > { %v418_v29 = vadd.f32 %v1264_v22, %v417_v27  ;;  %v482_v30 = vadd.f32 %v1264_v22, %v481_v28  ;;  %v1034_v31 = vpop.f32.mrb[2].mxu0  ;;  %v1050_v32 = vpop.f32.mrb[2].mxu1 }
  0xf0   : > { %1104 = vtanh.f32 %v426_v25  ;;  %v429_v33 = vadd.f32 %v1034_v31, %v1264_v22  ;;  %v420_v34 = vpop.f32.mrb[3].mxu0  ;;  %v484_v35 = vpop.f32.mrb[3].mxu1  ;;  %v493_v36 = vadd.f32 %v1050_v32, %v1264_v22 }
  0xf1   : > { %1106 = vtanh.f32 %v490_v26  ;;  %v421_v37 = vadd.f32 %v1264_v22, %v420_v34  ;;  %v485_v38 = vadd.f32 %v1264_v22, %v484_v35 }
  0xf2   : > { %1108 = vtanh.f32 %v418_v29 }
  0xf3   : > { %1110 = vtanh.f32 %v482_v30 }
  0xf4   : > { %1112 = vtanh.f32 %v429_v33 }
  0xf5   : > { %1114 = vtanh.f32 %v493_v36  ;;  %v1037_v39 = vpop.f32.mrb[4].mxu0  ;;  %v1053_v40 = vpop.f32.mrb[4].mxu1 }
  0xf6   : > { %1116 = vtanh.f32 %v421_v37  ;;  %v442_v41 = vadd.f32 %v1037_v39, %v1264_v22  ;;  %v506_v42 = vadd.f32 %v1053_v40, %v1264_v22  ;;  %v433_v43 = vpop.f32.mrb[5].mxu0  ;;  %v497_v44 = vpop.f32.mrb[5].mxu1 }
  0xf7   : > { %1118 = vtanh.f32 %v485_v38  ;;  %v434_v45 = vadd.f32 %v1264_v22, %v433_v43  ;;  %v498_v46 = vadd.f32 %v1264_v22, %v497_v44  ;;  %v1038_v47 = vpop.f32.mrb[6].mxu0  ;;  %v1054_v48 = vpop.f32.mrb[6].mxu1 }
  0xf8   : > { %1120 = vtanh.f32 %v442_v41  ;;  %v445_v49 = vadd.f32 %v1038_v47, %v1264_v22  ;;  %v436_v50 = vpop.f32.mrb[7].mxu0  ;;  %v500_v51 = vpop.f32.mrb[7].mxu1  ;;  %v509_v52 = vadd.f32 %v1054_v48, %v1264_v22 }
  0xf9   : > { %1122 = vtanh.f32 %v506_v42  ;;  %v437_v54 = vadd.f32 %v1264_v22, %v436_v50  ;;  %v501_v56 = vadd.f32 %v1264_v22, %v500_v51 }
  0xfa   : > { %v1105_v53 = vpop.eup %1104  ;;  %1124 = vtanh.f32 %v434_v45 }
  0xfb   : > { %v1107_v55 = vpop.eup %1106  ;;  %1126 = vtanh.f32 %v498_v46 }
  0xfc   : > { %v1109_v57 = vpop.eup %1108  ;;  %1128 = vtanh.f32 %v445_v49 }
  0xfd   : > { %v1111_v58 = vpop.eup %1110  ;;  %1130 = vtanh.f32 %v509_v52  ;;  %v1041_v59 = vpop.f32.mrb[8].mxu0 }
  0xfe   : > { %v1057_v60 = vpop.f32.mrb[8].mxu1  ;;  %v1113_v61 = vpop.eup %1112  ;;  %1132 = vtanh.f32 %v437_v54  ;;  %v458_v62 = vadd.f32 %v1041_v59, %v1264_v22 }
  0xff   : > { %v522_v63 = vadd.f32 %v1057_v60, %v1264_v22  ;;  %v449_v0 = vpop.f32.mrb[9].mxu0  ;;  %v513_v1 = vpop.f32.mrb[9].mxu1  ;;  %v913_v3 = vpack.c.bf16 %v1113_v61, %v1105_v53  ;;  %1134 = vtanh.f32 %v501_v56 }
 0x100   : > { %v1115_v2 = vpop.eup %1114  ;;  %v450_v4 = vadd.f32 %v1264_v22, %v449_v0  ;;  %v514_v5 = vadd.f32 %v1264_v22, %v513_v1  ;;  %v1042_v6 = vpop.f32.mrb[10].mxu0  ;;  %1136 = vtanh.f32 %v458_v62 }
 0x101   : > { %v1058_v7 = vpop.f32.mrb[10].mxu1  ;;  %v1117_v8 = vpop.eup %1116  ;;  %v953_v9 = vpack.c.bf16 %v1115_v2, %v1107_v55  ;;  %v461_v10 = vadd.f32 %v1042_v6, %v1264_v22  ;;  %985 = vst [vmem:[%s1287_s6 + $0x8] sm:$0xff] %v913_v3   ;;  %1138 = vtanh.f32 %v522_v63 }
 0x102   : > { %v452_v11 = vpop.f32.mrb[11].mxu0  ;;  %v516_v12 = vpop.f32.mrb[11].mxu1  ;;  %v908_v14 = vpack.c.bf16 %v1117_v8, %v1109_v57  ;;  %v525_v15 = vadd.f32 %v1058_v7, %v1264_v22  ;;  %1140 = vtanh.f32 %v450_v4 }
 0x103   : > { %v1119_v13 = vpop.eup %1118  ;;  %993 = vst [vmem:[%s1287_s6 + $0x48] sm:$0xff] %v953_v9   ;;  %v453_v18 = vadd.f32 %v1264_v22, %v452_v11  ;;  %1142 = vtanh.f32 %v514_v5  ;;  %v517_v20 = vadd.f32 %v1264_v22, %v516_v12 }
 0x104   : > { %v1121_v16 = vpop.eup %1120  ;;  %v948_v17 = vpack.c.bf16 %v1119_v13, %v1111_v58  ;;  %909 = vst [vmem:[%s1287_s6] sm:$0xff] %v908_v14   ;;  %1144 = vtanh.f32 %v461_v10 }
 0x105   : > { %v1123_v19 = vpop.eup %1122  ;;  %1146 = vtanh.f32 %v525_v15  ;;  %v1045_v24 = vpop.f32.mrb[12].mxu0 }
 0x106   : > { %v1125_v21 = vpop.eup %1124  ;;  %992 = vst [vmem:[%s1287_s6 + $0x40] sm:$0xff] %v948_v17   ;;  %v1061_v25 = vpop.f32.mrb[12].mxu1  ;;  %1148 = vtanh.f32 %v453_v18  ;;  %v474_v27 = vadd.f32 %v1045_v24, %v1264_v22 }
 0x107   : > { %v1127_v23 = vpop.eup %1126  ;;  %v538_v28 = vadd.f32 %v1061_v25, %v1264_v22  ;;  %v465_v29 = vpop.f32.mrb[13].mxu0  ;;  %1150 = vtanh.f32 %v517_v20 }
 0x108   : > { %v1129_v26 = vpop.eup %1128  ;;  %v529_v30 = vpop.f32.mrb[13].mxu1  ;;  %v466_v33 = vadd.f32 %v1264_v22, %v465_v29  ;;  %1152 = vtanh.f32 %v474_v27 }
 0x109   : > { %v1131_v31 = vpop.eup %1130  ;;  %v923_v32 = vpack.c.bf16 %v1129_v26, %v1121_v16  ;;  %v530_v34 = vadd.f32 %v1264_v22, %v529_v30  ;;  %v1046_v35 = vpop.f32.mrb[14].mxu0  ;;  %1154 = vtanh.f32 %v538_v28 }
 0x10a   : > { %v1062_v36 = vpop.f32.mrb[14].mxu1  ;;  %v1133_v37 = vpop.eup %1132  ;;  %v963_v38 = vpack.c.bf16 %v1131_v31, %v1123_v19  ;;  %v477_v39 = vadd.f32 %v1046_v35, %v1264_v22  ;;  %1156 = vtanh.f32 %v466_v33 }
 0x10b   : > { %v468_v40 = vpop.f32.mrb[15].mxu0  ;;  %v532_v41 = vpop.f32.mrb[15].mxu1  ;;  %987 = vst [vmem:[%s1287_s6 + $0x18] sm:$0xff] %v923_v32   ;;  %v918_v43 = vpack.c.bf16 %v1133_v37, %v1125_v21  ;;  %v541_v44 = vadd.f32 %v1062_v36, %v1264_v22  ;;  %1158 = vtanh.f32 %v530_v34 }
 0x10c   : > { %v1135_v42 = vpop.eup %1134  ;;  %995 = vst [vmem:[%s1287_s6 + $0x58] sm:$0xff] %v963_v38   ;;  %v469_v47 = vadd.f32 %v1264_v22, %v468_v40  ;;  %v533_v49 = vadd.f32 %v1264_v22, %v532_v41  ;;  %1160 = vtanh.f32 %v477_v39 }
 0x10d   : > { %v1137_v45 = vpop.eup %1136  ;;  %v958_v46 = vpack.c.bf16 %v1135_v42, %v1127_v23  ;;  %986 = vst [vmem:[%s1287_s6 + $0x10] sm:$0xff] %v918_v43   ;;  %1162 = vtanh.f32 %v541_v44 }
 0x10e   : > { %v1139_v48 = vpop.eup %1138  ;;  %1164 = vtanh.f32 %v469_v47 }
 0x10f   : > { %v1141_v50 = vpop.eup %1140  ;;  %994 = vst [vmem:[%s1287_s6 + $0x50] sm:$0xff] %v958_v46   ;;  %1166 = vtanh.f32 %v533_v49 }
 0x110   : > { %v1143_v51 = vpop.eup %1142 }
 0x111   : > { %v1145_v52 = vpop.eup %1144 }
 0x112   : > { %v1147_v53 = vpop.eup %1146  ;;  %v933_v54 = vpack.c.bf16 %v1145_v52, %v1137_v45 }
 0x113   : > { %v1149_v55 = vpop.eup %1148  ;;  %v973_v56 = vpack.c.bf16 %v1147_v53, %v1139_v48 }
 0x114   : > { %v1151_v57 = vpop.eup %1150  ;;  %989 = vst [vmem:[%s1287_s6 + $0x28] sm:$0xff] %v933_v54   ;;  %v928_v58 = vpack.c.bf16 %v1149_v55, %v1141_v50 }
 0x115   : > { %v1153_v22 = vpop.eup %1152  ;;  %997 = vst [vmem:[%s1287_s6 + $0x68] sm:$0xff] %v973_v56   ;;  %v968_v59 = vpack.c.bf16 %v1151_v57, %v1143_v51 }
 0x116   : > { %v1155_v60 = vpop.eup %1154  ;;  %988 = vst [vmem:[%s1287_s6 + $0x20] sm:$0xff] %v928_v58  }
 0x117   : > { %v1157_v61 = vpop.eup %1156  ;;  %996 = vst [vmem:[%s1287_s6 + $0x60] sm:$0xff] %v968_v59  }
 0x118   : > { %v1159_v62 = vpop.eup %1158 }
 0x119   : > { %v1161_v63 = vpop.eup %1160 }
 0x11a   : > { %v1163_v0 = vpop.eup %1162  ;;  %v943_v1 = vpack.c.bf16 %v1161_v63, %v1153_v22 }
 0x11b   : > { %v1165_v2 = vpop.eup %1164  ;;  %v983_v3 = vpack.c.bf16 %v1163_v0, %v1155_v60 }
 0x11c   : > { %v1167_v4 = vpop.eup %1166  ;;  %991 = vst [vmem:[%s1287_s6 + $0x38] sm:$0xff] %v943_v1   ;;  %v938_v5 = vpack.c.bf16 %v1165_v2, %v1157_v61 }
 0x11d   : > { %999 = vst [vmem:[%s1287_s6 + $0x78] sm:$0xff] %v983_v3   ;;  %v978_v6 = vpack.c.bf16 %v1167_v4, %v1159_v62 }
 0x11e   : > { %990 = vst [vmem:[%s1287_s6 + $0x30] sm:$0xff] %v938_v5  }
 0x11f   : > { %998 = vst [vmem:[%s1287_s6 + $0x70] sm:$0xff] %v978_v6  }
 0x120 PF: > { %s13_s12 = sadd.s32 1, %s1174_s12  }
 0x121   : > { %p10_p4 = scmp.ge.s32.totalorder %s13_s12, 4  }
 0x123   :  { %12 = sbr.rel (!%p10_p4) target bundleno = 1 (0x1), region = 62 }

// kernel: _lambda_.15
= control target key start
LH: loop header
LB: loop body
LE: loop exit
PB: predicated region body
PF: predicated region fallthrough
CT: control target
= control target key end

     0   :  { %s879_s12 = smov 0   ;;  %s1014_s0 = inlined_call_operand.vmem [shape: bf16[512,36], index: 0, kind: input, shape index: {}]   ;;  %s1015_s1 = inlined_call_operand.vmem [shape: bf16[36,128], index: 1, kind: input, shape index: {}]   ;;  %s1016_s2 = inlined_call_operand.vmem [shape: f32[1,128], index: 2, kind: input, shape index: {}]   ;;  %s1017_s3 = inlined_call_operand.vmem [shape: f32[512,128], index: 3, kind: output, shape index: {}]  }
   0x1 LB: > { %s648_s13 = sadd.s32 4294967295, %s857_s12   ;;  %p652_p0 = scmp.ge.s32.totalorder %s857_s12, 1  ;;  %s857_s12 = sphi %s879_s12, %s13_s12  }
   0x2   : > { %p138_p1 = scmp.lt.s32.totalorder %s857_s12, 3 }
   0x4   : > { %p139_p2 = pnand %p652_p0, %p138_p1 }
   0x5   : > { %v768_v0 = vld [vmem:[%s1015_s1] sm:$0xff] (!%p139_p2)   ;;  %v769_v1 = vld [vmem:[%s1015_s1 + $0x8] sm:$0xff] (!%p139_p2)   ;;  %s653_s18 = sshll.u32 (!%p139_p2), %s648_s13, 5  ;;  %v770_v2 = vld [vmem:[%s1015_s1 + $0x10] ss:$0 sps:$4 sm:$0x33] (!%p139_p2)  }
   0x6   : > { %142 = sbr.rel (%p139_p2) target bundleno = 278 (0x116), region = 32  ;;  %714 = vmatprep.subr.bf16.mxu0 (!%p139_p2), %v768_v0  ;;  %752 = vmatprep.subr.bf16.mxu1 (!%p139_p2), %v768_v0  ;;  %p163_p3 = scmp.lt.s32.totalorder (!%p139_p2), %s653_s18, 63  ;;  %vm363_vm0 = vcmask (!%p139_p2), 1041408   ;;  %vm314_vm1 = vcmask (!%p139_p2), 293888   ;;  %v939_v20 = vld [vmem:[%s1016_s2] ss:$0 sm:$0xff] (!%p139_p2) }
   0x7   : > { %715 = vmatpush3.bf16.msra.mxu0 (!%p139_p2), %v768_v0  ;;  %755 = vmatpush3.bf16.msra.mxu1 (!%p139_p2), %v768_v0  ;;  %v365_v3 = vsel (!%p139_p2), %vm363_vm0, %v770_v2, 0 }
   0x8   : > { %716 = vmatprep.subr.bf16.mxu0 (!%p139_p2), %v769_v1  ;;  %753 = vmatprep.subr.bf16.mxu1 (!%p139_p2), %v769_v1 }
   0xb   : > { %717 = vmatpush3.bf16.msra.mxu0 (!%p139_p2), %v769_v1  ;;  %756 = vmatpush3.bf16.msra.mxu1 (!%p139_p2), %v769_v1 }
   0xc   : > { %758 = vmatprep.subr.msk.bf16.mxu0 (!%p139_p2), %vm363_vm0, %v770_v2  ;;  %759 = vmatprep.subr.msk.bf16.mxu1 (!%p139_p2), %vm363_vm0, %v770_v2 }
   0xd   : > { %s1019_s18 = smov (!%p163_p3, %s653_s18), 63 }
   0xe   : > { %s654_s21 = sshll.u32 %s1019_s18, 2  ;;  %s656_s27 = sshll.u32 %s1019_s18, 3 }
   0xf   : > { %s902_s24 = scalar_lea.vmem %s1014_s0, %s654_s21  ;;  %719 = vmatpush3.bf16.msra.mxu0 %v365_v3  ;;  %757 = vmatpush3.bf16.msra.mxu1 %v365_v3  ;;  %s957_s30 = scalar_lea.vmem %s1017_s3, %s656_s27 }
  0x10   : > { %v771_v4 = vld [vmem:[%s902_s24] sm:$0xff]   ;;  %v773_v6 = vld [vmem:[%s902_s24 + $0x8] sm:$0xff]   ;;  %v775_v8 = vld [vmem:[%s902_s24 + $0x10] sm:$0xff]  }
  0x11   : > { %v772_v5 = vld [vmem:[%s902_s24 + $0x40] sm:$0xff]   ;;  %720 = vmatprep.mubr.msk.bf16.mxu0 %vm314_vm1, %v771_v4  ;;  %v774_v7 = vld [vmem:[%s902_s24 + $0x48] sm:$0xff]   ;;  %v776_v9 = vld [vmem:[%s902_s24 + $0x50] sm:$0xff]  }
  0x12   : > { %736 = vmatprep.mubr.msk.bf16.mxu1 %vm314_vm1, %v772_v5  ;;  %721 = vmatmul.mubr.msk.bf16.vlgmr.msra.gmra.mrb[0].mxu0 %vm314_vm1, %v773_v6  ;;  %v777_v10 = vld [vmem:[%s902_s24 + $0x18] sm:$0xff]   ;;  %v779_v12 = vld [vmem:[%s902_s24 + $0x20] sm:$0xff]   ;;  %v781_v14 = vld [vmem:[%s902_s24 + $0x28] sm:$0xff]  }
  0x13   : > { %737 = vmatmul.mubr.msk.bf16.vlgmr.msra.gmra.mrb[0].mxu1 %vm314_vm1, %v774_v7  ;;  %724 = vmatprep.mubr.msk.bf16.mxu0 %vm314_vm1, %v775_v8  ;;  %v778_v11 = vld [vmem:[%s902_s24 + $0x58] sm:$0xff]   ;;  %v780_v13 = vld [vmem:[%s902_s24 + $0x60] sm:$0xff]   ;;  %v782_v15 = vld [vmem:[%s902_s24 + $0x68] sm:$0xff]  }
  0x14   : > { %740 = vmatprep.mubr.msk.bf16.mxu1 %vm314_vm1, %v776_v9  ;;  %v783_v16 = vld [vmem:[%s902_s24 + $0x30] sm:$0xff]   ;;  %v785_v18 = vld [vmem:[%s902_s24 + $0x38] sm:$0xff]  }
  0x15   : > { %v784_v17 = vld [vmem:[%s902_s24 + $0x70] sm:$0xff]   ;;  %v786_v19 = vld [vmem:[%s902_s24 + $0x78] sm:$0xff]  }
  0x1a   : > { %725 = vmatmul.mubr.msk.bf16.gmra.mrb[4].mxu0 %vm314_vm1, %v777_v10 }
  0x1b   : > { %741 = vmatmul.mubr.msk.bf16.gmra.mrb[4].mxu1 %vm314_vm1, %v778_v11  ;;  %728 = vmatprep.mubr.msk.bf16.mxu0 %vm314_vm1, %v779_v12 }
  0x1c   : > { %744 = vmatprep.mubr.msk.bf16.mxu1 %vm314_vm1, %v780_v13 }
  0x22   : > { %729 = vmatmul.mubr.msk.bf16.gmra.mrb[8].mxu0 %vm314_vm1, %v781_v14 }
  0x23   : > { %745 = vmatmul.mubr.msk.bf16.gmra.mrb[8].mxu1 %vm314_vm1, %v782_v15  ;;  %732 = vmatprep.mubr.msk.bf16.mxu0 %vm314_vm1, %v783_v16 }
  0x24   : > { %748 = vmatprep.mubr.msk.bf16.mxu1 %vm314_vm1, %v784_v17 }
  0x2a   : > { %733 = vmatmul.mubr.msk.bf16.gmra.mrb[12].mxu0 %vm314_vm1, %v785_v18 }
  0x2b   : > { %749 = vmatmul.mubr.msk.bf16.gmra.mrb[12].mxu1 %vm314_vm1, %v786_v19 }
  0xe5   : > { %v722_v21 = vpop.f32.mrb[0].mxu0 }
  0xe6   : > { %v738_v22 = vpop.f32.mrb[0].mxu1  ;;  %v410_v23 = vadd.f32 %v722_v21, %v939_v20  ;;  %v401_v25 = vpop.f32.mrb[1].mxu0 }
  0xe7   : > { %v474_v24 = vadd.f32 %v738_v22, %v939_v20  ;;  %v465_v26 = vpop.f32.mrb[1].mxu1  ;;  %v402_v27 = vadd.f32 %v939_v20, %v401_v25  ;;  %v723_v29 = vpop.f32.mrb[2].mxu0 }
  0xe8   : > { %v466_v28 = vadd.f32 %v939_v20, %v465_v26  ;;  %v739_v30 = vpop.f32.mrb[2].mxu1  ;;  %787 = vtanh.f32 %v410_v23  ;;  %v413_v31 = vadd.f32 %v723_v29, %v939_v20  ;;  %v404_v32 = vpop.f32.mrb[3].mxu0 }
  0xe9   : > { %v468_v33 = vpop.f32.mrb[3].mxu1  ;;  %789 = vtanh.f32 %v474_v24  ;;  %v477_v34 = vadd.f32 %v739_v30, %v939_v20  ;;  %v405_v35 = vadd.f32 %v939_v20, %v404_v32 }
  0xea   : > { %791 = vtanh.f32 %v402_v27  ;;  %v469_v36 = vadd.f32 %v939_v20, %v468_v33 }
  0xeb   : > { %793 = vtanh.f32 %v466_v28 }
  0xec   : > { %795 = vtanh.f32 %v413_v31 }
  0xed   : > { %797 = vtanh.f32 %v477_v34  ;;  %v726_v37 = vpop.f32.mrb[4].mxu0 }
  0xee   : > { %v742_v38 = vpop.f32.mrb[4].mxu1  ;;  %799 = vtanh.f32 %v405_v35  ;;  %v426_v39 = vadd.f32 %v726_v37, %v939_v20  ;;  %v417_v41 = vpop.f32.mrb[5].mxu0 }
  0xef   : > { %v490_v40 = vadd.f32 %v742_v38, %v939_v20  ;;  %v481_v42 = vpop.f32.mrb[5].mxu1  ;;  %801 = vtanh.f32 %v469_v36  ;;  %v418_v43 = vadd.f32 %v939_v20, %v417_v41  ;;  %v727_v45 = vpop.f32.mrb[6].mxu0 }
  0xf0   : > { %v482_v44 = vadd.f32 %v939_v20, %v481_v42  ;;  %v743_v46 = vpop.f32.mrb[6].mxu1  ;;  %803 = vtanh.f32 %v426_v39  ;;  %v429_v47 = vadd.f32 %v727_v45, %v939_v20  ;;  %v420_v48 = vpop.f32.mrb[7].mxu0 }
  0xf1   : > { %v484_v49 = vpop.f32.mrb[7].mxu1  ;;  %805 = vtanh.f32 %v490_v40  ;;  %v493_v50 = vadd.f32 %v743_v46, %v939_v20  ;;  %v421_v52 = vadd.f32 %v939_v20, %v420_v48 }
  0xf2   : > { %v788_v51 = vpop.eup %787  ;;  %807 = vtanh.f32 %v418_v43  ;;  %v485_v54 = vadd.f32 %v939_v20, %v484_v49 }
  0xf3   : > { %v790_v53 = vpop.eup %789  ;;  %562 = vst [vmem:[%s957_s30 + $0x10] sm:$0xff] %v788_v51  ;;  %809 = vtanh.f32 %v482_v44 }
  0xf4   : > { %v792_v55 = vpop.eup %791  ;;  %578 = vst [vmem:[%s957_s30 + $0x90] sm:$0xff] %v790_v53  ;;  %811 = vtanh.f32 %v429_v47 }
  0xf5   : > { %v794_v56 = vpop.eup %793  ;;  %560 = vst [vmem:[%s957_s30] sm:$0xff] %v792_v55  ;;  %813 = vtanh.f32 %v493_v50  ;;  %v730_v57 = vpop.f32.mrb[8].mxu0 }
  0xf6   : > { %v746_v58 = vpop.f32.mrb[8].mxu1  ;;  %v796_v59 = vpop.eup %795  ;;  %576 = vst [vmem:[%s957_s30 + $0x80] sm:$0xff] %v794_v56  ;;  %815 = vtanh.f32 %v421_v52  ;;  %v442_v60 = vadd.f32 %v730_v57, %v939_v20 }
  0xf7   : > { %v506_v61 = vadd.f32 %v746_v58, %v939_v20  ;;  %v433_v62 = vpop.f32.mrb[9].mxu0  ;;  %v497_v63 = vpop.f32.mrb[9].mxu1  ;;  %563 = vst [vmem:[%s957_s30 + $0x18] sm:$0xff] %v796_v59  ;;  %817 = vtanh.f32 %v485_v54 }
  0xf8   : > { %v798_v0 = vpop.eup %797  ;;  %v434_v1 = vadd.f32 %v939_v20, %v433_v62  ;;  %v498_v2 = vadd.f32 %v939_v20, %v497_v63  ;;  %v731_v3 = vpop.f32.mrb[10].mxu0  ;;  %819 = vtanh.f32 %v442_v60 }
  0xf9   : > { %v747_v4 = vpop.f32.mrb[10].mxu1  ;;  %v800_v5 = vpop.eup %799  ;;  %579 = vst [vmem:[%s957_s30 + $0x98] sm:$0xff] %v798_v0  ;;  %v445_v6 = vadd.f32 %v731_v3, %v939_v20  ;;  %821 = vtanh.f32 %v506_v61 }
  0xfa   : > { %v436_v7 = vpop.f32.mrb[11].mxu0  ;;  %v500_v8 = vpop.f32.mrb[11].mxu1  ;;  %561 = vst [vmem:[%s957_s30 + $0x8] sm:$0xff] %v800_v5  ;;  %v509_v10 = vadd.f32 %v747_v4, %v939_v20  ;;  %823 = vtanh.f32 %v434_v1 }
  0xfb   : > { %v802_v9 = vpop.eup %801  ;;  %v437_v12 = vadd.f32 %v939_v20, %v436_v7  ;;  %825 = vtanh.f32 %v498_v2  ;;  %v501_v14 = vadd.f32 %v939_v20, %v500_v8 }
  0xfc   : > { %v804_v11 = vpop.eup %803  ;;  %577 = vst [vmem:[%s957_s30 + $0x88] sm:$0xff] %v802_v9  ;;  %827 = vtanh.f32 %v445_v6 }
  0xfd   : > { %v806_v13 = vpop.eup %805  ;;  %566 = vst [vmem:[%s957_s30 + $0x30] sm:$0xff] %v804_v11  ;;  %829 = vtanh.f32 %v509_v10  ;;  %v734_v17 = vpop.f32.mrb[12].mxu0 }
  0xfe   : > { %v808_v15 = vpop.eup %807  ;;  %582 = vst [vmem:[%s957_s30 + $0xb0] sm:$0xff] %v806_v13  ;;  %v750_v18 = vpop.f32.mrb[12].mxu1  ;;  %831 = vtanh.f32 %v437_v12  ;;  %v458_v21 = vadd.f32 %v734_v17, %v939_v20 }
  0xff   : > { %v810_v16 = vpop.eup %809  ;;  %564 = vst [vmem:[%s957_s30 + $0x20] sm:$0xff] %v808_v15  ;;  %v522_v22 = vadd.f32 %v750_v18, %v939_v20  ;;  %v449_v23 = vpop.f32.mrb[13].mxu0  ;;  %833 = vtanh.f32 %v501_v14 }
 0x100   : > { %v812_v19 = vpop.eup %811  ;;  %580 = vst [vmem:[%s957_s30 + $0xa0] sm:$0xff] %v810_v16  ;;  %v513_v24 = vpop.f32.mrb[13].mxu1  ;;  %v450_v26 = vadd.f32 %v939_v20, %v449_v23  ;;  %835 = vtanh.f32 %v458_v21 }
 0x101   : > { %v814_v25 = vpop.eup %813  ;;  %567 = vst [vmem:[%s957_s30 + $0x38] sm:$0xff] %v812_v19  ;;  %v514_v27 = vadd.f32 %v939_v20, %v513_v24  ;;  %v735_v28 = vpop.f32.mrb[14].mxu0  ;;  %837 = vtanh.f32 %v522_v22 }
 0x102   : > { %v751_v29 = vpop.f32.mrb[14].mxu1  ;;  %v816_v30 = vpop.eup %815  ;;  %583 = vst [vmem:[%s957_s30 + $0xb8] sm:$0xff] %v814_v25  ;;  %v461_v31 = vadd.f32 %v735_v28, %v939_v20  ;;  %839 = vtanh.f32 %v450_v26 }
 0x103   : > { %v452_v32 = vpop.f32.mrb[15].mxu0  ;;  %v516_v33 = vpop.f32.mrb[15].mxu1  ;;  %565 = vst [vmem:[%s957_s30 + $0x28] sm:$0xff] %v816_v30  ;;  %v525_v35 = vadd.f32 %v751_v29, %v939_v20  ;;  %841 = vtanh.f32 %v514_v27 }
 0x104   : > { %v818_v34 = vpop.eup %817  ;;  %v453_v37 = vadd.f32 %v939_v20, %v452_v32  ;;  %v517_v39 = vadd.f32 %v939_v20, %v516_v33  ;;  %843 = vtanh.f32 %v461_v31 }
 0x105   : > { %v820_v36 = vpop.eup %819  ;;  %581 = vst [vmem:[%s957_s30 + $0xa8] sm:$0xff] %v818_v34  ;;  %845 = vtanh.f32 %v525_v35 }
 0x106   : > { %v822_v38 = vpop.eup %821  ;;  %570 = vst [vmem:[%s957_s30 + $0x50] sm:$0xff] %v820_v36  ;;  %847 = vtanh.f32 %v453_v37 }
 0x107   : > { %v824_v40 = vpop.eup %823  ;;  %586 = vst [vmem:[%s957_s30 + $0xd0] sm:$0xff] %v822_v38  ;;  %849 = vtanh.f32 %v517_v39 }
 0x108   : > { %v826_v41 = vpop.eup %825  ;;  %568 = vst [vmem:[%s957_s30 + $0x40] sm:$0xff] %v824_v40 }
 0x109   : > { %v828_v42 = vpop.eup %827  ;;  %584 = vst [vmem:[%s957_s30 + $0xc0] sm:$0xff] %v826_v41 }
 0x10a   : > { %v830_v43 = vpop.eup %829  ;;  %571 = vst [vmem:[%s957_s30 + $0x58] sm:$0xff] %v828_v42 }
 0x10b   : > { %v832_v20 = vpop.eup %831  ;;  %587 = vst [vmem:[%s957_s30 + $0xd8] sm:$0xff] %v830_v43 }
 0x10c   : > { %v834_v44 = vpop.eup %833  ;;  %569 = vst [vmem:[%s957_s30 + $0x48] sm:$0xff] %v832_v20 }
 0x10d   : > { %v836_v45 = vpop.eup %835  ;;  %585 = vst [vmem:[%s957_s30 + $0xc8] sm:$0xff] %v834_v44 }
 0x10e   : > { %v838_v46 = vpop.eup %837  ;;  %574 = vst [vmem:[%s957_s30 + $0x70] sm:$0xff] %v836_v45 }
 0x10f   : > { %v840_v47 = vpop.eup %839  ;;  %590 = vst [vmem:[%s957_s30 + $0xf0] sm:$0xff] %v838_v46 }
 0x110   : > { %v842_v48 = vpop.eup %841  ;;  %572 = vst [vmem:[%s957_s30 + $0x60] sm:$0xff] %v840_v47 }
 0x111   : > { %v844_v49 = vpop.eup %843  ;;  %588 = vst [vmem:[%s957_s30 + $0xe0] sm:$0xff] %v842_v48 }
 0x112   : > { %v846_v50 = vpop.eup %845  ;;  %575 = vst [vmem:[%s957_s30 + $0x78] sm:$0xff] %v844_v49 }
 0x113   : > { %v848_v51 = vpop.eup %847  ;;  %591 = vst [vmem:[%s957_s30 + $0xf8] sm:$0xff] %v846_v50 }
 0x114   : > { %v850_v52 = vpop.eup %849  ;;  %573 = vst [vmem:[%s957_s30 + $0x68] sm:$0xff] %v848_v51 }
 0x115   : > { %589 = vst [vmem:[%s957_s30 + $0xe8] sm:$0xff] %v850_v52 }
 0x116 PF: > { %s13_s12 = sadd.s32 1, %s857_s12  }
 0x117   : > { %p10_p4 = scmp.ge.s32.totalorder %s13_s12, 4  }
 0x119   :  { %12 = sbr.rel (!%p10_p4) target bundleno = 1 (0x1), region = 62 }

</bundles_post_ra>
